<compile_context>
chip_gen: v5e
topology: v5e:2x2
jax: 0.10.0
libtpu: 0.0.40
codegen_flags: <defaults>
</compile_context>

<pallas_src>
import jax
import jax.numpy as jnp
from jax.experimental import pallas as pl
from jax.experimental.pallas import tpu as pltpu


LANE = 128                         # TPU lane width: pad feature/class dims.
NEG_INF = -1e30                    # finite "masked logit" for padded classes.
VMEM_LIMIT_BYTES = 48 * 1024 * 1024  # stays under v7x's 64 MiB physical VMEM.
_FUSED_MAX_NODES = 2048            # fused (A-resident) path node cap.
_FUSED_MAX_BYTES = 40 * 1024 * 1024  # fused path VMEM working-set cap.


def _round_up(x, m):
    return ((x + m - 1) // m) * m


def _pad2(x, rows, cols, fill=0.0):
    r, c = x.shape
    return jnp.pad(x, ((0, rows - r), (0, cols - c)), constant_values=fill)


def _pick_row_tile(npad):
    # 256-aligned row tiles fill the v6e/v7x 2x256x256 MXU; keep >=2 row tiles
    # whenever possible so the "parallel" axis can occupy both v7x TCs.
    if npad >= 1024 and npad % 512 == 0:
        return 512
    if npad >= 512:
        return 256
    return 128          # npad is always a multiple of 256 -> >=2 row tiles


def _pick_k_tile(npad, cap=2048):
    # Largest multiple of 256 that divides npad and is <= cap: wide reduction
    # tiles keep the HBM-bound A@x phase near the bandwidth roofline.
    j = npad // 256
    best = 1
    for d in range(1, j + 1):
        if j % d == 0 and 256 * d <= cap:
            best = d
    return 256 * best


def _fused_vmem_estimate(npad, fpad, hpad, cpad):
    fmax = max(fpad, hpad)
    return (npad * npad * 2                 # adjacency (bf16)
            + npad * fpad * 2               # x0
            + 3 * npad * hpad * 2           # x1..x3
            + npad * (fpad + hpad) * 2      # widest concat operand
            + 2 * npad * fmax * 4           # f32 agg / pre-activation temps
            + 2 * npad * cpad * 4           # logits + output
            + (2 * fpad + 4 * hpad) * hpad * 2 + 3 * hpad * cpad * 2
            + 256 * 1024)                   # slack for small operands


# -----------------------------------------------------------------------------
# Tiled path, kernel 1: one SAGE layer
#   y = relu( [ (1/deg) * (A @ x) | x ] @ [Wl ; Wr] + b )
# grid = (row tiles ["parallel"], reduction tiles ["arbitrary", last])
# -----------------------------------------------------------------------------
def _sage_layer_kernel(a_ref, xn_ref, xs_ref, dinv_ref, w_ref, b_ref,
                       out_ref, acc_ref):
    k = pl.program_id(1)

    @pl.when(k == 0)
    def _():
        acc_ref[...] = jnp.zeros_like(acc_ref)

    # bf16 x bf16 -> f32 accumulation on the MXU.  A carries raw edge weights;
    # the mean normalization is an f32 row scale applied in the epilogue.
    acc_ref[...] += jnp.dot(a_ref[...], xn_ref[...],
                            preferred_element_type=jnp.float32)

    @pl.when(k == pl.num_programs(1) - 1)
    def _():
        agg = (dinv_ref[...] * acc_ref[...]).astype(jnp.bfloat16)
        # Single fused projection: [agg | x_self] @ [Wl ; Wr]  + bias.
        h = jnp.dot(jnp.concatenate([agg, xs_ref[...]], axis=-1), w_ref[...],
                    preferred_element_type=jnp.float32) + b_ref[...]
        # dropout(p=0.2, training=False) -> identity (omitted)
        out_ref[...] = jnp.maximum(h, 0.0).astype(out_ref.dtype)


def _sage_layer(adj, dinv, x, w, b, *, tile_m, tile_k):
    npad = adj.shape[0]
    fin = x.shape[1]
    hout = w.shape[1]
    grid_m, grid_k = npad // tile_m, npad // tile_k

    flops = 2 * npad * npad * fin + 2 * npad * (2 * fin) * hout
    bytes_accessed = (adj.size * 2                       # A streamed once/layer
                      + grid_m * npad * fin * 2          # neighbour x re-reads
                      + npad * fin * 2                   # self rows
                      + dinv.size * 4
                      + w.size * 2 + b.size * 4
                      + npad * hout * 2)                 # output

    return pl.pallas_call(
        _sage_layer_kernel,
        out_shape=jax.ShapeDtypeStruct((npad, hout), jnp.bfloat16),
        grid_spec=pltpu.PrefetchScalarGridSpec(
            num_scalar_prefetch=0,
            grid=(grid_m, grid_k),
            in_specs=[
                pl.BlockSpec((tile_m, tile_k), lambda i, k: (i, k)),   # A tile
                pl.BlockSpec((tile_k, fin), lambda i, k: (k, 0)),      # x (neigh)
                pl.BlockSpec((tile_m, fin), lambda i, k: (i, 0)),      # x (self)
                pl.BlockSpec((tile_m, 1), lambda i, k: (i, 0)),        # 1/deg f32
                pl.BlockSpec((2 * fin, hout), lambda i, k: (0, 0)),    # [Wl ; Wr]
                pl.BlockSpec((1, hout), lambda i, k: (0, 0)),          # bias f32
            ],
            out_specs=pl.BlockSpec((tile_m, hout), lambda i, k: (i, 0)),
            scratch_shapes=[pltpu.VMEM((tile_m, fin), jnp.float32)],
        ),
        compiler_params=pltpu.CompilerParams(
            dimension_semantics=("parallel", "arbitrary"),
            vmem_limit_bytes=VMEM_LIMIT_BYTES,
        ),
        cost_estimate=pl.CostEstimate(
            flops=flops, transcendentals=0, bytes_accessed=bytes_accessed),
    )(adj, x, x, dinv, w, b)


# -----------------------------------------------------------------------------
# Tiled path, kernel 2: SAGE layer 3 fused with Linear(3H, C) + log_softmax.
# x3 never leaves VMEM; classifier done as one concat matmul.
# -----------------------------------------------------------------------------
def _sage3_classifier_kernel(a_ref, x2n_ref, x2s_ref, x1s_ref, dinv_ref,
                             w3_ref, b3_ref, wc_ref, bc_ref,
                             out_ref, acc_ref):
    k = pl.program_id(1)

    @pl.when(k == 0)
    def _():
        acc_ref[...] = jnp.zeros_like(acc_ref)

    acc_ref[...] += jnp.dot(a_ref[...], x2n_ref[...],
                            preferred_element_type=jnp.float32)

    @pl.when(k == pl.num_programs(1) - 1)
    def _():
        x1 = x1s_ref[...]
        x2 = x2s_ref[...]
        agg = (dinv_ref[...] * acc_ref[...]).astype(jnp.bfloat16)
        h3 = jnp.dot(jnp.concatenate([agg, x2], axis=-1), w3_ref[...],
                     preferred_element_type=jnp.float32) + b3_ref[...]
        x3 = jnp.maximum(h3, 0.0).astype(jnp.bfloat16)

        # Linear(3H, C) as one matmul on [x1 | x2 | x3]; padded class lanes
        # carry a -1e30 bias so they vanish from the softmax denominator.
        logits = jnp.dot(jnp.concatenate([x1, x2, x3], axis=-1), wc_ref[...],
                         preferred_element_type=jnp.float32) + bc_ref[...]

        m = jnp.max(logits, axis=-1, keepdims=True)
        z = logits - m
        lse = jnp.log(jnp.sum(jnp.exp(z), axis=-1, keepdims=True))
        out_ref[...] = z - lse


def _sage3_and_classify(adj, dinv, x2, x1, w3, b3, wc, bc, *, tile_m, tile_k):
    npad = adj.shape[0]
    hpad = x2.shape[1]
    cpad = wc.shape[1]
    grid_m, grid_k = npad // tile_m, npad // tile_k

    flops = (2 * npad * npad * hpad
             + 2 * npad * (2 * hpad) * hpad
             + 2 * npad * (3 * hpad) * cpad)
    transcendentals = npad * cpad + npad
    bytes_accessed = (adj.size * 2
                      + grid_m * npad * hpad * 2         # x2 neighbour re-reads
                      + 2 * npad * hpad * 2              # x2 / x1 self rows
                      + dinv.size * 4
                      + w3.size * 2 + wc.size * 2
                      + b3.size * 4 + bc.size * 4
                      + npad * cpad * 4)

    return pl.pallas_call(
        _sage3_classifier_kernel,
        out_shape=jax.ShapeDtypeStruct((npad, cpad), jnp.float32),
        grid_spec=pltpu.PrefetchScalarGridSpec(
            num_scalar_prefetch=0,
            grid=(grid_m, grid_k),
            in_specs=[
                pl.BlockSpec((tile_m, tile_k), lambda i, k: (i, k)),   # A tile
                pl.BlockSpec((tile_k, hpad), lambda i, k: (k, 0)),     # x2 neigh
                pl.BlockSpec((tile_m, hpad), lambda i, k: (i, 0)),     # x2 self
                pl.BlockSpec((tile_m, hpad), lambda i, k: (i, 0)),     # x1 self
                pl.BlockSpec((tile_m, 1), lambda i, k: (i, 0)),        # 1/deg f32
                pl.BlockSpec((2 * hpad, hpad), lambda i, k: (0, 0)),   # [W3l ; W3r]
                pl.BlockSpec((1, hpad), lambda i, k: (0, 0)),          # b3 f32
                pl.BlockSpec((3 * hpad, cpad), lambda i, k: (0, 0)),   # [Wc1;Wc2;Wc3]
                pl.BlockSpec((1, cpad), lambda i, k: (0, 0)),          # bc f32
            ],
            out_specs=pl.BlockSpec((tile_m, cpad), lambda i, k: (i, 0)),
            scratch_shapes=[pltpu.VMEM((tile_m, hpad), jnp.float32)],
        ),
        compiler_params=pltpu.CompilerParams(
            dimension_semantics=("parallel", "arbitrary"),
            vmem_limit_bytes=VMEM_LIMIT_BYTES,
        ),
        cost_estimate=pl.CostEstimate(
            flops=flops, transcendentals=transcendentals,
            bytes_accessed=bytes_accessed),
    )(adj, x2, x2, x1, dinv, w3, b3, wc, bc)


# -----------------------------------------------------------------------------
# Fused path: whole forward pass in one kernel, adjacency + activations pinned
# in VMEM (A read from HBM exactly once).  Used when the working set fits.
# -----------------------------------------------------------------------------
def _fused_kernel(adj_ref, dinv_ref, x0_ref,
                  w1_ref, b1_ref, w2_ref, b2_ref, w3_ref, b3_ref,
                  wc_ref, bc_ref, out_ref):
    adj = adj_ref[...]
    dinv = dinv_ref[...]

    def sage(x, w_ref, b_ref):
        agg = (dinv * jnp.dot(adj, x, preferred_element_type=jnp.float32)
               ).astype(jnp.bfloat16)
        h = jnp.dot(jnp.concatenate([agg, x], axis=-1), w_ref[...],
                    preferred_element_type=jnp.float32) + b_ref[...]
        # dropout(p=0.2, training=False) -> identity (omitted)
        return jnp.maximum(h, 0.0).astype(jnp.bfloat16)

    x1 = sage(x0_ref[...], w1_ref, b1_ref)
    x2 = sage(x1, w2_ref, b2_ref)
    x3 = sage(x2, w3_ref, b3_ref)

    logits = jnp.dot(jnp.concatenate([x1, x2, x3], axis=-1), wc_ref[...],
                     preferred_element_type=jnp.float32) + bc_ref[...]
    m = jnp.max(logits, axis=-1, keepdims=True)
    z = logits - m
    lse = jnp.log(jnp.sum(jnp.exp(z), axis=-1, keepdims=True))
    out_ref[...] = z - lse


def _fused_forward(adj, dinv, x0, p):
    npad = adj.shape[0]
    fpad = x0.shape[1]
    hpad = p["b1"].shape[1]
    cpad = p["bc"].shape[1]

    flops = (2 * npad * npad * (fpad + 2 * hpad)
             + 2 * npad * (2 * fpad * hpad + 2 * (2 * hpad) * hpad
                           + 3 * hpad * cpad))
    transcendentals = npad * cpad + npad
    bytes_accessed = (adj.size * 2 + dinv.size * 4 + x0.size * 2
                      + (p["w1"].size + p["w2"].size + p["w3"].size
                         + p["wc"].size) * 2
                      + (p["b1"].size + p["b2"].size + p["b3"].size
                         + p["bc"].size) * 4
                      + npad * cpad * 4)

    return pl.pallas_call(
        _fused_kernel,
        out_shape=jax.ShapeDtypeStruct((npad, cpad), jnp.float32),
        compiler_params=pltpu.CompilerParams(
            vmem_limit_bytes=VMEM_LIMIT_BYTES),
        cost_estimate=pl.CostEstimate(
            flops=flops, transcendentals=transcendentals,
            bytes_accessed=bytes_accessed),
    )(adj, dinv, x0, p["w1"], p["b1"], p["w2"], p["b2"], p["w3"], p["b3"],
      p["wc"], p["bc"])


# -----------------------------------------------------------------------------
# Plain-JAX glue: adjacency build, padding, parameter prep, forward driver.
# -----------------------------------------------------------------------------
def build_adjacency(edge_index, edge_weight, size):
    """Dense A with A[i, j] = w(j->i) (raw edge weights) and 1/in-degree."""
    src, dst = edge_index[0], edge_index[1]
    if edge_weight is None:
        edge_weight = jnp.ones(src.shape, jnp.float32)
    a = jnp.zeros((size, size), jnp.float32).at[dst, src].add(edge_weight)
    deg = jnp.zeros((size,), jnp.float32).at[dst].add(1.0)
    dinv = 1.0 / jnp.maximum(deg, 1.0)
    return a, dinv[:, None].astype(jnp.float32)


def pad_and_fuse_params(params, fpad, hpad, cpad):
    """Pad to lane multiples, pre-concatenate the per-layer / classifier
    weights ([Wl ; Wr] and [Wc1 ; Wc2 ; Wc3]), cast weights to bf16."""
    def cat0(*xs):
        return jnp.concatenate(xs, axis=0).astype(jnp.bfloat16)

    return {
        "w1": cat0(_pad2(params["w1l"], fpad, hpad),
                   _pad2(params["w1r"], fpad, hpad)),
        "b1": _pad2(params["b1"], 1, hpad).astype(jnp.float32),
        "w2": cat0(_pad2(params["w2l"], hpad, hpad),
                   _pad2(params["w2r"], hpad, hpad)),
        "b2": _pad2(params["b2"], 1, hpad).astype(jnp.float32),
        "w3": cat0(_pad2(params["w3l"], hpad, hpad),
                   _pad2(params["w3r"], hpad, hpad)),
        "b3": _pad2(params["b3"], 1, hpad).astype(jnp.float32),
        "wc": cat0(_pad2(params["wlin1"], hpad, cpad),
                   _pad2(params["wlin2"], hpad, cpad),
                   _pad2(params["wlin3"], hpad, cpad)),
        # padded class lanes get a huge negative bias -> masked in log_softmax
        "bc": _pad2(params["blin"], 1, cpad, fill=NEG_INF).astype(jnp.float32),
    }


def graphsaint_forward(x0, edge_index, edge_weight, params, *, path="auto"):
    """x0: [N, F] f32.  Returns log-probs [N, num_classes] f32."""
    n, f = x0.shape
    hidden = params["w1l"].shape[1]
    classes = params["blin"].shape[-1]

    fpad = _round_up(f, LANE)
    hpad = _round_up(hidden, LANE)
    cpad = _round_up(classes, LANE)
    npad = _round_up(max(n, 256), 256)

    adj_f32, dinv = build_adjacency(edge_index, edge_weight, npad)
    adj = adj_f32.astype(jnp.bfloat16)   # raw weights only (deg scale stays f32)
    x0p = _pad2(x0, npad, fpad).astype(jnp.bfloat16)
    p = pad_and_fuse_params(params, fpad, hpad, cpad)

    if path == "auto":
        fits = (npad <= _FUSED_MAX_NODES
                and _fused_vmem_estimate(npad, fpad, hpad, cpad)
                <= _FUSED_MAX_BYTES)
        path = "fused" if fits else "tiled"

    if path == "fused":
        logp = _fused_forward(adj, dinv, x0p, p)
    else:
        tile_m = _pick_row_tile(npad)
        tile_k = _pick_k_tile(npad)
        x1 = _sage_layer(adj, dinv, x0p, p["w1"], p["b1"],
                         tile_m=tile_m, tile_k=tile_k)
        x2 = _sage_layer(adj, dinv, x1, p["w2"], p["b2"],
                         tile_m=tile_m, tile_k=tile_k)
        logp = _sage3_and_classify(adj, dinv, x2, x1, p["w3"], p["b3"],
                                   p["wc"], p["bc"],
                                   tile_m=tile_m, tile_k=tile_k)
    # slice BEFORE any dtype change: the -1e30 masked lanes must stay in f32.
    return logp[:n, :classes]


def init_params(key, in_channels, hidden, num_classes):
    ks = jax.random.split(key, 13)

    def unif(k, shape, fan_in):
        scale = 1.0 / jnp.sqrt(jnp.float32(fan_in))
        return jax.random.uniform(k, shape, jnp.float32, -scale, scale)

    return {
        "w1l": unif(ks[0], (in_channels, hidden), in_channels),
        "w1r": unif(ks[1], (in_channels, hidden), in_channels),
        "b1": unif(ks[2], (1, hidden), in_channels),
        "w2l": unif(ks[3], (hidden, hidden), hidden),
        "w2r": unif(ks[4], (hidden, hidden), hidden),
        "b2": unif(ks[5], (1, hidden), hidden),
        "w3l": unif(ks[6], (hidden, hidden), hidden),
        "w3r": unif(ks[7], (hidden, hidden), hidden),
        "b3": unif(ks[8], (1, hidden), hidden),
        "wlin1": unif(ks[9], (hidden, num_classes), 3 * hidden),
        "wlin2": unif(ks[10], (hidden, num_classes), 3 * hidden),
        "wlin3": unif(ks[11], (hidden, num_classes), 3 * hidden),
        "blin": unif(ks[12], (1, num_classes), 3 * hidden),
    }


# -----------------------------------------------------------------------------
# References: (a) bf16-numerics-matched, (b) pure f32 (fidelity check).
# -----------------------------------------------------------------------------
def reference_forward_matched(x0, adj, dinv, p):
    hi = jax.lax.Precision.HIGHEST

    def rb(v):  # bf16 round-trip mirroring the kernel's bf16 operands
        return v.astype(jnp.bfloat16).astype(jnp.float32)

    adj = rb(adj)
    x = rb(x0)

    def layer(x, wl, wr, b):
        agg = rb(dinv * jnp.dot(adj, x, precision=hi))
        return rb(jnp.maximum(jnp.dot(agg, rb(wl), precision=hi)
                              + jnp.dot(x, rb(wr), precision=hi) + b, 0.0))

    x1 = layer(x, p["w1l"], p["w1r"], p["b1"])
    x2 = layer(x1, p["w2l"], p["w2r"], p["b2"])
    x3 = layer(x2, p["w3l"], p["w3r"], p["b3"])
    logits = (jnp.dot(x1, rb(p["wlin1"]), precision=hi)
              + jnp.dot(x2, rb(p["wlin2"]), precision=hi)
              + jnp.dot(x3, rb(p["wlin3"]), precision=hi) + p["blin"])
    return jax.nn.log_softmax(logits, axis=-1)


def reference_forward_f32(x0, adj, dinv, p):
    hi = jax.lax.Precision.HIGHEST

    def layer(x, wl, wr, b):
        agg = dinv * jnp.dot(adj, x, precision=hi)
        return jnp.maximum(jnp.dot(agg, wl, precision=hi)
                           + jnp.dot(x, wr, precision=hi) + b, 0.0)

    x1 = layer(x0, p["w1l"], p["w1r"], p["b1"])
    x2 = layer(x1, p["w2l"], p["w2r"], p["b2"])
    x3 = layer(x2, p["w3l"], p["w3r"], p["b3"])
    logits = (jnp.dot(x1, p["wlin1"], precision=hi)
              + jnp.dot(x2, p["wlin2"], precision=hi)
              + jnp.dot(x3, p["wlin3"], precision=hi) + p["blin"])
    return jax.nn.log_softmax(logits, axis=-1)


if __name__ == "__main__":
    key = jax.random.PRNGKey(0)
    N = 64            # nodes in the sampled subgraph
    IN_CH = 16        # dataset.num_node_features (small synthetic stand-in)
    HIDDEN = 32       # hidden_channels
    NUM_CLASSES = 8   # dataset.num_classes (small synthetic stand-in)
    NUM_EDGES = 256

    k_x, k_e, k_w, k_p = jax.random.split(key, 4)
    x0 = jax.random.normal(k_x, (N, IN_CH), jnp.float32)
    edge_index = jax.random.randint(k_e, (2, NUM_EDGES), 0, N, jnp.int32)
    edge_weight = jax.random.uniform(k_w, (NUM_EDGES,), jnp.float32, 0.5, 1.5)
    params = init_params(k_p, IN_CH, HIDDEN, NUM_CLASSES)

    # Run BOTH paths: the fused (A pinned in VMEM) path and the tiled fallback.
    out_fused = jax.block_until_ready(
        graphsaint_forward(x0, edge_index, edge_weight, params, path="fused"))
    out_tiled = jax.block_until_ready(
        graphsaint_forward(x0, edge_index, edge_weight, params, path="tiled"))

    assert out_fused.shape == (N, NUM_CLASSES)
    assert out_tiled.shape == (N, NUM_CLASSES)
    for o in (out_fused, out_tiled):
        # rows of log_softmax must exp-sum to 1 (padded class lanes masked out)
        assert jnp.allclose(jnp.sum(jnp.exp(o), axis=-1), 1.0, atol=1e-4)

    cross_err = float(jnp.max(jnp.abs(out_fused - out_tiled)))
    assert jnp.allclose(out_fused, out_tiled, atol=1e-2), cross_err

    adj_ref, dinv_ref = build_adjacency(edge_index, edge_weight, N)
    ref_bf16 = reference_forward_matched(x0, adj_ref, dinv_ref, params)
    ref_f32 = reference_forward_f32(x0, adj_ref, dinv_ref, params)

    for name, o in (("fused", out_fused), ("tiled", out_tiled)):
        err_b = float(jnp.max(jnp.abs(o - ref_bf16)))
        err_f = float(jnp.max(jnp.abs(o - ref_f32)))
        assert jnp.allclose(o, ref_bf16, atol=1e-2), (name, err_b)
        # fidelity vs a pure-f32 reference with a realistic bf16 tolerance
        assert jnp.allclose(o, ref_f32, atol=1e-1), (name, err_f)

    print("KERNEL_OK")
</pallas_src>

<mosaic_0001>
module attributes {stable_mosaic.version = 11 : i64} {
  func.func @_fused_kernel(%arg0: memref<256x256xbf16, #tpu.memory_space<vmem>>, %arg1: memref<256x1xf32, #tpu.memory_space<vmem>>, %arg2: memref<256x128xbf16, #tpu.memory_space<vmem>>, %arg3: memref<256x128xbf16, #tpu.memory_space<vmem>>, %arg4: memref<1x128xf32, #tpu.memory_space<vmem>>, %arg5: memref<256x128xbf16, #tpu.memory_space<vmem>>, %arg6: memref<1x128xf32, #tpu.memory_space<vmem>>, %arg7: memref<256x128xbf16, #tpu.memory_space<vmem>>, %arg8: memref<1x128xf32, #tpu.memory_space<vmem>>, %arg9: memref<384x128xbf16, #tpu.memory_space<vmem>>, %arg10: memref<1x128xf32, #tpu.memory_space<vmem>>, %arg11: memref<256x128xf32, #tpu.memory_space<vmem>>) attributes {dimension_semantics = [], scalar_prefetch = 0 : i64, scratch_operands = 0 : i64, tpu.core_type = #tpu.core_type<tc>} {
    %c0 = arith.constant 0 : index
    %c0_0 = arith.constant 0 : index
    %0 = vector.load %arg0[%c0, %c0_0] : memref<256x256xbf16, #tpu.memory_space<vmem>>, vector<256x256xbf16>
    %c0_1 = arith.constant 0 : index
    %c0_2 = arith.constant 0 : index
    %1 = vector.load %arg1[%c0_1, %c0_2] : memref<256x1xf32, #tpu.memory_space<vmem>>, vector<256x1xf32>
    %c0_3 = arith.constant 0 : index
    %c0_4 = arith.constant 0 : index
    %2 = vector.load %arg2[%c0_3, %c0_4] : memref<256x128xbf16, #tpu.memory_space<vmem>>, vector<256x128xbf16>
    %cst = arith.constant dense<0.000000e+00> : vector<256x128xf32>
    %3 = tpu.matmul %0, %2, %cst {dimension_numbers = #tpu.dot_dimension_numbers<[1], [0], [0], [1], [0, 0, 1, 1], [], []>} : vector<256x256xbf16>, vector<256x128xbf16>, vector<256x128xf32> -> vector<256x128xf32>
    %4 = vector.broadcast %1 : vector<256x1xf32> to vector<256x128xf32>
    %5 = arith.mulf %4, %3 : vector<256x128xf32>
    %6 = arith.truncf %5 : vector<256x128xf32> to vector<256x128xbf16>
    %7 = tpu.concatenate %6, %2 in 1 : vector<256x128xbf16>, vector<256x128xbf16> -> vector<256x256xbf16>
    %c0_5 = arith.constant 0 : index
    %c0_6 = arith.constant 0 : index
    %8 = vector.load %arg3[%c0_5, %c0_6] : memref<256x128xbf16, #tpu.memory_space<vmem>>, vector<256x128xbf16>
    %cst_7 = arith.constant dense<0.000000e+00> : vector<256x128xf32>
    %9 = tpu.matmul %7, %8, %cst_7 {dimension_numbers = #tpu.dot_dimension_numbers<[1], [0], [0], [1], [0, 0, 1, 1], [], []>} : vector<256x256xbf16>, vector<256x128xbf16>, vector<256x128xf32> -> vector<256x128xf32>
    %c0_8 = arith.constant 0 : index
    %c0_9 = arith.constant 0 : index
    %10 = vector.load %arg4[%c0_8, %c0_9] : memref<1x128xf32, #tpu.memory_space<vmem>>, vector<1x128xf32>
    %11 = vector.broadcast %10 : vector<1x128xf32> to vector<256x128xf32>
    %12 = arith.addf %9, %11 : vector<256x128xf32>
    %cst_10 = arith.constant 0.000000e+00 : f32
    %13 = vector.broadcast %cst_10 : f32 to vector<256x128xf32>
    %14 = arith.maximumf %12, %13 : vector<256x128xf32>
    %15 = arith.truncf %14 : vector<256x128xf32> to vector<256x128xbf16>
    %cst_11 = arith.constant dense<0.000000e+00> : vector<256x128xf32>
    %16 = tpu.matmul %0, %15, %cst_11 {dimension_numbers = #tpu.dot_dimension_numbers<[1], [0], [0], [1], [0, 0, 1, 1], [], []>} : vector<256x256xbf16>, vector<256x128xbf16>, vector<256x128xf32> -> vector<256x128xf32>
    %17 = vector.broadcast %1 : vector<256x1xf32> to vector<256x128xf32>
    %18 = arith.mulf %17, %16 : vector<256x128xf32>
    %19 = arith.truncf %18 : vector<256x128xf32> to vector<256x128xbf16>
    %20 = tpu.concatenate %19, %15 in 1 : vector<256x128xbf16>, vector<256x128xbf16> -> vector<256x256xbf16>
    %c0_12 = arith.constant 0 : index
    %c0_13 = arith.constant 0 : index
    %21 = vector.load %arg5[%c0_12, %c0_13] : memref<256x128xbf16, #tpu.memory_space<vmem>>, vector<256x128xbf16>
    %cst_14 = arith.constant dense<0.000000e+00> : vector<256x128xf32>
    %22 = tpu.matmul %20, %21, %cst_14 {dimension_numbers = #tpu.dot_dimension_numbers<[1], [0], [0], [1], [0, 0, 1, 1], [], []>} : vector<256x256xbf16>, vector<256x128xbf16>, vector<256x128xf32> -> vector<256x128xf32>
    %c0_15 = arith.constant 0 : index
    %c0_16 = arith.constant 0 : index
    %23 = vector.load %arg6[%c0_15, %c0_16] : memref<1x128xf32, #tpu.memory_space<vmem>>, vector<1x128xf32>
    %24 = vector.broadcast %23 : vector<1x128xf32> to vector<256x128xf32>
    %25 = arith.addf %22, %24 : vector<256x128xf32>
    %cst_17 = arith.constant 0.000000e+00 : f32
    %26 = vector.broadcast %cst_17 : f32 to vector<256x128xf32>
    %27 = arith.maximumf %25, %26 : vector<256x128xf32>
    %28 = arith.truncf %27 : vector<256x128xf32> to vector<256x128xbf16>
    %cst_18 = arith.constant dense<0.000000e+00> : vector<256x128xf32>
    %29 = tpu.matmul %0, %28, %cst_18 {dimension_numbers = #tpu.dot_dimension_numbers<[1], [0], [0], [1], [0, 0, 1, 1], [], []>} : vector<256x256xbf16>, vector<256x128xbf16>, vector<256x128xf32> -> vector<256x128xf32>
    %30 = vector.broadcast %1 : vector<256x1xf32> to vector<256x128xf32>
    %31 = arith.mulf %30, %29 : vector<256x128xf32>
    %32 = arith.truncf %31 : vector<256x128xf32> to vector<256x128xbf16>
    %33 = tpu.concatenate %32, %28 in 1 : vector<256x128xbf16>, vector<256x128xbf16> -> vector<256x256xbf16>
    %c0_19 = arith.constant 0 : index
    %c0_20 = arith.constant 0 : index
    %34 = vector.load %arg7[%c0_19, %c0_20] : memref<256x128xbf16, #tpu.memory_space<vmem>>, vector<256x128xbf16>
    %cst_21 = arith.constant dense<0.000000e+00> : vector<256x128xf32>
    %35 = tpu.matmul %33, %34, %cst_21 {dimension_numbers = #tpu.dot_dimension_numbers<[1], [0], [0], [1], [0, 0, 1, 1], [], []>} : vector<256x256xbf16>, vector<256x128xbf16>, vector<256x128xf32> -> vector<256x128xf32>
    %c0_22 = arith.constant 0 : index
    %c0_23 = arith.constant 0 : index
    %36 = vector.load %arg8[%c0_22, %c0_23] : memref<1x128xf32, #tpu.memory_space<vmem>>, vector<1x128xf32>
    %37 = vector.broadcast %36 : vector<1x128xf32> to vector<256x128xf32>
    %38 = arith.addf %35, %37 : vector<256x128xf32>
    %cst_24 = arith.constant 0.000000e+00 : f32
    %39 = vector.broadcast %cst_24 : f32 to vector<256x128xf32>
    %40 = arith.maximumf %38, %39 : vector<256x128xf32>
    %41 = arith.truncf %40 : vector<256x128xf32> to vector<256x128xbf16>
    %42 = tpu.concatenate %15, %28, %41 in 1 : vector<256x128xbf16>, vector<256x128xbf16>, vector<256x128xbf16> -> vector<256x384xbf16>
    %c0_25 = arith.constant 0 : index
    %c0_26 = arith.constant 0 : index
    %43 = vector.load %arg9[%c0_25, %c0_26] : memref<384x128xbf16, #tpu.memory_space<vmem>>, vector<384x128xbf16>
    %cst_27 = arith.constant dense<0.000000e+00> : vector<256x128xf32>
    %44 = tpu.matmul %42, %43, %cst_27 {dimension_numbers = #tpu.dot_dimension_numbers<[1], [0], [0], [1], [0, 0, 1, 1], [], []>} : vector<256x384xbf16>, vector<384x128xbf16>, vector<256x128xf32> -> vector<256x128xf32>
    %c0_28 = arith.constant 0 : index
    %c0_29 = arith.constant 0 : index
    %45 = vector.load %arg10[%c0_28, %c0_29] : memref<1x128xf32, #tpu.memory_space<vmem>>, vector<1x128xf32>
    %46 = vector.broadcast %45 : vector<1x128xf32> to vector<256x128xf32>
    %47 = arith.addf %44, %46 : vector<256x128xf32>
    %cst_30 = arith.constant dense<0xFF800000> : vector<256xf32>
    %48 = vector.multi_reduction <maximumf>, %47, %cst_30 [1] : vector<256x128xf32> to vector<256xf32>
    %49 = vector.shape_cast %48 : vector<256xf32> to vector<256x1xf32>
    %50 = vector.broadcast %49 : vector<256x1xf32> to vector<256x128xf32>
    %51 = arith.subf %47, %50 : vector<256x128xf32>
    %52 = math.exp %51 : vector<256x128xf32>
    %cst_31 = arith.constant dense<0.000000e+00> : vector<256xf32>
    %53 = vector.multi_reduction <add>, %52, %cst_31 [1] : vector<256x128xf32> to vector<256xf32>
    %54 = vector.shape_cast %53 : vector<256xf32> to vector<256x1xf32>
    %55 = math.log %54 : vector<256x1xf32>
    %56 = vector.broadcast %55 : vector<256x1xf32> to vector<256x128xf32>
    %57 = arith.subf %51, %56 : vector<256x128xf32>
    %c0_32 = arith.constant 0 : index
    %c0_33 = arith.constant 0 : index
    %58 = vector.load %arg11[%c0_32, %c0_33] : memref<256x128xf32, #tpu.memory_space<vmem>>, vector<256x128xf32>
    tpu.vector_store %arg11[%c0_32, %c0_33], %57 {strides = array<i32>} : memref<256x128xf32, #tpu.memory_space<vmem>>, vector<256x128xf32>,
    return
  }
}

</mosaic_0001>

<bundles_post_ra>
// kernel: tpu_custom_call.1
= control target key start
LH: loop header
LB: loop body
LE: loop exit
PB: predicated region body
PF: predicated region fallthrough
CT: control target
= control target key end

     0   :  { %16 = vsyncpa [#allocation3], 0  ;;  %s6515_s0 = inlined_call_operand.vmem [shape: bf16[256,256], index: 0, kind: input, shape index: {}]   ;;  %s6516_s1 = inlined_call_operand.vmem [shape: f32[256,1], index: 1, kind: input, shape index: {}]   ;;  %s6517_s2 = inlined_call_operand.hbm [shape: bf16[256,128], index: 2, kind: input, shape index: {}]   ;;  %s6518_s3 = inlined_call_operand.hbm [shape: bf16[256,128], index: 3, kind: input, shape index: {}]   ;;  %s6519_s4 = inlined_call_operand.vmem [shape: f32[1,128], index: 4, kind: input, shape index: {}]   ;;  %s6520_s5 = inlined_call_operand.hbm [shape: bf16[256,128], index: 5, kind: input, shape index: {}]   ;;  %s6521_s6 = inlined_call_operand.vmem [shape: f32[1,128], index: 6, kind: input, shape index: {}]   ;;  %s6522_s7 = inlined_call_operand.hbm [shape: bf16[256,128], index: 7, kind: input, shape index: {}]   ;;  %s6523_s8 = inlined_call_operand.vmem [shape: f32[1,128], index: 8, kind: input, shape index: {}]   ;;  %s6524_s9 = inlined_call_operand.hbm [shape: bf16[384,128], index: 9, kind: input, shape index: {}]   ;;  %s6525_s10 = inlined_call_operand.vmem [shape: f32[1,128], index: 10, kind: input, shape index: {}]   ;;  %s6526_s11 = inlined_call_operand.hbm [shape: f32[256,128], index: 11, kind: output, shape index: {}]  }
   0x1   :  { %17 = vsyncpa [#allocation6], 0 }
   0x2   :  { %18 = vsyncpa [#allocation9], 0 }
   0x3   :  { %19 = vsyncpa [#allocation4], 0  ;;  %s41_s19 = sshll.u32 %s6518_s3, 4  ;;  %s4823_s20 = smov [#allocation5]   ;;  %s42_s19 = int_to_ptr.hbm [resolvable:$true] %s41_s19 }
   0x4   :  { %s43_s21 = sshll.u32 %s4823_s20, 4  ;;  %s71_s24 = sshll.u32 %s6522_s7, 4  ;;  %s44_s21 = int_to_ptr.vmem [resolvable:$true] %s43_s21  ;;  %s72_s24 = int_to_ptr.hbm [resolvable:$true] %s71_s24 }
   0x5   :  { %s4824_s25 = smov 64   ;;  %s4825_s26 = smov 4  }
   0x6   :  { %49 = dma.hbm_to_vmem [thread:$0]  %s42_s19, 2048, %s44_s21, [#allocation6], %s4824_s25, %s4824_s25, %s4825_s26  }
   0x7   :  { %s4826_s27 = smov [#allocation8]   ;;  %s28_s12 = sshll.u32 %s6517_s2, 4  ;;  %s29_s12 = int_to_ptr.hbm [resolvable:$true] %s28_s12 }
   0x8   :  { %s73_s28 = sshll.u32 %s4826_s27, 4  ;;  %s56_s14 = sshll.u32 %s6520_s5, 4  ;;  %s74_s28 = int_to_ptr.vmem [resolvable:$true] %s73_s28  ;;  %s57_s14 = int_to_ptr.hbm [resolvable:$true] %s56_s14 }
   0x9   :  { %79 = dma.hbm_to_vmem [thread:$0]  %s72_s24, 2048, %s74_s28, [#allocation9], %s4824_s25, %s4824_s25, %s4825_s26  }
   0xa   :  { %s4827_s15 = smov [#allocation2]   ;;  %s4828_s7 = smov [#allocation7]  }
   0xb   :  { %s30_s16 = sshll.u32 %s4827_s15, 4  ;;  %s58_s17 = sshll.u32 %s4828_s7, 4  ;;  %s31_s16 = int_to_ptr.vmem [resolvable:$true] %s30_s16  ;;  %s59_s17 = int_to_ptr.vmem [resolvable:$true] %s58_s17 }
   0xc   :  { %36 = dma.hbm_to_vmem [thread:$0]  %s29_s12, 2048, %s31_s16, [#allocation3], %s4824_s25, %s4824_s25, %s4825_s26  }
   0xd   :  { %s86_s20 = sshll.u32 %s6524_s9, 4  ;;  %s4829_s2 = smov [#allocation10]   ;;  %s87_s20 = int_to_ptr.hbm [resolvable:$true] %s86_s20 }
   0xe   :  { %64 = dma.hbm_to_vmem [thread:$0]  %s57_s14, 2048, %s59_s17, [#allocation6], %s4824_s25, %s4824_s25, %s4825_s26  }
   0xf   :  { %s88_s21 = sshll.u32 %s4829_s2, 4  ;;  %s89_s21 = int_to_ptr.vmem [resolvable:$true] %s88_s21 }
  0x10   :  { %94 = dma.hbm_to_vmem [thread:$0]  %s87_s20, 3072, %s89_s21, [#allocation9], %s4824_s25, %s4824_s25, %s4825_s26  }
  0x11   :  { %4815 = dma.done.wait [#allocation3], 2048  }
  0x12   :  { %4816 = vsyncadd [#allocation3], 4294965248 }
  0x13   :  { %4817 = dma.done.wait [#allocation6], 4096  }
  0x14   :  { %4818 = vsyncadd [#allocation6], 4294963200 }
  0x15   :  { %4819 = dma.done.wait [#allocation9], 5120  }
  0x16   :  { %4820 = vsyncadd [#allocation9], 4294962176  ;;  %v4830_v0 = vmov 0   ;;  %v4408_v1 = vld [vmem:[#allocation2 + $0x38] sm:$0xff]  ;;  %v4407_v3 = vld [vmem:[#allocation2 + $0x30] sm:$0xff]  ;;  %s3874_s25 = sshll.u32 %s6526_s11, 4  ;;  %s3875_s25 = int_to_ptr.hbm [resolvable:$true] %s3874_s25 }
  0x17   :  { %4524 = vset.pattern.permute.xlu0 %v4830_v0  ;;  %4525 = vset.pattern.permute.xlu1 %v4830_v0  ;;  %v4909_v2 = vld [vmem:[#allocation2 + $0x78] sm:$0xff]  ;;  %v4912_v4 = vld [vmem:[#allocation2 + $0x70] sm:$0xff]  ;;  %v173_v5 = vld [vmem:[%s6516_s1 + $0xc0] sm:$0xff]  ;;  %s4832_s26 = smov 128   ;;  %s4833_s27 = smov 8  }
  0x18   :  { %4526 = vset.pattern.permute.xlu2 %v4830_v0  ;;  %469 = vmatpush.bf16.msra.mxu0 %v4408_v1  ;;  %v4406_v6 = vld [vmem:[#allocation2 + $0x28] sm:$0xff]  ;;  %v175_v8 = vld [vmem:[%s6516_s1 + $0xd0] sm:$0xff]  ;;  %v4405_v9 = vld [vmem:[#allocation2 + $0x20] sm:$0xff] }
  0x19   :  { %4489 = vmatpush.bf16.msra.mxu3 %v4408_v1  ;;  %558 = vmatpush.bf16.msra.mxu1 %v4909_v2  ;;  %v4918_v7 = vld [vmem:[#allocation2 + $0x68] sm:$0xff]  ;;  %v4924_v10 = vld [vmem:[#allocation2 + $0x60] sm:$0xff]  ;;  %v4404_v12 = vld [vmem:[#allocation2 + $0x18] sm:$0xff] }
  0x1a   :  { %769 = vperm.xlu0 %4524, %v173_v5   ;;  %779 = vperm.xlu1 %4525, %v175_v8   ;;  %v174_v11 = vld [vmem:[%s6516_s1 + $0xc8] sm:$0xff]  ;;  %v4930_v13 = vld [vmem:[#allocation2 + $0x58] sm:$0xff]  ;;  %v4932_v14 = vld [vmem:[#allocation2 + $0x10] sm:$0xff] }
  0x1b   :  { %v176_v15 = vld [vmem:[%s6516_s1 + $0xd8] sm:$0xff]  ;;  %v177_v16 = vld [vmem:[%s6516_s1 + $0xe0] sm:$0xff]  ;;  %v4941_v17 = vld [vmem:[#allocation2 + $0x50] sm:$0xff] }
  0x1c   :  { %470 = vmatpush.bf16.msra.mxu0 %v4407_v3  ;;  %v179_v18 = vld [vmem:[%s6516_s1 + $0xf0] sm:$0xff]  ;;  %789 = vperm.xlu2 %4526, %v177_v16   ;;  %v4948_v19 = vld [vmem:[#allocation2 + $0x8] sm:$0xff]  ;;  %v180_v21 = vld [vmem:[%s6516_s1 + $0xf8] sm:$0xff] }
  0x1d   :  { %4490 = vmatpush.bf16.msra.mxu3 %v4407_v3  ;;  %559 = vmatpush.bf16.msra.mxu1 %v4912_v4  ;;  %v4410_v20 = vld [vmem:[#allocation2 + $0x48] sm:$0xff]  ;;  %v4954_v22 = vld [vmem:[#allocation2] sm:$0xff]  ;;  %v151_v35 = vld [vmem:[%s6516_s1 + $0x10] sm:$0xff] }
  0x1e   :  { %v3891_v23 = vld [vmem:[%s6515_s0] sm:$0xf]  ;;  %v4370_v24 = vld [vmem:[%s6515_s0 + $0x4] sm:$0xf0]  ;;  %v4369_v28 = vld [vmem:[%s6515_s0 + $0x4] sm:$0xf] }
  0x1f   :  { %v3987_v25 = vld [vmem:[%s6515_s0 + $0xc0] sm:$0xf]  ;;  %v4394_v26 = vld [vmem:[%s6515_s0 + $0xc4] sm:$0xf0]  ;;  %v3893_v29 = vld [vmem:[%s6515_s0 + $0x8] sm:$0xf0]  ;;  %v4981_v31 = vor.u32 %v4370_v24, %v3891_v23 }
  0x20   :  { %471 = vmatpush.bf16.msra.mxu0 %v4406_v6  ;;  %v4970_v27 = vld [vmem:[#allocation2 + $0x40] sm:$0xff]  ;;  %v150_v30 = vld [vmem:[%s6516_s1 + $0x8] sm:$0xff]  ;;  %v4983_v32 = vor.u32 %v4394_v26, %v3987_v25  ;;  %v4987_v33 = vor.u32 %v4369_v28, %v3893_v29  ;;  %v3899_v38 = vld [vmem:[%s6515_s0 + $0x10] sm:$0xf] }
  0x21   :  { %4491 = vmatpush.bf16.msra.mxu3 %v4406_v6  ;;  %560 = vmatpush.bf16.msra.mxu1 %v4918_v7  ;;  %v178_v34 = vld [vmem:[%s6516_s1 + $0xe8] sm:$0xff]  ;;  %v153_v36 = vld [vmem:[%s6516_s1 + $0x20] sm:$0xff]  ;;  %v4372_v39 = vld [vmem:[%s6515_s0 + $0x14] sm:$0xf0] }
  0x22   :  { %774 = vperm.xlu0 %4524, %v174_v11   ;;  %784 = vperm.xlu1 %4525, %v176_v15   ;;  %v149_v37 = vld [vmem:[%s6516_s1] sm:$0xff]  ;;  %v3995_v40 = vld [vmem:[%s6515_s0 + $0xd0] sm:$0xf]  ;;  %v4396_v41 = vld [vmem:[%s6515_s0 + $0xd4] sm:$0xf0]  ;;  %v5030_v45 = vor.u32 %v4372_v39, %v3899_v38 }
  0x23   :  { %v4371_v42 = vld [vmem:[%s6515_s0 + $0x14] sm:$0xf]  ;;  %v3901_v43 = vld [vmem:[%s6515_s0 + $0x18] sm:$0xf0]  ;;  %v5032_v46 = vor.u32 %v4396_v41, %v3995_v40  ;;  %v154_v48 = vld [vmem:[%s6516_s1 + $0x28] sm:$0xff] }
  0x24   :  { %472 = vmatpush.bf16.msra.mxu0 %v4405_v9  ;;  %794 = vperm.xlu2 %4526, %v178_v34   ;;  %v156_v44 = vld [vmem:[%s6516_s1 + $0x38] sm:$0xff]  ;;  %v5034_v47 = vor.u32 %v4371_v42, %v3901_v43  ;;  %v159_v50 = vld [vmem:[%s6516_s1 + $0x50] sm:$0xff]  ;;  %v157_v51 = vld [vmem:[%s6516_s1 + $0x40] sm:$0xff] }
  0x25   :  { %4492 = vmatpush.bf16.msra.mxu3 %v4405_v9  ;;  %561 = vmatpush.bf16.msra.mxu1 %v4924_v10  ;;  %v152_v49 = vld [vmem:[%s6516_s1 + $0x18] sm:$0xff]  ;;  %v3907_v52 = vld [vmem:[%s6515_s0 + $0x20] sm:$0xf]  ;;  %v4374_v53 = vld [vmem:[%s6515_s0 + $0x24] sm:$0xf0] }
  0x26   :  { %v4003_v54 = vld [vmem:[%s6515_s0 + $0xe0] sm:$0xf]  ;;  %v4398_v55 = vld [vmem:[%s6515_s0 + $0xe4] sm:$0xf0]  ;;  %v4373_v56 = vld [vmem:[%s6515_s0 + $0x24] sm:$0xf]  ;;  %v5075_v59 = vor.u32 %v4374_v53, %v3907_v52 }
  0x27   :  { %v3909_v57 = vld [vmem:[%s6515_s0 + $0x28] sm:$0xf0]  ;;  %v5077_v60 = vor.u32 %v4398_v55, %v4003_v54  ;;  %v160_v62 = vld [vmem:[%s6516_s1 + $0x58] sm:$0xff]  ;;  %v165_v63 = vld [vmem:[%s6516_s1 + $0x80] sm:$0xff] }
  0x28   :  { %473 = vmatpush.bf16.msra.mxu0 %v4404_v12  ;;  %v162_v58 = vld [vmem:[%s6516_s1 + $0x68] sm:$0xff]  ;;  %v5079_v61 = vor.u32 %v4373_v56, %v3909_v57  ;;  %v163_v0 = vld [vmem:[%s6516_s1 + $0x70] sm:$0xff]  ;;  %v3917_v6 = vld [vmem:[%s6515_s0 + $0x38] sm:$0xf0] }
  0x29   :  { %4493 = vmatpush.bf16.msra.mxu3 %v4404_v12  ;;  %562 = vmatpush.bf16.msra.mxu1 %v4930_v13  ;;  %6629 = vst [vmem:[#allocation16_spill] sm:$0xff] %v5077_v60  ;;  %v3915_v1 = vld [vmem:[%s6515_s0 + $0x30] sm:$0xf]  ;;  %v4375_v5 = vld [vmem:[%s6515_s0 + $0x34] sm:$0xf]  ;;  %v166_v11 = vld [vmem:[%s6516_s1 + $0x88] sm:$0xff] }
  0x2a   :  { %799 = vperm.xlu0 %4524, %v179_v18   ;;  %804 = vperm.xlu1 %4525, %v180_v21   ;;  %v4011_v3 = vld [vmem:[%s6515_s0 + $0xf0] sm:$0xf]  ;;  %v169_v15 = vld [vmem:[%s6516_s1 + $0xa0] sm:$0xff]  ;;  %v3925_v23 = vld [vmem:[%s6515_s0 + $0x48] sm:$0xf0] }
  0x2b   :  { %v155_v12 = vld [vmem:[%s6516_s1 + $0x30] sm:$0xff]  ;;  %v3923_v16 = vld [vmem:[%s6515_s0 + $0x40] sm:$0xf]  ;;  %v4393_v18 = vld [vmem:[%s6515_s0 + $0xc4] sm:$0xf] }
  0x2c   :  { %474 = vmatpush.bf16.msra.mxu0 %v4932_v14  ;;  %649 = vperm.xlu2 %4526, %v149_v37   ;;  %v4377_v21 = vld [vmem:[%s6515_s0 + $0x44] sm:$0xf]  ;;  %v172_v28 = vld [vmem:[%s6516_s1 + $0xb8] sm:$0xff]  ;;  %v158_v29 = vld [vmem:[%s6516_s1 + $0x48] sm:$0xff] }
  0x2d   :  { %4494 = vmatpush.bf16.msra.mxu3 %v4932_v14  ;;  %563 = vmatpush.bf16.msra.mxu1 %v4941_v17  ;;  %v5157_v26 = vor.u32 %v4377_v21, %v3925_v23  ;;  %v4380_v34 = vld [vmem:[%s6515_s0 + $0x54] sm:$0xf0]  ;;  %v4379_v37 = vld [vmem:[%s6515_s0 + $0x54] sm:$0xf]  ;;  %v3933_v38 = vld [vmem:[%s6515_s0 + $0x58] sm:$0xf0] }
  0x2e   :  { %v5190_v41 = vor.u32 %v4379_v37, %v3933_v38  ;;  %v4424_v42 = vld [vmem:[#allocation5 + $0x38] sm:$0xff]  ;;  %v161_v43 = vld [vmem:[%s6516_s1 + $0x60] sm:$0xff]  ;;  %v4005_v53 = vld [vmem:[%s6515_s0 + $0xe8] sm:$0xf0] }
  0x2f   :  { %1099 = vmatpush.bf16.msra.mxu2 %v4424_v42  ;;  %v4397_v52 = vld [vmem:[%s6515_s0 + $0xe4] sm:$0xf]  ;;  %v3941_v55 = vld [vmem:[%s6515_s0 + $0x68] sm:$0xf0] }
  0x30   :  { %475 = vmatpush.bf16.msra.mxu0 %v4948_v19  ;;  %v4381_v54 = vld [vmem:[%s6515_s0 + $0x64] sm:$0xf]  ;;  %v5221_v57 = vor.u32 %v4397_v52, %v4005_v53 }
  0x31   :  { %4495 = vmatpush.bf16.msra.mxu3 %v4948_v19  ;;  %564 = vmatpush.bf16.msra.mxu1 %v4410_v20 }
  0x32   :  { %654 = vperm.xlu0 %4524, %v150_v30   ;;  %659 = vperm.xlu1 %4525, %v151_v35   ;;  %v3931_v30 = vld [vmem:[%s6515_s0 + $0x50] sm:$0xf]  ;;  %v4395_v35 = vld [vmem:[%s6515_s0 + $0xd4] sm:$0xf]  ;;  %6633 = vst [vmem:[#allocation20_spill] sm:$0xff] %v5221_v57 }
  0x33   :  { %v5186_v39 = vor.u32 %v4380_v34, %v3931_v30  ;;  %v4386_v30 = vld [vmem:[%s6515_s0 + $0x84] sm:$0xf0]  ;;  %v4385_v34 = vld [vmem:[%s6515_s0 + $0x84] sm:$0xf] }
  0x34   :  { %476 = vmatpush.bf16.msra.mxu0 %v4954_v22  ;;  %664 = vperm.xlu2 %4526, %v152_v49   ;;  %v164_v49 = vld [vmem:[%s6516_s1 + $0x78] sm:$0xff] }
  0x35   :  { %4496 = vmatpush.bf16.msra.mxu3 %v4954_v22  ;;  %565 = vmatpush.bf16.msra.mxu1 %v4970_v27 }
  0x37   :  { %477 = vmatmul.bf16.vlgmr.msra.gmra.mxu0 %v4981_v31 }
  0x38   :  { %537 = vmatmul.bf16.vlgmr.msra.gmra.mxu3 %v4983_v32  ;;  %566 = vmatmul.bf16.vlgmr.msra.gmra.mxu1 %v4987_v33 }
  0x39   :  { %4497 = vmatpush.bf16.msrb.mxu3 %v4909_v2  ;;  %v4376_v2 = vld [vmem:[%s6515_s0 + $0x34] sm:$0xf0] }
  0x3a   :  { %669 = vperm.xlu0 %4524, %v153_v36   ;;  %674 = vperm.xlu1 %4525, %v154_v48   ;;  %v5114_v8 = vor.u32 %v4376_v2, %v3915_v1  ;;  %v3997_v36 = vld [vmem:[%s6515_s0 + $0xd8] sm:$0xf0]  ;;  %v4422_v48 = vld [vmem:[#allocation5 + $0x28] sm:$0xff]  ;;  %v4419_v1 = vld [vmem:[#allocation5 + $0x10] sm:$0xff] }
  0x3b   :  { %v5188_v40 = vor.u32 %v4395_v35, %v3997_v36  ;;  %v3957_v35 = vld [vmem:[%s6515_s0 + $0x88] sm:$0xf0] }
  0x3c   :  { %679 = vperm.xlu2 %4526, %v155_v12   ;;  %v4383_v12 = vld [vmem:[%s6515_s0 + $0x74] sm:$0xf] }
  0x3d   :  { %4498 = vmatpush.bf16.msrb.mxu3 %v4912_v4  ;;  %v4400_v4 = vld [vmem:[%s6515_s0 + $0xf4] sm:$0xf0]  ;;  %6632 = vst [vmem:[#allocation19_spill] sm:$0xff] %v5188_v40 }
  0x3e   :  { %v5116_v9 = vor.u32 %v4400_v4, %v4011_v3  ;;  %v3947_v3 = vld [vmem:[%s6515_s0 + $0x70] sm:$0xf]  ;;  %v4384_v4 = vld [vmem:[%s6515_s0 + $0x74] sm:$0xf0] }
  0x40   :  { %6630 = vst [vmem:[#allocation17_spill] sm:$0xff] %v5116_v9 }
  0x41   :  { %4499 = vmatpush.bf16.msrb.mxu3 %v4918_v7  ;;  %v168_v7 = vld [vmem:[%s6516_s1 + $0x98] sm:$0xff] }
  0x42   :  { %684 = vperm.xlu0 %4524, %v156_v44   ;;  %689 = vperm.xlu1 %4525, %v157_v51   ;;  %v4423_v44 = vld [vmem:[#allocation5 + $0x30] sm:$0xff]  ;;  %v4382_v51 = vld [vmem:[%s6515_s0 + $0x64] sm:$0xf0] }
  0x43   :  { %1100 = vmatpush.bf16.msra.mxu2 %v4423_v44 }
  0x44   :  { %694 = vperm.xlu2 %4526, %v158_v29   ;;  %v3955_v29 = vld [vmem:[%s6515_s0 + $0x80] sm:$0xf] }
  0x45   :  { %4500 = vmatpush.bf16.msrb.mxu3 %v4924_v10  ;;  %v5118_v10 = vor.u32 %v4375_v5, %v3917_v6  ;;  %v4418_v5 = vld [vmem:[#allocation5 + $0x8] sm:$0xff]  ;;  %v4399_v6 = vld [vmem:[%s6515_s0 + $0xf4] sm:$0xf]  ;;  %v5287_v38 = vor.u32 %v4386_v30, %v3955_v29 }
  0x47   :  { %482 = vmatmul.bf16.gmra.mxu0 %v5030_v45  ;;  %1101 = vmatpush.bf16.msra.mxu2 %v4422_v48 }
  0x48   :  { %542 = vmatmul.bf16.gmra.mxu3 %v5032_v46  ;;  %571 = vmatmul.bf16.gmra.mxu1 %v5034_v47 }
  0x49   :  { %4501 = vmatpush.bf16.msrb.mxu3 %v4930_v13  ;;  %v171_v13 = vld [vmem:[%s6516_s1 + $0xb0] sm:$0xff] }
  0x4a   :  { %699 = vperm.xlu0 %4524, %v159_v50   ;;  %704 = vperm.xlu1 %4525, %v160_v62   ;;  %v3939_v50 = vld [vmem:[%s6515_s0 + $0x60] sm:$0xf]  ;;  %v5223_v62 = vor.u32 %v4381_v54, %v3941_v55 }
  0x4b   :  { %v5219_v56 = vor.u32 %v4382_v51, %v3939_v50 }
  0x4c   :  { %709 = vperm.xlu2 %4526, %v161_v43   ;;  %v5289_v43 = vor.u32 %v4385_v34, %v3957_v35 }
  0x4d   :  { %4502 = vmatpush.bf16.msrb.mxu3 %v4941_v17  ;;  %v4378_v17 = vld [vmem:[%s6515_s0 + $0x44] sm:$0xf0] }
  0x4e   :  { %v5153_v24 = vor.u32 %v4378_v17, %v3923_v16  ;;  %6643 = vst [vmem:[#allocation30_spill] sm:$0xff] %v5289_v43 }
  0x51   :  { %4503 = vmatpush.bf16.msrb.mxu3 %v4410_v20  ;;  %v3989_v20 = vld [vmem:[%s6515_s0 + $0xc8] sm:$0xf0] }
  0x52   :  { %714 = vperm.xlu0 %4524, %v162_v58   ;;  %719 = vperm.xlu1 %4525, %v163_v0   ;;  %v5155_v25 = vor.u32 %v4393_v18, %v3989_v20  ;;  %v4421_v58 = vld [vmem:[#allocation5 + $0x20] sm:$0xff]  ;;  %v167_v0 = vld [vmem:[%s6516_s1 + $0x90] sm:$0xff] }
  0x53   :  { %1102 = vmatpush.bf16.msra.mxu2 %v4421_v58  ;;  %v4417_v18 = vld [vmem:[#allocation5] sm:$0xff] }
  0x54   :  { %6631 = vst [vmem:[#allocation18_spill] sm:$0xff] %v5155_v25  ;;  %724 = vperm.xlu2 %4526, %v164_v49  }
  0x55   :  { %4504 = vmatpush.bf16.msrb.mxu3 %v4970_v27 }
  0x57   :  { %487 = vmatmul.bf16.gmra.mxu0 %v5075_v59 }
  0x58   :  { %547 = vmatmul.bf16.gmra.mxu3 %v5077_v60  ;;  %576 = vmatmul.bf16.gmra.mxu1 %v5079_v61 }
  0x59   :  { %4505 = vmatpush.bf16.msra.mxu3 %v4424_v42 }
  0x5a   :  { %729 = vperm.xlu0 %4524, %v165_v63   ;;  %734 = vperm.xlu1 %4525, %v166_v11   ;;  %v4420_v63 = vld [vmem:[#allocation5 + $0x18] sm:$0xff]  ;;  %v170_v11 = vld [vmem:[%s6516_s1 + $0xa8] sm:$0xff] }
  0x5b   :  { %1103 = vmatpush.bf16.msra.mxu2 %v4420_v63 }
  0x5c   :  { %739 = vperm.xlu2 %4526, %v167_v0  }
  0x5d   :  { %4506 = vmatpush.bf16.msra.mxu3 %v4423_v44 }
  0x5f   :  { %1104 = vmatpush.bf16.msra.mxu2 %v4419_v1 }
  0x61   :  { %4507 = vmatpush.bf16.msra.mxu3 %v4422_v48 }
  0x62   :  { %744 = vperm.xlu0 %4524, %v168_v7   ;;  %749 = vperm.xlu1 %4525, %v169_v15   ;;  %v4013_v7 = vld [vmem:[%s6515_s0 + $0xf8] sm:$0xf0]  ;;  %v5254_v15 = vor.u32 %v4384_v4, %v3947_v3  ;;  %v4388_v3 = vld [vmem:[%s6515_s0 + $0x94] sm:$0xf0]  ;;  %v4387_v4 = vld [vmem:[%s6515_s0 + $0x94] sm:$0xf] }
  0x63   :  { %1105 = vmatpush.bf16.msra.mxu2 %v4418_v5  ;;  %v5256_v16 = vor.u32 %v4399_v6, %v4013_v7 }
  0x64   :  { %754 = vperm.xlu2 %4526, %v170_v11  }
  0x65   :  { %4508 = vmatpush.bf16.msra.mxu3 %v4421_v58  ;;  %6635 = vst [vmem:[#allocation22_spill] sm:$0xff] %v5256_v16 }
  0x67   :  { %492 = vmatmul.bf16.gmra.mxu0 %v5114_v8  ;;  %1106 = vmatpush.bf16.msra.mxu2 %v4417_v18 }
  0x68   :  { %552 = vmatmul.bf16.gmra.mxu3 %v5116_v9  ;;  %581 = vmatmul.bf16.gmra.mxu1 %v5118_v10 }
  0x69   :  { %4509 = vmatpush.bf16.msra.mxu3 %v4420_v63 }
  0x6a   :  { %759 = vperm.xlu0 %4524, %v171_v13   ;;  %764 = vperm.xlu1 %4525, %v172_v28   ;;  %v3949_v13 = vld [vmem:[%s6515_s0 + $0x78] sm:$0xf0] }
  0x6b   :  { %v5260_v20 = vor.u32 %v4383_v12, %v3949_v13 }
  0x6d   :  { %4510 = vmatpush.bf16.msra.mxu3 %v4419_v1  ;;  %6637 = vst [vmem:[#allocation24_spill] sm:$0xff] %v5260_v20  ;;  %v3963_v1 = vld [vmem:[%s6515_s0 + $0x90] sm:$0xf] }
  0x6e   :  { %v5317_v12 = vor.u32 %v4388_v3, %v3963_v1  ;;  %v3971_v1 = vld [vmem:[%s6515_s0 + $0xa0] sm:$0xf]  ;;  %v4390_v3 = vld [vmem:[%s6515_s0 + $0xa4] sm:$0xf0] }
  0x71   :  { %4511 = vmatpush.bf16.msra.mxu3 %v4418_v5  ;;  %v3965_v5 = vld [vmem:[%s6515_s0 + $0x98] sm:$0xf0] }
  0x75   :  { %4512 = vmatpush.bf16.msra.mxu3 %v4417_v18  ;;  %v5319_v18 = vor.u32 %v4387_v4, %v3965_v5  ;;  %v4389_v4 = vld [vmem:[%s6515_s0 + $0xa4] sm:$0xf]  ;;  %v3973_v5 = vld [vmem:[%s6515_s0 + $0xa8] sm:$0xf0] }
  0x76   :  { %v5258_v17 = vpop.permute.xlu2 %789 }
  0x77   :  { %497 = vmatmul.bf16.gmra.mxu0 %v5153_v24  ;;  %6636 = vst [vmem:[#allocation23_spill] sm:$0xff] %v5258_v17 }
  0x78   :  { %626 = vmatmul.bf16.vlgmr.msrb.gmra.mxu3 %v5155_v25  ;;  %586 = vmatmul.bf16.gmra.mxu1 %v5157_v26  ;;  %6647 = vst [vmem:[#allocation34_spill] sm:$0xff] %v5319_v18 }
  0x7e   :  { %v5269_v28 = vpop.permute.xlu2 %794 }
  0x7f   :  { %6640 = vst [vmem:[#allocation27_spill] sm:$0xff] %v5269_v28 }
  0x86   :  { %v5292_v49 = vpop.permute.xlu2 %649 }
  0x87   :  { %502 = vmatmul.bf16.gmra.mxu0 %v5186_v39  ;;  %6644 = vst [vmem:[#allocation31_spill] sm:$0xff] %v5292_v49 }
  0x88   :  { %631 = vmatmul.bf16.gmra.mxu3 %v5188_v40  ;;  %591 = vmatmul.bf16.gmra.mxu1 %v5190_v41 }
  0x8c   :  { %v5231_v2 = vpop.permute.xlu0 %769  ;;  %v5265_v21 = vpop.permute.xlu1 %779 }
  0x8d   :  { %6634 = vst [vmem:[#allocation21_spill] sm:$0xff] %v5231_v2 }
  0x8e   :  { %6638 = vst [vmem:[#allocation25_spill] sm:$0xff] %v5265_v21 }
  0x94   :  { %v5267_v23 = vpop.permute.xlu0 %774  ;;  %v5283_v36 = vpop.permute.xlu1 %784 }
  0x95   :  { %6639 = vst [vmem:[#allocation26_spill] sm:$0xff] %v5267_v23 }
  0x96   :  { %6641 = vst [vmem:[#allocation28_spill] sm:$0xff] %v5283_v36 }
  0x97   :  { %507 = vmatmul.bf16.gmra.mxu0 %v5219_v56 }
  0x98   :  { %636 = vmatmul.bf16.gmra.mxu3 %v5221_v57  ;;  %596 = vmatmul.bf16.gmra.mxu1 %v5223_v62 }
  0x9c   :  { %v5285_v37 = vpop.permute.xlu0 %799  ;;  %v5298_v53 = vpop.permute.xlu1 %804 }
  0x9d   :  { %6642 = vst [vmem:[#allocation29_spill] sm:$0xff] %v5285_v37 }
  0x9e   :  { %6645 = vst [vmem:[#allocation32_spill] sm:$0xff] %v5298_v53 }
  0xa4   :  { %v5300_v55 = vpop.permute.xlu0 %654 }
  0xa5   :  { %6646 = vst [vmem:[#allocation33_spill] sm:$0xff] %v5300_v55 }
  0xa7   :  { %512 = vmatmul.bf16.gmra.mxu0 %v5254_v15 }
  0xa8   :  { %641 = vmatmul.bf16.gmra.mxu3 %v5256_v16  ;;  %601 = vmatmul.bf16.gmra.mxu1 %v5260_v20 }
  0xb4   :  { %v478_v42 = vpop.f32.mrf.mxu0 }
  0xb5   :  { %v567_v44 = vpop.f32.mrf.mxu1 }
  0xb6   :  { %v568_v48 = vadd.f32 %v567_v44, %v478_v42  ;;  %v5322_v42 = vpop.permute.xlu1 %659 }
  0xb7   :  { %517 = vmatmul.bf16.gmra.mxu0 %v5287_v38  ;;  %6648 = vst [vmem:[#allocation35_spill] sm:$0xff] %v5322_v42 }
  0xb8   :  { %606 = vmatmul.bf16.gmra.mxu1 %v5289_v43  ;;  %v807_v51 = vmul.f32 %v5292_v49, %v568_v48 }
  0xba   :  { %v839_v63 = vpack.c.bf16 %v807_v51, %v807_v51 }
  0xbb   :  { %v5295_v50 = vpop.f32.mrf.mxu3 }
  0xbc   :  { %v480_v52 = vpop.f32.mrf.mxu0  ;;  %v903_v11 = vunpack.c.l.b16 %v839_v63 }
  0xbd   :  { %v569_v54 = vpop.f32.mrf.mxu1 }
  0xbe   :  { %v570_v58 = vadd.f32 %v569_v54, %v480_v52  ;;  %v5328_v54 = vpop.permute.xlu2 %664 }
  0xbf   :  { %6649 = vst [vmem:[#allocation36_spill] sm:$0xff] %v5328_v54 }
  0xc0   :  { %v808_v0 = vmul.f32 %v5300_v55, %v570_v58 }
  0xc2   :  { %v840_v7 = vpack.c.bf16 %v808_v0, %v808_v0 }
  0xc3   :  { %v5315_v6 = vpop.f32.mrf.mxu3 }
  0xc4   :  { %v483_v13 = vpop.f32.mrf.mxu0  ;;  %v904_v29 = vunpack.c.l.b16 %v840_v7 }
  0xc5   :  { %v572_v30 = vpop.f32.mrf.mxu1 }
  0xc6   :  { %v573_v34 = vadd.f32 %v572_v30, %v483_v13  ;;  %v935_v35 = vpack.c.b16 %v904_v29, %v903_v11  ;;  %v5345_v29 = vor.u32 %v4390_v3, %v3971_v1 }
  0xc7   :  { %522 = vmatmul.bf16.gmra.mxu0 %v5317_v12 }
  0xc8   :  { %611 = vmatmul.bf16.gmra.mxu1 %v5319_v18  ;;  %1107 = vmatmul.bf16.vlgmr.msra.gmra.mxu2 %v935_v35  ;;  %v809_v48 = vmul.f32 %v5322_v42, %v573_v34  ;;  %v5347_v34 = vor.u32 %v4389_v4, %v3973_v5  ;;  %v5356_v5 = vpop.permute.xlu1 %674 }
  0xc9   :  { %6652 = vst [vmem:[#allocation39_spill] sm:$0xff] %v5356_v5 }
  0xca   :  { %v841_v63 = vpack.c.bf16 %v809_v48, %v809_v48  ;;  %6650 = vst [vmem:[#allocation37_spill] sm:$0xff] %v5347_v34 }
  0xcb   :  { %v5325_v44 = vpop.f32.mrf.mxu3 }
  0xcc   :  { %v485_v51 = vpop.f32.mrf.mxu0  ;;  %v905_v13 = vunpack.c.l.b16 %v841_v63 }
  0xcd   :  { %v574_v52 = vpop.f32.mrf.mxu1 }
  0xce   :  { %v575_v58 = vadd.f32 %v574_v52, %v485_v51 }
  0xd0   :  { %v810_v0 = vmul.f32 %v5328_v54, %v575_v58  ;;  %v5351_v58 = vpop.permute.xlu0 %669  ;;  %v5389_v18 = vpop.permute.xlu1 %689 }
  0xd1   :  { %6651 = vst [vmem:[#allocation38_spill] sm:$0xff] %v5351_v58 }
  0xd2   :  { %v842_v11 = vpack.c.bf16 %v810_v0, %v810_v0  ;;  %6656 = vst [vmem:[#allocation43_spill] sm:$0xff] %v5389_v18 }
  0xd3   :  { %v5343_v7 = vpop.f32.mrf.mxu3 }
  0xd4   :  { %v488_v30 = vpop.f32.mrf.mxu0  ;;  %v906_v35 = vunpack.c.l.b16 %v842_v11 }
  0xd5   :  { %v577_v48 = vpop.f32.mrf.mxu1 }
  0xd6   :  { %v578_v51 = vadd.f32 %v577_v48, %v488_v30  ;;  %v936_v52 = vpack.c.b16 %v906_v35, %v905_v13  ;;  %v3979_v13 = vld [vmem:[%s6515_s0 + $0xb0] sm:$0xf]  ;;  %v4392_v30 = vld [vmem:[%s6515_s0 + $0xb4] sm:$0xf0]  ;;  %v4391_v35 = vld [vmem:[%s6515_s0 + $0xb4] sm:$0xf] }
  0xd7   :  { %527 = vmatmul.bf16.gmra.mxu0 %v5345_v29 }
  0xd8   :  { %616 = vmatmul.bf16.gmra.mxu1 %v5347_v34  ;;  %1112 = vmatmul.bf16.gmra.mxu2 %v936_v52  ;;  %v811_v16 = vmul.f32 %v5351_v58, %v578_v51  ;;  %v5378_v58 = vpop.permute.xlu2 %679 }
  0xd9   :  { %6654 = vst [vmem:[#allocation41_spill] sm:$0xff] %v5378_v58 }
  0xda   :  { %v843_v3 = vpack.c.bf16 %v811_v16, %v811_v16  ;;  %v3981_v16 = vld [vmem:[%s6515_s0 + $0xb8] sm:$0xf0] }
  0xdb   :  { %v5354_v0 = vpop.f32.mrf.mxu3 }
  0xdc   :  { %v490_v63 = vpop.f32.mrf.mxu0  ;;  %v907_v52 = vunpack.c.l.b16 %v843_v3 }
  0xdd   :  { %v579_v1 = vpop.f32.mrf.mxu1 }
  0xde   :  { %v580_v4 = vadd.f32 %v579_v1, %v490_v63  ;;  %v5373_v63 = vor.u32 %v4392_v30, %v3979_v13 }
  0xe0   :  { %v812_v11 = vmul.f32 %v5356_v5, %v580_v4  ;;  %v5375_v4 = vor.u32 %v4391_v35, %v3981_v16  ;;  %v5384_v16 = vpop.permute.xlu0 %684  ;;  %v5393_v9 = vpop.permute.xlu2 %694 }
  0xe1   :  { %6655 = vst [vmem:[#allocation42_spill] sm:$0xff] %v5384_v16 }
  0xe2   :  { %v844_v51 = vpack.c.bf16 %v812_v11, %v812_v11  ;;  %6653 = vst [vmem:[#allocation40_spill] sm:$0xff] %v5375_v4 }
  0xe3   :  { %v5371_v48 = vpop.f32.mrf.mxu3  ;;  %6657 = vst [vmem:[#allocation44_spill] sm:$0xff] %v5393_v9 }
  0xe4   :  { %v493_v1 = vpop.f32.mrf.mxu0  ;;  %v908_v57 = vunpack.c.l.b16 %v844_v51 }
  0xe5   :  { %v582_v40 = vpop.f32.mrf.mxu1 }
  0xe6   :  { %v583_v25 = vadd.f32 %v582_v40, %v493_v1  ;;  %v937_v5 = vpack.c.b16 %v908_v57, %v907_v52 }
  0xe7   :  { %532 = vmatmul.bf16.gmra.mxu0 %v5373_v63 }
  0xe8   :  { %621 = vmatmul.bf16.gmra.mxu1 %v5375_v4  ;;  %1117 = vmatmul.bf16.gmra.mxu2 %v937_v5  ;;  %v813_v3 = vmul.f32 %v5378_v58, %v583_v25 }
  0xea   :  { %v845_v35 = vpack.c.bf16 %v813_v3, %v813_v3 }
  0xeb   :  { %v5381_v34 = vpop.f32.mrf.mxu3 }
  0xec   :  { %v495_v11 = vpop.f32.mrf.mxu0  ;;  %v909_v52 = vunpack.c.l.b16 %v845_v35 }
  0xed   :  { %v584_v13 = vpop.f32.mrf.mxu1 }
  0xee   :  { %v585_v30 = vadd.f32 %v584_v13, %v495_v11 }
  0xf0   :  { %v814_v40 = vmul.f32 %v5384_v16, %v585_v30 }
  0xf2   :  { %v846_v51 = vpack.c.bf16 %v814_v40, %v814_v40 }
  0xf3   :  { %v5387_v57 = vpop.f32.mrf.mxu3 }
  0xf4   :  { %v498_v1 = vpop.f32.mrf.mxu0  ;;  %v910_v54 = vunpack.c.l.b16 %v846_v51 }
  0xf5   :  { %v587_v4 = vpop.f32.mrf.mxu1 }
  0xf6   :  { %v588_v5 = vadd.f32 %v587_v4, %v498_v1  ;;  %v938_v42 = vpack.c.b16 %v910_v54, %v909_v52 }
  0xf8   :  { %1122 = vmatmul.bf16.gmra.mxu2 %v938_v42  ;;  %v815_v25 = vmul.f32 %v5389_v18, %v588_v5 }
  0xfa   :  { %v847_v30 = vpack.c.bf16 %v815_v25, %v815_v25 }
  0xfb   :  { %v627_v11 = vpop.f32.mrf.mxu3 }
  0xfc   :  { %v500_v3 = vpop.f32.mrf.mxu0  ;;  %v628_v13 = vadd.f32 %v627_v11, %v5295_v50  ;;  %v911_v42 = vunpack.c.l.b16 %v847_v30 }
  0xfd   :  { %v589_v58 = vpop.f32.mrf.mxu1 }
  0xfe   :  { %v590_v16 = vadd.f32 %v589_v58, %v500_v3  ;;  %v831_v40 = vmul.f32 %v5231_v2, %v628_v13 }
 0x100   :  { %v816_v35 = vmul.f32 %v5393_v9, %v590_v16  ;;  %v863_v5 = vpack.c.bf16 %v831_v40, %v831_v40  ;;  %v5399_v9 = vpop.permute.xlu0 %699  ;;  %v4432_v40 = vld [vmem:[#allocation5 + $0x78] sm:$0xff] }
 0x101   :  { %6658 = vst [vmem:[#allocation45_spill] sm:$0xff] %v5399_v9  ;;  %1188 = vmatpush.bf16.msrb.mxu3 %v4432_v40 }
 0x102   :  { %v848_v54 = vpack.c.bf16 %v816_v35, %v816_v35  ;;  %v927_v3 = vunpack.c.l.b16 %v863_v5 }
 0x103   :  { %v629_v4 = vpop.f32.mrf.mxu3 }
 0x104   :  { %v630_v51 = vadd.f32 %v629_v4, %v5315_v6  ;;  %v503_v52 = vpop.f32.mrf.mxu0  ;;  %v912_v1 = vunpack.c.l.b16 %v848_v54 }
 0x105   :  { %v592_v50 = vpop.f32.mrf.mxu1 }
 0x106   :  { %v832_v18 = vmul.f32 %v5267_v23, %v630_v51  ;;  %v939_v11 = vpack.c.b16 %v912_v1, %v911_v42  ;;  %v593_v58 = vadd.f32 %v592_v50, %v503_v52  ;;  %v5403_v51 = vpop.permute.xlu1 %704  ;;  %v4431_v1 = vld [vmem:[#allocation5 + $0x70] sm:$0xff] }
 0x107   :  { %6659 = vst [vmem:[#allocation46_spill] sm:$0xff] %v5403_v51  ;;  %1189 = vmatpush.bf16.msrb.mxu3 %v4431_v1 }
 0x108   :  { %v864_v25 = vpack.c.bf16 %v832_v18, %v832_v18  ;;  %1127 = vmatmul.bf16.gmra.mxu2 %v939_v11  ;;  %v817_v30 = vmul.f32 %v5399_v9, %v593_v58 }
 0x10a   :  { %v928_v55 = vunpack.c.l.b16 %v864_v25  ;;  %v849_v18 = vpack.c.bf16 %v817_v30, %v817_v30 }
 0x10b   :  { %v632_v16 = vpop.f32.mrf.mxu3 }
 0x10c   :  { %v947_v13 = vpack.c.b16 %v928_v55, %v927_v3  ;;  %v505_v35 = vpop.f32.mrf.mxu0  ;;  %v633_v6 = vadd.f32 %v632_v16, %v5325_v44  ;;  %v913_v44 = vunpack.c.l.b16 %v849_v18 }
 0x10d   :  { %v594_v4 = vpop.f32.mrf.mxu1 }
 0x10e   :  { %1167 = vmatmul.bf16.vlgmr.msra.gmra.mxu3 %v947_v13  ;;  %v595_v54 = vadd.f32 %v594_v4, %v505_v35  ;;  %v833_v52 = vmul.f32 %v5265_v21, %v633_v6  ;;  %v4430_v13 = vld [vmem:[#allocation5 + $0x68] sm:$0xff]  ;;  %v5409_v21 = vpop.permute.xlu2 %709 }
 0x10f   :  { %1190 = vmatpush.bf16.msrb.mxu3 %v4430_v13  ;;  %6660 = vst [vmem:[#allocation47_spill] sm:$0xff] %v5409_v21 }
 0x110   :  { %v818_v42 = vmul.f32 %v5403_v51, %v595_v54  ;;  %v865_v58 = vpack.c.bf16 %v833_v52, %v833_v52  ;;  %v4429_v54 = vld [vmem:[#allocation5 + $0x60] sm:$0xff] }
 0x112   :  { %v850_v55 = vpack.c.bf16 %v818_v42, %v818_v42  ;;  %v929_v6 = vunpack.c.l.b16 %v865_v58  ;;  %v4427_v58 = vld [vmem:[#allocation5 + $0x50] sm:$0xff] }
 0x113   :  { %v634_v5 = vpop.f32.mrf.mxu3  ;;  %1191 = vmatpush.bf16.msrb.mxu3 %v4429_v54 }
 0x114   :  { %v635_v50 = vadd.f32 %v634_v5, %v5343_v7  ;;  %v508_v11 = vpop.f32.mrf.mxu0  ;;  %v914_v25 = vunpack.c.l.b16 %v850_v55  ;;  %v4428_v55 = vld [vmem:[#allocation5 + $0x58] sm:$0xff] }
 0x115   :  { %v597_v16 = vpop.f32.mrf.mxu1 }
 0x116   :  { %v834_v3 = vmul.f32 %v5283_v36, %v635_v50  ;;  %v940_v35 = vpack.c.b16 %v914_v25, %v913_v44  ;;  %v598_v4 = vadd.f32 %v597_v16, %v508_v11  ;;  %v5413_v44 = vpop.permute.xlu0 %714 }
 0x117   :  { %6661 = vst [vmem:[#allocation48_spill] sm:$0xff] %v5413_v44  ;;  %1192 = vmatpush.bf16.msrb.mxu3 %v4428_v55  ;;  %v4425_v55 = vld [vmem:[#allocation5 + $0x40] sm:$0xff] }
 0x118   :  { %v866_v30 = vpack.c.bf16 %v834_v3, %v834_v3  ;;  %1132 = vmatmul.bf16.gmra.mxu2 %v940_v35  ;;  %v819_v18 = vmul.f32 %v5409_v21, %v598_v4 }
 0x11a   :  { %v930_v40 = vunpack.c.l.b16 %v866_v30  ;;  %v851_v11 = vpack.c.bf16 %v819_v18, %v819_v18 }
 0x11b   :  { %v637_v42 = vpop.f32.mrf.mxu3  ;;  %1193 = vmatpush.bf16.msrb.mxu3 %v4427_v58 }
 0x11c   :  { %v948_v7 = vpack.c.b16 %v930_v40, %v929_v6  ;;  %v510_v52 = vpop.f32.mrf.mxu0  ;;  %v638_v1 = vadd.f32 %v637_v42, %v5354_v0  ;;  %v915_v0 = vunpack.c.l.b16 %v851_v11  ;;  %v4426_v42 = vld [vmem:[#allocation5 + $0x48] sm:$0xff] }
 0x11d   :  { %v599_v5 = vpop.f32.mrf.mxu1 }
 0x11e   :  { %1172 = vmatmul.bf16.gmra.mxu3 %v948_v7  ;;  %v600_v50 = vadd.f32 %v599_v5, %v510_v52  ;;  %v835_v3 = vmul.f32 %v5258_v17, %v638_v1 }
 0x11f   :  { %1194 = vmatpush.bf16.msrb.mxu3 %v4426_v42 }
 0x120   :  { %v820_v25 = vmul.f32 %v5413_v44, %v600_v50  ;;  %v867_v6 = vpack.c.bf16 %v835_v3, %v835_v3 }
 0x122   :  { %v852_v13 = vpack.c.bf16 %v820_v25, %v820_v25  ;;  %v931_v5 = vunpack.c.l.b16 %v867_v6  ;;  %v5419_v25 = vpop.permute.xlu1 %719 }
 0x123   :  { %v639_v16 = vpop.f32.mrf.mxu3  ;;  %6662 = vst [vmem:[#allocation49_spill] sm:$0xff] %v5419_v25  ;;  %1195 = vmatpush.bf16.msrb.mxu3 %v4425_v55 }
 0x124   :  { %v640_v35 = vadd.f32 %v639_v16, %v5371_v48  ;;  %v513_v30 = vpop.f32.mrf.mxu0  ;;  %v916_v4 = vunpack.c.l.b16 %v852_v13 }
 0x125   :  { %v602_v54 = vpop.f32.mrf.mxu1 }
 0x126   :  { %v836_v40 = vmul.f32 %v5269_v28, %v640_v35  ;;  %v941_v7 = vpack.c.b16 %v916_v4, %v915_v0  ;;  %v603_v52 = vadd.f32 %v602_v54, %v513_v30  ;;  %v5423_v35 = vpop.permute.xlu2 %724 }
 0x127   :  { %6663 = vst [vmem:[#allocation50_spill] sm:$0xff] %v5423_v35 }
 0x128   :  { %v868_v18 = vpack.c.bf16 %v836_v40, %v836_v40  ;;  %1137 = vmatmul.bf16.gmra.mxu2 %v941_v7  ;;  %v821_v11 = vmul.f32 %v5419_v25, %v603_v52 }
 0x12a   :  { %v932_v1 = vunpack.c.l.b16 %v868_v18  ;;  %v853_v30 = vpack.c.bf16 %v821_v11, %v821_v11 }
 0x12b   :  { %v642_v50 = vpop.f32.mrf.mxu3 }
 0x12c   :  { %v949_v48 = vpack.c.b16 %v932_v1, %v931_v5  ;;  %v515_v58 = vpop.f32.mrf.mxu0  ;;  %v643_v3 = vadd.f32 %v642_v50, %v5381_v34  ;;  %v917_v7 = vunpack.c.l.b16 %v853_v30 }
 0x12d   :  { %v604_v16 = vpop.f32.mrf.mxu1 }
 0x12e   :  { %1177 = vmatmul.bf16.gmra.mxu3 %v949_v48  ;;  %v605_v13 = vadd.f32 %v604_v16, %v515_v58  ;;  %v837_v4 = vmul.f32 %v5285_v37, %v643_v3  ;;  %v5429_v58 = vpop.permute.xlu0 %729 }
 0x12f   :  { %6664 = vst [vmem:[#allocation51_spill] sm:$0xff] %v5429_v58 }
 0x130   :  { %v822_v0 = vmul.f32 %v5423_v35, %v605_v13  ;;  %v869_v52 = vpack.c.bf16 %v837_v4, %v837_v4 }
 0x132   :  { %v854_v40 = vpack.c.bf16 %v822_v0, %v822_v0  ;;  %v933_v48 = vunpack.c.l.b16 %v869_v52  ;;  %v5432_v0 = vpop.permute.xlu1 %734 }
 0x133   :  { %v644_v6 = vpop.f32.mrf.mxu3  ;;  %6665 = vst [vmem:[#allocation52_spill] sm:$0xff] %v5432_v0 }
 0x134   :  { %v645_v54 = vadd.f32 %v644_v6, %v5387_v57  ;;  %v518_v42 = vpop.f32.mrf.mxu0  ;;  %v918_v18 = vunpack.c.l.b16 %v854_v40 }
 0x135   :  { %v607_v5 = vpop.f32.mrf.mxu1 }
 0x136   :  { %v838_v34 = vmul.f32 %v5298_v53, %v645_v54  ;;  %v942_v1 = vpack.c.b16 %v918_v18, %v917_v7  ;;  %v608_v50 = vadd.f32 %v607_v5, %v518_v42  ;;  %v5435_v5 = vpop.permute.xlu2 %739 }
 0x137   :  { %6666 = vst [vmem:[#allocation53_spill] sm:$0xff] %v5435_v5 }
 0x138   :  { %v870_v55 = vpack.c.bf16 %v838_v34, %v838_v34  ;;  %1142 = vmatmul.bf16.gmra.mxu2 %v942_v1  ;;  %v823_v16 = vmul.f32 %v5429_v58, %v608_v50 }
 0x13a   :  { %v934_v11 = vunpack.c.l.b16 %v870_v55  ;;  %v855_v4 = vpack.c.bf16 %v823_v16, %v823_v16 }
 0x13c   :  { %v950_v3 = vpack.c.b16 %v934_v11, %v933_v48  ;;  %v520_v13 = vpop.f32.mrf.mxu0  ;;  %v919_v42 = vunpack.c.l.b16 %v855_v4  ;;  %v5439_v11 = vpop.permute.xlu0 %744 }
 0x13d   :  { %v609_v57 = vpop.f32.mrf.mxu1  ;;  %6667 = vst [vmem:[#allocation54_spill] sm:$0xff] %v5439_v11 }
 0x13e   :  { %1182 = vmatmul.bf16.gmra.mxu3 %v950_v3  ;;  %v610_v30 = vadd.f32 %v609_v57, %v520_v13 }
 0x140   :  { %v824_v6 = vmul.f32 %v5432_v0, %v610_v30 }
 0x142   :  { %v856_v40 = vpack.c.bf16 %v824_v6, %v824_v6 }
 0x144   :  { %v523_v54 = vpop.f32.mrf.mxu0  ;;  %v920_v7 = vunpack.c.l.b16 %v856_v40 }
 0x145   :  { %v612_v18 = vpop.f32.mrf.mxu1 }
 0x146   :  { %v943_v52 = vpack.c.b16 %v920_v7, %v919_v42  ;;  %v613_v34 = vadd.f32 %v612_v18, %v523_v54  ;;  %v5442_v42 = vpop.permute.xlu1 %749 }
 0x147   :  { %6668 = vst [vmem:[#allocation55_spill] sm:$0xff] %v5442_v42 }
 0x148   :  { %1147 = vmatmul.bf16.gmra.mxu2 %v943_v52  ;;  %v825_v1 = vmul.f32 %v5435_v5, %v613_v34  ;;  %v5446_v34 = vpop.permute.xlu2 %754 }
 0x149   :  { %6669 = vst [vmem:[#allocation56_spill] sm:$0xff] %v5446_v34 }
 0x14a   :  { %v857_v3 = vpack.c.bf16 %v825_v1, %v825_v1 }
 0x14c   :  { %v525_v55 = vpop.f32.mrf.mxu0  ;;  %v921_v30 = vunpack.c.l.b16 %v857_v3 }
 0x14d   :  { %v614_v50 = vpop.f32.mrf.mxu1 }
 0x14e   :  { %1196 = vmatmul.bf16.vlgmr.msrb.gmra.mxu3 %v4954_v22  ;;  %v615_v48 = vadd.f32 %v614_v50, %v525_v55 }
 0x150   :  { %v826_v16 = vmul.f32 %v5439_v11, %v615_v48 }
 0x152   :  { %v858_v13 = vpack.c.bf16 %v826_v16, %v826_v16 }
 0x154   :  { %v528_v57 = vpop.f32.mrf.mxu0  ;;  %v922_v4 = vunpack.c.l.b16 %v858_v13 }
 0x155   :  { %v617_v6 = vpop.f32.mrf.mxu1 }
 0x156   :  { %v944_v40 = vpack.c.b16 %v922_v4, %v921_v30  ;;  %v618_v54 = vadd.f32 %v617_v6, %v528_v57  ;;  %v5449_v4 = vpop.permute.xlu0 %759 }
 0x157   :  { %6670 = vst [vmem:[#allocation57_spill] sm:$0xff] %v5449_v4 }
 0x158   :  { %1152 = vmatmul.bf16.gmra.mxu2 %v944_v40  ;;  %v827_v7 = vmul.f32 %v5442_v42, %v618_v54 }
 0x15a   :  { %v859_v1 = vpack.c.bf16 %v827_v7, %v827_v7  ;;  %v5453_v7 = vpop.permute.xlu1 %764 }
 0x15b   :  { %6671 = vst [vmem:[#allocation58_spill] sm:$0xff] %v5453_v7 }
 0x15c   :  { %v530_v18 = vpop.f32.mrf.mxu0  ;;  %v923_v3 = vunpack.c.l.b16 %v859_v1 }
 0x15d   :  { %v619_v22 = vpop.f32.mrf.mxu1 }
 0x15e   :  { %1201 = vmatmul.bf16.gmra.mxu3 %v4948_v19  ;;  %v620_v52 = vadd.f32 %v619_v22, %v530_v18 }
 0x160   :  { %v828_v55 = vmul.f32 %v5446_v34, %v620_v52  ;;  %v4664_v34 = vld [vmem:[#allocation2 + $0x48] sm:$0xff] }
 0x162   :  { %v860_v50 = vpack.c.bf16 %v828_v55, %v828_v55 }
 0x164   :  { %v533_v48 = vpop.f32.mrf.mxu0  ;;  %v924_v16 = vunpack.c.l.b16 %v860_v50 }
 0x165   :  { %v622_v13 = vpop.f32.mrf.mxu1 }
 0x166   :  { %v945_v57 = vpack.c.b16 %v924_v16, %v923_v3  ;;  %v623_v30 = vadd.f32 %v622_v13, %v533_v48  ;;  %v4659_v48 = vld [vmem:[#allocation2 + $0x18] sm:$0xff]  ;;  %v4660_v3 = vld [vmem:[#allocation2 + $0x20] sm:$0xff] }
 0x168   :  { %1157 = vmatmul.bf16.gmra.mxu2 %v945_v57  ;;  %v829_v6 = vmul.f32 %v5449_v4, %v623_v30  ;;  %v1108_v57 = vpop.f32.mrf.mxu2 }
 0x16a   :  { %v861_v18 = vpack.c.bf16 %v829_v6, %v829_v6 }
 0x16c   :  { %v535_v40 = vpop.f32.mrf.mxu0  ;;  %v925_v1 = vunpack.c.l.b16 %v861_v18 }
 0x16d   :  { %v624_v19 = vpop.f32.mrf.mxu1 }
 0x16e   :  { %1206 = vmatmul.bf16.gmra.mxu3 %v4932_v14  ;;  %v625_v54 = vadd.f32 %v624_v19, %v535_v40  ;;  %v4661_v14 = vld [vmem:[#allocation2 + $0x28] sm:$0xff]  ;;  %v4662_v19 = vld [vmem:[#allocation2 + $0x30] sm:$0xff] }
 0x170   :  { %v830_v22 = vmul.f32 %v5453_v7, %v625_v54  ;;  %v1110_v6 = vpop.f32.mrf.mxu2 }
 0x172   :  { %v862_v52 = vpack.c.bf16 %v830_v22, %v830_v22 }
 0x174   :  { %v926_v55 = vunpack.c.l.b16 %v862_v52 }
 0x176   :  { %v946_v50 = vpack.c.b16 %v926_v55, %v925_v1  ;;  %v4663_v1 = vld [vmem:[#allocation2 + $0x38] sm:$0xff] }
 0x178   :  { %1162 = vmatmul.bf16.gmra.mxu2 %v946_v50  ;;  %v1113_v18 = vpop.f32.mrf.mxu2 }
 0x17e   :  { %1211 = vmatmul.bf16.gmra.mxu3 %v4659_v48 }
 0x180   :  { %v1115_v52 = vpop.f32.mrf.mxu2 }
 0x188   :  { %v1118_v50 = vpop.f32.mrf.mxu2 }
 0x18e   :  { %1216 = vmatmul.bf16.gmra.mxu3 %v4660_v3  ;;  %v5475_v3 = vld [vmem:[%s6519_s4] ss:$0 sm:$0xff] }
 0x18f   :  { %v1111_v28 = vadd.f32 %v5475_v3, %v1110_v6  ;;  %v1114_v42 = vadd.f32 %v5475_v3, %v1113_v18  ;;  %v1116_v6 = vadd.f32 %v5475_v3, %v1115_v52  ;;  %v1119_v18 = vadd.f32 %v5475_v3, %v1118_v50 }
 0x191   :  { %v5456_v16 = vpop.f32.mrf.mxu3 }
 0x199   :  { %v5458_v13 = vpop.f32.mrf.mxu3 }
 0x19e   :  { %1221 = vmatmul.bf16.gmra.mxu3 %v4661_v14  ;;  %v1109_v14 = vadd.f32 %v5475_v3, %v1108_v57 }
 0x1a1   :  { %v5460_v30 = vpop.f32.mrf.mxu3 }
 0x1a9   :  { %v5462_v40 = vpop.f32.mrf.mxu3 }
 0x1ae   :  { %1226 = vmatmul.bf16.gmra.mxu3 %v4662_v19  ;;  %v1120_v19 = vpop.f32.mrf.mxu2 }
 0x1b1   :  { %v5464_v54 = vpop.f32.mrf.mxu3 }
 0x1b6   :  { %v1123_v23 = vpop.f32.mrf.mxu2 }
 0x1b7   :  { %v1124_v50 = vadd.f32 %v5475_v3, %v1123_v23 }
 0x1b9   :  { %v5466_v22 = vpop.f32.mrf.mxu3 }
 0x1be   :  { %1231 = vmatmul.bf16.gmra.mxu3 %v4663_v1 }
 0x1c1   :  { %v5468_v55 = vpop.f32.mrf.mxu3 }
 0x1c9   :  { %v5470_v48 = vpop.f32.mrf.mxu3 }
 0x1ce   :  { %1236 = vmatmul.bf16.gmra.mxu3 %v4970_v27 }
 0x1d1   :  { %v1197_v53 = vpop.f32.mrf.mxu3 }
 0x1d2   :  { %v1198_v37 = vadd.f32 %v1197_v53, %v1109_v14  ;;  %v1125_v53 = vpop.f32.mrf.mxu2 }
 0x1d4   :  { %v1277_v1 = vmax.f32 %v1198_v37, 0.0 }
 0x1d6   :  { %v1309_v2 = vpack.c.bf16 %v1277_v1, %v1277_v1 }
 0x1d8   :  { %v1373_v11 = vunpack.c.l.b16 %v1309_v2 }
 0x1d9   :  { %v1199_v17 = vpop.f32.mrf.mxu3 }
 0x1da   :  { %v1200_v36 = vadd.f32 %v1199_v17, %v1111_v28 }
 0x1dc   :  { %v1278_v7 = vmax.f32 %v1200_v36, 0.0 }
 0x1de   :  { %v1310_v4 = vpack.c.bf16 %v1278_v7, %v1278_v7  ;;  %1241 = vmatmul.bf16.gmra.mxu3 %v4664_v34  ;;  %v4665_v7 = vld [vmem:[#allocation2 + $0x50] sm:$0xff]  ;;  %v1128_v34 = vpop.f32.mrf.mxu2 }
 0x1df   :  { %v1129_v23 = vadd.f32 %v5475_v3, %v1128_v34 }
 0x1e0   :  { %v1374_v27 = vunpack.c.l.b16 %v1310_v4 }
 0x1e1   :  { %v1202_v5 = vpop.f32.mrf.mxu3 }
 0x1e2   :  { %v5481_v57 = vpack.c.b16 %v1374_v27, %v1373_v11  ;;  %v1203_v0 = vadd.f32 %v1202_v5, %v1114_v42  ;;  %v1121_v5 = vadd.f32 %v5475_v3, %v1120_v19  ;;  %v1126_v19 = vadd.f32 %v5475_v3, %v1125_v53 }
 0x1e4   :  { %6672 = vst [vmem:[#allocation59_spill] sm:$0xff] %v5481_v57  ;;  %v1279_v37 = vmax.f32 %v1203_v0, 0.0 }
 0x1e6   :  { %v1311_v28 = vpack.c.bf16 %v1279_v37, %v1279_v37  ;;  %v5488_v0 = vpop.f32.mrf.mxu2 }
 0x1e8   :  { %v1375_v2 = vunpack.c.l.b16 %v1311_v28 }
 0x1e9   :  { %v1204_v14 = vpop.f32.mrf.mxu3 }
 0x1ea   :  { %v1205_v17 = vadd.f32 %v1204_v14, %v1116_v6 }
 0x1ec   :  { %v1280_v1 = vmax.f32 %v1205_v17, 0.0 }
 0x1ee   :  { %v1312_v36 = vpack.c.bf16 %v1280_v1, %v1280_v1  ;;  %1246 = vmatmul.bf16.gmra.mxu3 %v4665_v7  ;;  %v4666_v1 = vld [vmem:[#allocation2 + $0x58] sm:$0xff] }
 0x1f0   :  { %v1376_v4 = vunpack.c.l.b16 %v1312_v36 }
 0x1f1   :  { %v1207_v58 = vpop.f32.mrf.mxu3 }
 0x1f2   :  { %v1208_v11 = vadd.f32 %v1207_v58, %v1119_v18  ;;  %v5485_v27 = vpack.c.b16 %v1376_v4, %v1375_v2  ;;  %v1133_v2 = vpop.f32.mrf.mxu2 }
 0x1f4   :  { %6673 = vst [vmem:[#allocation60_spill] sm:$0xff] %v5485_v27  ;;  %v1281_v42 = vmax.f32 %v1208_v11, 0.0 }
 0x1f6   :  { %v1313_v37 = vpack.c.bf16 %v1281_v42, %v1281_v42 }
 0x1f8   :  { %v1377_v28 = vunpack.c.l.b16 %v1313_v37 }
 0x1f9   :  { %v1209_v52 = vpop.f32.mrf.mxu3 }
 0x1fa   :  { %v1210_v6 = vadd.f32 %v1209_v52, %v1121_v5  ;;  %v1135_v52 = vpop.f32.mrf.mxu2 }
 0x1fb   :  { %v1136_v21 = vadd.f32 %v5475_v3, %v1135_v52 }
 0x1fc   :  { %v1282_v14 = vmax.f32 %v1210_v6, 0.0 }
 0x1fe   :  { %v1314_v17 = vpack.c.bf16 %v1282_v14, %v1282_v14  ;;  %1251 = vmatmul.bf16.gmra.mxu3 %v4666_v1  ;;  %v4667_v14 = vld [vmem:[#allocation2 + $0x60] sm:$0xff]  ;;  %v4448_v1 = vld [vmem:[#allocation7 + $0x78] sm:$0xff] }
 0x1ff   :  { %1996 = vmatpush.bf16.msra.mxu3 %v4448_v1  ;;  %v4441_v1 = vld [vmem:[#allocation7 + $0x40] sm:$0xff] }
 0x200   :  { %v1378_v36 = vunpack.c.l.b16 %v1314_v17 }
 0x201   :  { %v1212_v7 = vpop.f32.mrf.mxu3 }
 0x202   :  { %v1213_v58 = vadd.f32 %v1212_v7, %v1124_v50  ;;  %v5491_v18 = vpack.c.b16 %v1378_v36, %v1377_v28  ;;  %v4447_v36 = vld [vmem:[#allocation7 + $0x70] sm:$0xff]  ;;  %v4446_v7 = vld [vmem:[#allocation7 + $0x68] sm:$0xff] }
 0x203   :  { %1997 = vmatpush.bf16.msra.mxu3 %v4447_v36 }
 0x204   :  { %6674 = vst [vmem:[#allocation61_spill] sm:$0xff] %v5491_v18  ;;  %v1283_v4 = vmax.f32 %v1213_v58, 0.0  ;;  %v1138_v58 = vpop.f32.mrf.mxu2 }
 0x206   :  { %v1315_v5 = vpack.c.bf16 %v1283_v4, %v1283_v4  ;;  %v4668_v4 = vld [vmem:[#allocation2 + $0x68] sm:$0xff] }
 0x207   :  { %1998 = vmatpush.bf16.msra.mxu3 %v4446_v7  ;;  %v4670_v7 = vld [vmem:[#allocation2 + $0x78] sm:$0xff] }
 0x208   :  { %v1379_v37 = vunpack.c.l.b16 %v1315_v5 }
 0x209   :  { %v1214_v11 = vpop.f32.mrf.mxu3 }
 0x20a   :  { %v1215_v35 = vadd.f32 %v1214_v11, %v1126_v19  ;;  %v4445_v19 = vld [vmem:[#allocation7 + $0x60] sm:$0xff]  ;;  %v4444_v11 = vld [vmem:[#allocation7 + $0x58] sm:$0xff] }
 0x20b   :  { %1999 = vmatpush.bf16.msra.mxu3 %v4445_v19 }
 0x20c   :  { %v1284_v42 = vmax.f32 %v1215_v35, 0.0  ;;  %v1140_v34 = vpop.f32.mrf.mxu2 }
 0x20d   :  { %v1141_v25 = vadd.f32 %v5475_v3, %v1140_v34  ;;  %v1131_v34 = vadd.f32 %v5475_v3, %v5488_v0 }
 0x20e   :  { %v1316_v6 = vpack.c.bf16 %v1284_v42, %v1284_v42  ;;  %1256 = vmatmul.bf16.gmra.mxu3 %v4667_v14  ;;  %v4443_v42 = vld [vmem:[#allocation7 + $0x50] sm:$0xff] }
 0x20f   :  { %2000 = vmatpush.bf16.msra.mxu3 %v4444_v11 }
 0x210   :  { %v1380_v17 = vunpack.c.l.b16 %v1316_v6  ;;  %v4442_v6 = vld [vmem:[#allocation7 + $0x48] sm:$0xff] }
 0x211   :  { %v1217_v50 = vpop.f32.mrf.mxu3 }
 0x212   :  { %v5495_v28 = vadd.f32 %v1217_v50, %v1129_v23  ;;  %v5497_v53 = vpack.c.b16 %v1380_v17, %v1379_v37  ;;  %v4669_v37 = vld [vmem:[#allocation2 + $0x70] sm:$0xff] }
 0x213   :  { %2001 = vmatpush.bf16.msra.mxu3 %v4443_v42 }
 0x214   :  { %6675 = vst [vmem:[#allocation62_spill] sm:$0xff] %v5497_v53  ;;  %v1143_v23 = vpop.f32.mrf.mxu2 }
 0x215   :  { %v1144_v11 = vadd.f32 %v5475_v3, %v1143_v23 }
 0x217   :  { %2002 = vmatpush.bf16.msra.mxu3 %v4442_v6  ;;  %v1139_v6 = vadd.f32 %v5475_v3, %v1138_v58 }
 0x219   :  { %v1219_v35 = vpop.f32.mrf.mxu3 }
 0x21b   :  { %2003 = vmatpush.bf16.msra.mxu3 %v4441_v1 }
 0x21c   :  { %v1145_v50 = vpop.f32.mrf.mxu2 }
 0x21d   :  { %v1146_v1 = vadd.f32 %v5475_v3, %v1145_v50 }
 0x21e   :  { %1261 = vmatmul.bf16.gmra.mxu3 %v4668_v4 }
 0x221   :  { %v1222_v5 = vpop.f32.mrf.mxu3 }
 0x224   :  { %v1148_v19 = vpop.f32.mrf.mxu2 }
 0x229   :  { %v1224_v14 = vpop.f32.mrf.mxu3 }
 0x22a   :  { %v1225_v43 = vadd.f32 %v1224_v14, %v1136_v21  ;;  %v1149_v21 = vadd.f32 %v5475_v3, %v1148_v19 }
 0x22c   :  { %v1150_v9 = vpop.f32.mrf.mxu2  ;;  %v1288_v52 = vmax.f32 %v1225_v43, 0.0 }
 0x22d   :  { %v1151_v19 = vadd.f32 %v5475_v3, %v1150_v9 }
 0x22e   :  { %1266 = vmatmul.bf16.gmra.mxu3 %v4669_v37  ;;  %v1320_v14 = vpack.c.bf16 %v1288_v52, %v1288_v52 }
 0x231   :  { %v1227_v17 = vpop.f32.mrf.mxu3 }
 0x232   :  { %v1228_v37 = vadd.f32 %v1227_v17, %v1139_v6 }
 0x239   :  { %v1229_v36 = vpop.f32.mrf.mxu3 }
 0x23a   :  { %v1230_v44 = vadd.f32 %v1229_v36, %v1141_v25  ;;  %v1220_v36 = vadd.f32 %v1219_v35, %v1131_v34 }
 0x23c   :  { %v1290_v60 = vmax.f32 %v1230_v44, 0.0  ;;  %v1286_v44 = vmax.f32 %v1220_v36, 0.0 }
 0x23e   :  { %1271 = vmatmul.bf16.gmra.mxu3 %v4670_v7  ;;  %v1134_v7 = vadd.f32 %v5475_v3, %v1133_v2 }
 0x240   :  { %v1223_v23 = vadd.f32 %v1222_v5, %v1134_v7 }
 0x241   :  { %v1232_v4 = vpop.f32.mrf.mxu3 }
 0x242   :  { %v1233_v42 = vadd.f32 %v1232_v4, %v1144_v11  ;;  %v1289_v4 = vmax.f32 %v1228_v37, 0.0  ;;  %v1322_v11 = vpack.c.bf16 %v1290_v60, %v1290_v60  ;;  %v1287_v17 = vmax.f32 %v1223_v23, 0.0 }
 0x243   :  { %v1384_v37 = vunpack.c.l.b16 %v1320_v14 }
 0x244   :  { %v1291_v51 = vmax.f32 %v1233_v42, 0.0  ;;  %v1321_v42 = vpack.c.bf16 %v1289_v4, %v1289_v4  ;;  %v1386_v0 = vunpack.c.l.b16 %v1322_v11  ;;  %v1319_v43 = vpack.c.bf16 %v1287_v17, %v1287_v17 }
 0x246   :  { %v1323_v58 = vpack.c.bf16 %v1291_v51, %v1291_v51  ;;  %v1153_v51 = vpop.f32.mrf.mxu2  ;;  %v1385_v60 = vunpack.c.l.b16 %v1321_v42  ;;  %v1383_v23 = vunpack.c.l.b16 %v1319_v43 }
 0x248   :  { %v1387_v6 = vunpack.c.l.b16 %v1323_v58  ;;  %v5513_v7 = vpack.c.b16 %v1386_v0, %v1385_v60 }
 0x249   :  { %v1234_v49 = vpop.f32.mrf.mxu3 }
 0x24a   :  { %v1235_v20 = vadd.f32 %v1234_v49, %v1146_v1  ;;  %v1318_v1 = vpack.c.bf16 %v1286_v44, %v1286_v44  ;;  %6677 = vst [vmem:[#allocation64_spill] sm:$0xff] %v5513_v7 }
 0x24c   :  { %v1292_v25 = vmax.f32 %v1235_v20, 0.0  ;;  %v1285_v20 = vmax.f32 %v5495_v28, 0.0  ;;  %v5517_v28 = vpack.c.b16 %v1384_v37, %v1383_v23 }
 0x24e   :  { %v1324_v50 = vpack.c.bf16 %v1292_v25, %v1292_v25  ;;  %2004 = vmatmul.bf16.vlgmr.msra.gmra.mxu3 %v5481_v57  ;;  %v1317_v34 = vpack.c.bf16 %v1285_v20, %v1285_v20  ;;  %v1382_v25 = vunpack.c.l.b16 %v1318_v1  ;;  %6678 = vst [vmem:[#allocation65_spill] sm:$0xff] %v5517_v28  ;;  %v1155_v17 = vpop.f32.mrf.mxu2 }
 0x24f   :  { %v1156_v20 = vadd.f32 %v5475_v3, %v1155_v17 }
 0x250   :  { %v1388_v2 = vunpack.c.l.b16 %v1324_v50  ;;  %v1381_v52 = vunpack.c.l.b16 %v1317_v34 }
 0x251   :  { %v1237_v49 = vpop.f32.mrf.mxu3 }
 0x252   :  { %v5509_v5 = vpack.c.b16 %v1388_v2, %v1387_v6  ;;  %v1238_v35 = vadd.f32 %v1237_v49, %v1149_v21  ;;  %v5521_v9 = vpack.c.b16 %v1382_v25, %v1381_v52  ;;  %v1154_v49 = vadd.f32 %v5475_v3, %v1153_v51 }
 0x254   :  { %6676 = vst [vmem:[#allocation63_spill] sm:$0xff] %v5509_v5  ;;  %1437 = vmatpush.bf16.msrb.mxu0 %v5509_v5  ;;  %v1293_v4 = vmax.f32 %v1238_v35, 0.0 }
 0x255   :  { %6679 = vst [vmem:[#allocation66_spill] sm:$0xff] %v5521_v9 }
 0x256   :  { %v1325_v11 = vpack.c.bf16 %v1293_v4, %v1293_v4  ;;  %v1158_v0 = vpop.f32.mrf.mxu2 }
 0x258   :  { %1438 = vmatpush.bf16.msrb.mxu0 %v5513_v7  ;;  %v1389_v6 = vunpack.c.l.b16 %v1325_v11 }
 0x259   :  { %v1239_v58 = vpop.f32.mrf.mxu3 }
 0x25a   :  { %v1240_v36 = vadd.f32 %v1239_v58, %v1151_v19  ;;  %v1159_v58 = vadd.f32 %v5475_v3, %v1158_v0 }
 0x25c   :  { %v1294_v50 = vmax.f32 %v1240_v36, 0.0  ;;  %1439 = vmatpush.bf16.msrb.mxu0 %v5517_v28 }
 0x25e   :  { %v1326_v42 = vpack.c.bf16 %v1294_v50, %v1294_v50  ;;  %2009 = vmatmul.bf16.gmra.mxu3 %v5485_v27  ;;  %v1160_v23 = vpop.f32.mrf.mxu2 }
 0x25f   :  { %v1161_v52 = vadd.f32 %v5475_v3, %v1160_v23 }
 0x260   :  { %v1390_v2 = vunpack.c.l.b16 %v1326_v42  ;;  %1440 = vmatpush.bf16.msrb.mxu0 %v5521_v9 }
 0x261   :  { %v1242_v21 = vpop.f32.mrf.mxu3 }
 0x262   :  { %v5525_v44 = vpack.c.b16 %v1390_v2, %v1389_v6  ;;  %v1243_v14 = vadd.f32 %v1242_v21, %v1154_v49 }
 0x264   :  { %6680 = vst [vmem:[#allocation67_spill] sm:$0xff] %v5525_v44  ;;  %1441 = vmatpush.bf16.msrb.mxu0 %v5497_v53  ;;  %v1295_v43 = vmax.f32 %v1243_v14, 0.0 }
 0x266   :  { %v1327_v1 = vpack.c.bf16 %v1295_v43, %v1295_v43  ;;  %v1163_v42 = vpop.f32.mrf.mxu2 }
 0x267   :  { %v1164_v0 = vadd.f32 %v5475_v3, %v1163_v42  ;;  %v1171_v42 = vadd.f32 %v5475_v3, %v5458_v13  ;;  %v1176_v13 = vadd.f32 %v5475_v3, %v5462_v40  ;;  %v1181_v40 = vadd.f32 %v5475_v3, %v5466_v22 }
 0x268   :  { %1442 = vmatpush.bf16.msrb.mxu0 %v5491_v18  ;;  %v1391_v51 = vunpack.c.l.b16 %v1327_v1  ;;  %v1186_v22 = vadd.f32 %v5475_v3, %v5470_v48 }
 0x269   :  { %v1244_v60 = vpop.f32.mrf.mxu3 }
 0x26a   :  { %v1245_v35 = vadd.f32 %v1244_v60, %v1156_v20 }
 0x26c   :  { %v1296_v37 = vmax.f32 %v1245_v35, 0.0  ;;  %1443 = vmatpush.bf16.msrb.mxu0 %v5485_v27 }
 0x26e   :  { %v1328_v19 = vpack.c.bf16 %v1296_v37, %v1296_v37  ;;  %2014 = vmatmul.bf16.gmra.mxu3 %v5491_v18  ;;  %v1165_v35 = vpop.f32.mrf.mxu2 }
 0x26f   :  { %v1166_v1 = vadd.f32 %v5475_v3, %v1165_v35  ;;  %v1174_v35 = vadd.f32 %v5475_v3, %v5460_v30  ;;  %v1179_v30 = vadd.f32 %v5475_v3, %v5464_v54  ;;  %v1184_v54 = vadd.f32 %v5475_v3, %v5468_v55 }
 0x270   :  { %v1392_v34 = vunpack.c.l.b16 %v1328_v19  ;;  %1444 = vmatpush.bf16.msrb.mxu0 %v5481_v57 }
 0x271   :  { %v1247_v4 = vpop.f32.mrf.mxu3 }
 0x272   :  { %v5534_v25 = vpack.c.b16 %v1392_v34, %v1391_v51  ;;  %v1248_v36 = vadd.f32 %v1247_v4, %v1159_v58  ;;  %v1169_v58 = vadd.f32 %v5475_v3, %v5456_v16 }
 0x273   :  { %1445 = vmatmul.bf16.vlgmr.msrb.gmra.mxu0 %v4981_v31 }
 0x274   :  { %6681 = vst [vmem:[#allocation68_spill] sm:$0xff] %v5534_v25  ;;  %v1297_v11 = vmax.f32 %v1248_v36, 0.0 }
 0x276   :  { %v1329_v6 = vpack.c.bf16 %v1297_v11, %v1297_v11 }
 0x278   :  { %v1393_v49 = vunpack.c.l.b16 %v1329_v6 }
 0x279   :  { %v1249_v50 = vpop.f32.mrf.mxu3 }
 0x27a   :  { %v1250_v17 = vadd.f32 %v1249_v50, %v1161_v52 }
 0x27c   :  { %v1298_v2 = vmax.f32 %v1250_v17, 0.0 }
 0x27e   :  { %v1330_v21 = vpack.c.bf16 %v1298_v2, %v1298_v2  ;;  %2019 = vmatmul.bf16.gmra.mxu3 %v5497_v53  ;;  %v6697_v53 = vld [vmem:[#allocation37_spill] sm:$0xff] }
 0x280   :  { %v1394_v14 = vunpack.c.l.b16 %v1330_v21 }
 0x281   :  { %v1252_v20 = vpop.f32.mrf.mxu3 }
 0x282   :  { %v5540_v43 = vpack.c.b16 %v1394_v14, %v1393_v49  ;;  %v1253_v60 = vadd.f32 %v1252_v20, %v1164_v0 }
 0x283   :  { %1450 = vmatmul.bf16.gmra.mxu0 %v5030_v45 }
 0x284   :  { %6682 = vst [vmem:[#allocation69_spill] sm:$0xff] %v5540_v43  ;;  %v1299_v37 = vmax.f32 %v1253_v60, 0.0 }
 0x286   :  { %v1331_v34 = vpack.c.bf16 %v1299_v37, %v1299_v37 }
 0x288   :  { %v1395_v36 = vunpack.c.l.b16 %v1331_v34 }
 0x289   :  { %v1254_v19 = vpop.f32.mrf.mxu3 }
 0x28a   :  { %v1255_v51 = vadd.f32 %v1254_v19, %v1166_v1 }
 0x28c   :  { %v1300_v23 = vmax.f32 %v1255_v51, 0.0 }
 0x28e   :  { %v1332_v4 = vpack.c.bf16 %v1300_v23, %v1300_v23  ;;  %2024 = vmatmul.bf16.gmra.mxu3 %v5521_v9 }
 0x290   :  { %v1396_v52 = vunpack.c.l.b16 %v1332_v4 }
 0x291   :  { %v1257_v11 = vpop.f32.mrf.mxu3 }
 0x292   :  { %v1258_v50 = vadd.f32 %v1257_v11, %v1169_v58  ;;  %v5547_v17 = vpack.c.b16 %v1396_v52, %v1395_v36 }
 0x293   :  { %1455 = vmatmul.bf16.gmra.mxu0 %v5075_v59 }
 0x294   :  { %6683 = vst [vmem:[#allocation70_spill] sm:$0xff] %v5547_v17  ;;  %v1301_v6 = vmax.f32 %v1258_v50, 0.0 }
 0x296   :  { %v1333_v49 = vpack.c.bf16 %v1301_v6, %v1301_v6 }
 0x298   :  { %v1397_v16 = vunpack.c.l.b16 %v1333_v49 }
 0x299   :  { %v1259_v2 = vpop.f32.mrf.mxu3 }
 0x29a   :  { %v1260_v21 = vadd.f32 %v1259_v2, %v1171_v42 }
 0x29c   :  { %v1302_v14 = vmax.f32 %v1260_v21, 0.0 }
 0x29e   :  { %v1334_v20 = vpack.c.bf16 %v1302_v14, %v1302_v14  ;;  %2029 = vmatmul.bf16.gmra.mxu3 %v5517_v28 }
 0x2a0   :  { %v1398_v0 = vunpack.c.l.b16 %v1334_v20 }
 0x2a1   :  { %v1262_v60 = vpop.f32.mrf.mxu3 }
 0x2a2   :  { %v5555_v1 = vpack.c.b16 %v1398_v0, %v1397_v16  ;;  %v1263_v37 = vadd.f32 %v1262_v60, %v1174_v35 }
 0x2a3   :  { %1460 = vmatmul.bf16.gmra.mxu0 %v5114_v8 }
 0x2a4   :  { %6684 = vst [vmem:[#allocation71_spill] sm:$0xff] %v5555_v1  ;;  %v1303_v19 = vmax.f32 %v1263_v37, 0.0 }
 0x2a6   :  { %v1335_v23 = vpack.c.bf16 %v1303_v19, %v1303_v19 }
 0x2a8   :  { %v1399_v36 = vunpack.c.l.b16 %v1335_v23 }
 0x2a9   :  { %v1264_v51 = vpop.f32.mrf.mxu3 }
 0x2aa   :  { %v1265_v34 = vadd.f32 %v1264_v51, %v1176_v13 }
 0x2ac   :  { %v1304_v4 = vmax.f32 %v1265_v34, 0.0 }
 0x2ae   :  { %v1336_v58 = vpack.c.bf16 %v1304_v4, %v1304_v4  ;;  %2034 = vmatmul.bf16.gmra.mxu3 %v5513_v7  ;;  %v6696_v7 = vld [vmem:[#allocation36_spill] sm:$0xff] }
 0x2b0   :  { %v1400_v52 = vunpack.c.l.b16 %v1336_v58 }
 0x2b1   :  { %v1267_v11 = vpop.f32.mrf.mxu3 }
 0x2b2   :  { %v5563_v50 = vpack.c.b16 %v1400_v52, %v1399_v36  ;;  %v1268_v42 = vadd.f32 %v1267_v11, %v1179_v30 }
 0x2b3   :  { %1465 = vmatmul.bf16.gmra.mxu0 %v5153_v24 }
 0x2b4   :  { %6685 = vst [vmem:[#allocation72_spill] sm:$0xff] %v5563_v50  ;;  %v1305_v6 = vmax.f32 %v1268_v42, 0.0 }
 0x2b6   :  { %v1337_v49 = vpack.c.bf16 %v1305_v6, %v1305_v6 }
 0x2b8   :  { %v1401_v16 = vunpack.c.l.b16 %v1337_v49  ;;  %v4439_v49 = vld [vmem:[#allocation7 + $0x30] sm:$0xff] }
 0x2b9   :  { %v1269_v2 = vpop.f32.mrf.mxu3 }
 0x2ba   :  { %v1270_v21 = vadd.f32 %v1269_v2, %v1181_v40  ;;  %v4440_v2 = vld [vmem:[#allocation7 + $0x38] sm:$0xff] }
 0x2bb   :  { %1907 = vmatpush.bf16.msrb.mxu2 %v4440_v2  ;;  %v6691_v2 = vld [vmem:[#allocation31_spill] sm:$0xff] }
 0x2bc   :  { %v1306_v14 = vmax.f32 %v1270_v21, 0.0 }
 0x2be   :  { %v1338_v20 = vpack.c.bf16 %v1306_v14, %v1306_v14  ;;  %2039 = vmatmul.bf16.gmra.mxu3 %v5509_v5  ;;  %v4438_v14 = vld [vmem:[#allocation7 + $0x28] sm:$0xff] }
 0x2bf   :  { %1908 = vmatpush.bf16.msrb.mxu2 %v4439_v49 }
 0x2c0   :  { %v1402_v0 = vunpack.c.l.b16 %v1338_v20 }
 0x2c1   :  { %v1272_v60 = vpop.f32.mrf.mxu3 }
 0x2c2   :  { %v5571_v35 = vpack.c.b16 %v1402_v0, %v1401_v16  ;;  %v1273_v37 = vadd.f32 %v1272_v60, %v1184_v54  ;;  %v4437_v16 = vld [vmem:[#allocation7 + $0x20] sm:$0xff]  ;;  %v4436_v0 = vld [vmem:[#allocation7 + $0x18] sm:$0xff]  ;;  %v4435_v54 = vld [vmem:[#allocation7 + $0x10] sm:$0xff] }
 0x2c3   :  { %1470 = vmatmul.bf16.gmra.mxu0 %v5186_v39  ;;  %1909 = vmatpush.bf16.msrb.mxu2 %v4438_v14 }
 0x2c4   :  { %6686 = vst [vmem:[#allocation73_spill] sm:$0xff] %v5571_v35  ;;  %v1307_v13 = vmax.f32 %v1273_v37, 0.0  ;;  %v4434_v37 = vld [vmem:[#allocation7 + $0x8] sm:$0xff] }
 0x2c6   :  { %v1339_v34 = vpack.c.bf16 %v1307_v13, %v1307_v13 }
 0x2c7   :  { %1910 = vmatpush.bf16.msrb.mxu2 %v4437_v16 }
 0x2c8   :  { %v1403_v58 = vunpack.c.l.b16 %v1339_v34 }
 0x2c9   :  { %v1274_v19 = vpop.f32.mrf.mxu3 }
 0x2ca   :  { %v1275_v51 = vadd.f32 %v1274_v19, %v1186_v22  ;;  %v4433_v22 = vld [vmem:[#allocation7] sm:$0xff] }
 0x2cb   :  { %1911 = vmatpush.bf16.msrb.mxu2 %v4436_v0  ;;  %v6688_v19 = vld [vmem:[#allocation24_spill] sm:$0xff] }
 0x2cc   :  { %v1308_v23 = vmax.f32 %v1275_v51, 0.0 }
 0x2ce   :  { %v1340_v4 = vpack.c.bf16 %v1308_v23, %v1308_v23  ;;  %2044 = vmatmul.bf16.gmra.mxu3 %v5525_v44 }
 0x2cf   :  { %1912 = vmatpush.bf16.msrb.mxu2 %v4435_v54 }
 0x2d0   :  { %v1404_v36 = vunpack.c.l.b16 %v1340_v4  ;;  %v6689_v4 = vld [vmem:[#allocation16_spill] sm:$0xff] }
 0x2d1   :  { %v5593_v55 = vpop.f32.mrf.mxu3 }
 0x2d2   :  { %v5577_v52 = vpack.c.b16 %v1404_v36, %v1403_v58  ;;  %v6690_v36 = vld [vmem:[#allocation30_spill] sm:$0xff] }
 0x2d3   :  { %1475 = vmatmul.bf16.gmra.mxu0 %v5219_v56  ;;  %1913 = vmatpush.bf16.msrb.mxu2 %v4434_v37  ;;  %v6692_v37 = vld [vmem:[#allocation33_spill] sm:$0xff] }
 0x2d4   :  { %6687 = vst [vmem:[#allocation74_spill] sm:$0xff] %v5577_v52  ;;  %1526 = vmatpush.bf16.msrb.mxu1 %v5577_v52 }
 0x2d7   :  { %1914 = vmatpush.bf16.msrb.mxu2 %v4433_v22 }
 0x2d8   :  { %1527 = vmatpush.bf16.msrb.mxu1 %v5571_v35 }
 0x2d9   :  { %v5596_v48 = vpop.f32.mrf.mxu3 }
 0x2dc   :  { %1528 = vmatpush.bf16.msrb.mxu1 %v5563_v50 }
 0x2de   :  { %2049 = vmatmul.bf16.gmra.mxu3 %v5534_v25 }
 0x2e0   :  { %1529 = vmatpush.bf16.msrb.mxu1 %v5555_v1 }
 0x2e1   :  { %v5600_v3 = vpop.f32.mrf.mxu3 }
 0x2e3   :  { %1480 = vmatmul.bf16.gmra.mxu0 %v5254_v15 }
 0x2e4   :  { %1530 = vmatpush.bf16.msrb.mxu1 %v5547_v17 }
 0x2e8   :  { %1531 = vmatpush.bf16.msrb.mxu1 %v5540_v43 }
 0x2e9   :  { %v5605_v11 = vpop.f32.mrf.mxu3 }
 0x2ec   :  { %1532 = vmatpush.bf16.msrb.mxu1 %v5534_v25  ;;  %v6693_v25 = vld [vmem:[#allocation17_spill] sm:$0xff] }
 0x2ee   :  { %2054 = vmatmul.bf16.gmra.mxu3 %v5540_v43 }
 0x2f0   :  { %1533 = vmatpush.bf16.msrb.mxu1 %v5525_v44  ;;  %v1446_v21 = vpop.f32.mrf.mxu0 }
 0x2f1   :  { %v5608_v30 = vpop.f32.mrf.mxu3 }
 0x2f3   :  { %1534 = vmatmul.bf16.vlgmr.msrb.gmra.mxu1 %v4987_v33  ;;  %1485 = vmatmul.bf16.gmra.mxu0 %v5287_v38 }
 0x2f8   :  { %v1448_v20 = vpop.f32.mrf.mxu0 }
 0x2f9   :  { %v5612_v42 = vpop.f32.mrf.mxu3 }
 0x2fe   :  { %2059 = vmatmul.bf16.gmra.mxu3 %v5547_v17 }
 0x300   :  { %v1451_v60 = vpop.f32.mrf.mxu0 }
 0x301   :  { %v5616_v40 = vpop.f32.mrf.mxu3 }
 0x303   :  { %1539 = vmatmul.bf16.gmra.mxu1 %v5034_v47  ;;  %1490 = vmatmul.bf16.gmra.mxu0 %v5317_v12 }
 0x308   :  { %v1453_v13 = vpop.f32.mrf.mxu0 }
 0x309   :  { %v5618_v6 = vpop.f32.mrf.mxu3 }
 0x30e   :  { %2064 = vmatmul.bf16.gmra.mxu3 %v5555_v1 }
 0x310   :  { %v1456_v51 = vpop.f32.mrf.mxu0 }
 0x313   :  { %1544 = vmatmul.bf16.gmra.mxu1 %v5079_v61  ;;  %1495 = vmatmul.bf16.gmra.mxu0 %v5345_v29 }
 0x318   :  { %v1458_v23 = vpop.f32.mrf.mxu0 }
 0x31e   :  { %2069 = vmatmul.bf16.gmra.mxu3 %v5563_v50 }
 0x320   :  { %v1461_v0 = vpop.f32.mrf.mxu0 }
 0x323   :  { %1549 = vmatmul.bf16.gmra.mxu1 %v5118_v10  ;;  %1500 = vmatmul.bf16.gmra.mxu0 %v5373_v63 }
 0x328   :  { %v1463_v43 = vpop.f32.mrf.mxu0 }
 0x32e   :  { %2074 = vmatmul.bf16.gmra.mxu3 %v5571_v35 }
 0x333   :  { %1554 = vmatmul.bf16.gmra.mxu1 %v5157_v26  ;;  %1505 = vmatmul.bf16.gmra.mxu0 %v4983_v32 }
 0x33e   :  { %2079 = vmatmul.bf16.gmra.mxu3 %v5577_v52 }
 0x343   :  { %1559 = vmatmul.bf16.gmra.mxu1 %v5190_v41  ;;  %1510 = vmatmul.bf16.gmra.mxu0 %v5032_v46 }
 0x353   :  { %1564 = vmatmul.bf16.gmra.mxu1 %v5223_v62  ;;  %1515 = vmatmul.bf16.gmra.mxu0 %v6689_v4 }
 0x363   :  { %1569 = vmatmul.bf16.gmra.mxu1 %v6688_v19  ;;  %1520 = vmatmul.bf16.gmra.mxu0 %v6693_v25 }
 0x370   :  { %v1535_v34 = vpop.f32.mrf.mxu1 }
 0x371   :  { %v1536_v58 = vadd.f32 %v1535_v34, %v1446_v21  ;;  %v6694_v21 = vld [vmem:[#allocation34_spill] sm:$0xff]  ;;  %v6695_v34 = vld [vmem:[#allocation35_spill] sm:$0xff] }
 0x373   :  { %1574 = vmatmul.bf16.gmra.mxu1 %v6690_v36  ;;  %v1615_v49 = vmul.f32 %v1536_v58, %v6691_v2 }
 0x375   :  { %v1647_v54 = vpack.c.bf16 %v1615_v49, %v1615_v49 }
 0x377   :  { %v1711_v35 = vunpack.c.l.b16 %v1647_v54 }
 0x378   :  { %v1537_v14 = vpop.f32.mrf.mxu1 }
 0x379   :  { %v1538_v16 = vadd.f32 %v1537_v14, %v1448_v20  ;;  %v1466_v14 = vpop.f32.mrf.mxu0 }
 0x37b   :  { %v1616_v22 = vmul.f32 %v1538_v16, %v6692_v37 }
 0x37d   :  { %v1648_v52 = vpack.c.bf16 %v1616_v22, %v1616_v22 }
 0x37f   :  { %v1712_v50 = vunpack.c.l.b16 %v1648_v52 }
 0x380   :  { %v1540_v1 = vpop.f32.mrf.mxu1 }
 0x381   :  { %v1743_v17 = vpack.c.b16 %v1712_v50, %v1711_v35  ;;  %v1541_v44 = vadd.f32 %v1540_v1, %v1451_v60  ;;  %v1468_v35 = vpop.f32.mrf.mxu0  ;;  %v6698_v1 = vld [vmem:[#allocation38_spill] sm:$0xff] }
 0x383   :  { %1579 = vmatmul.bf16.gmra.mxu1 %v6694_v21  ;;  %1915 = vmatmul.bf16.vlgmr.msrb.gmra.mxu2 %v1743_v17  ;;  %v1617_v58 = vmul.f32 %v1541_v44, %v6695_v34 }
 0x385   :  { %v1649_v49 = vpack.c.bf16 %v1617_v58, %v1617_v58 }
 0x387   :  { %v1713_v54 = vunpack.c.l.b16 %v1649_v49 }
 0x388   :  { %v1542_v5 = vpop.f32.mrf.mxu1 }
 0x389   :  { %v1543_v20 = vadd.f32 %v1542_v5, %v1453_v13  ;;  %v1471_v18 = vpop.f32.mrf.mxu0  ;;  %v6699_v13 = vld [vmem:[#allocation39_spill] sm:$0xff] }
 0x38b   :  { %v1618_v16 = vmul.f32 %v1543_v20, %v6696_v7 }
 0x38d   :  { %v1650_v22 = vpack.c.bf16 %v1618_v16, %v1618_v16 }
 0x38f   :  { %v1714_v52 = vunpack.c.l.b16 %v1650_v22 }
 0x390   :  { %v1545_v28 = vpop.f32.mrf.mxu1 }
 0x391   :  { %v1744_v50 = vpack.c.b16 %v1714_v52, %v1713_v54  ;;  %v1546_v9 = vadd.f32 %v1545_v28, %v1456_v51  ;;  %v1473_v7 = vpop.f32.mrf.mxu0  ;;  %v6700_v52 = vld [vmem:[#allocation40_spill] sm:$0xff]  ;;  %v6701_v28 = vld [vmem:[#allocation41_spill] sm:$0xff] }
 0x393   :  { %1584 = vmatmul.bf16.gmra.mxu1 %v6697_v53  ;;  %1920 = vmatmul.bf16.gmra.mxu2 %v1744_v50  ;;  %v1619_v17 = vmul.f32 %v1546_v9, %v6698_v1 }
 0x395   :  { %v1651_v5 = vpack.c.bf16 %v1619_v17, %v1619_v17 }
 0x397   :  { %v1715_v20 = vunpack.c.l.b16 %v1651_v5 }
 0x398   :  { %v1547_v60 = vpop.f32.mrf.mxu1 }
 0x399   :  { %v1548_v44 = vadd.f32 %v1547_v60, %v1458_v23  ;;  %v1476_v1 = vpop.f32.mrf.mxu0  ;;  %v6702_v60 = vld [vmem:[#allocation42_spill] sm:$0xff] }
 0x39b   :  { %v1620_v58 = vmul.f32 %v1548_v44, %v6699_v13 }
 0x39d   :  { %v1652_v34 = vpack.c.bf16 %v1620_v58, %v1620_v58 }
 0x39f   :  { %v1716_v16 = vunpack.c.l.b16 %v1652_v34 }
 0x3a0   :  { %v1550_v49 = vpop.f32.mrf.mxu1 }
 0x3a1   :  { %v1745_v22 = vpack.c.b16 %v1716_v16, %v1715_v20  ;;  %v1551_v54 = vadd.f32 %v1550_v49, %v1461_v0  ;;  %v6703_v20 = vld [vmem:[#allocation18_spill] sm:$0xff]  ;;  %v1478_v0 = vpop.f32.mrf.mxu0  ;;  %v6704_v16 = vld [vmem:[#allocation43_spill] sm:$0xff] }
 0x3a3   :  { %1589 = vmatmul.bf16.gmra.mxu1 %v6700_v52  ;;  %1925 = vmatmul.bf16.gmra.mxu2 %v1745_v22  ;;  %v1621_v51 = vmul.f32 %v1551_v54, %v6701_v28 }
 0x3a5   :  { %v1653_v23 = vpack.c.bf16 %v1621_v51, %v1621_v51 }
 0x3a7   :  { %v1717_v44 = vunpack.c.l.b16 %v1653_v23 }
 0x3a8   :  { %v1552_v50 = vpop.f32.mrf.mxu1 }
 0x3a9   :  { %v1553_v9 = vadd.f32 %v1552_v50, %v1463_v43  ;;  %v6705_v43 = vld [vmem:[#allocation44_spill] sm:$0xff]  ;;  %v1481_v52 = vpop.f32.mrf.mxu0 }
 0x3ab   :  { %v1622_v17 = vmul.f32 %v1553_v9, %v6702_v60 }
 0x3ad   :  { %v1654_v53 = vpack.c.bf16 %v1622_v17, %v1622_v17 }
 0x3af   :  { %v1718_v58 = vunpack.c.l.b16 %v1654_v53 }
 0x3b0   :  { %v1555_v5 = vpop.f32.mrf.mxu1 }
 0x3b1   :  { %v1746_v34 = vpack.c.b16 %v1718_v58, %v1717_v44  ;;  %v1556_v13 = vadd.f32 %v1555_v5, %v1466_v14  ;;  %v6706_v44 = vld [vmem:[#allocation19_spill] sm:$0xff]  ;;  %v6707_v14 = vld [vmem:[#allocation45_spill] sm:$0xff] }
 0x3b3   :  { %1594 = vmatmul.bf16.gmra.mxu1 %v6703_v20  ;;  %1930 = vmatmul.bf16.gmra.mxu2 %v1746_v34  ;;  %v1623_v49 = vmul.f32 %v1556_v13, %v6704_v16  ;;  %v1483_v34 = vpop.f32.mrf.mxu0 }
 0x3b5   :  { %v1655_v28 = vpack.c.bf16 %v1623_v49, %v1623_v49 }
 0x3b7   :  { %v1719_v9 = vunpack.c.l.b16 %v1655_v28 }
 0x3b8   :  { %v1557_v22 = vpop.f32.mrf.mxu1 }
 0x3b9   :  { %v1558_v54 = vadd.f32 %v1557_v22, %v1468_v35  ;;  %v6708_v35 = vld [vmem:[#allocation46_spill] sm:$0xff] }
 0x3bb   :  { %v1624_v50 = vmul.f32 %v1558_v54, %v6705_v43 }
 0x3bd   :  { %v1656_v51 = vpack.c.bf16 %v1624_v50, %v1624_v50 }
 0x3bf   :  { %v1720_v17 = vunpack.c.l.b16 %v1656_v51  ;;  %v1486_v51 = vpop.f32.mrf.mxu0 }
 0x3c0   :  { %v1560_v23 = vpop.f32.mrf.mxu1 }
 0x3c1   :  { %v1747_v53 = vpack.c.b16 %v1720_v17, %v1719_v9  ;;  %v1561_v60 = vadd.f32 %v1560_v23, %v1471_v18  ;;  %v6709_v9 = vld [vmem:[#allocation20_spill] sm:$0xff]  ;;  %v5647_v18 = vpop.f32.mrf.mxu3  ;;  %v6710_v17 = vld [vmem:[#allocation47_spill] sm:$0xff] }
 0x3c3   :  { %1599 = vmatmul.bf16.gmra.mxu1 %v6706_v44  ;;  %1935 = vmatmul.bf16.gmra.mxu2 %v1747_v53  ;;  %v1625_v58 = vmul.f32 %v1561_v60, %v6707_v14 }
 0x3c5   :  { %v1657_v16 = vpack.c.bf16 %v1625_v58, %v1625_v58  ;;  %v6711_v58 = vld [vmem:[#allocation48_spill] sm:$0xff] }
 0x3c7   :  { %v1721_v54 = vunpack.c.l.b16 %v1657_v16 }
 0x3c8   :  { %v1562_v5 = vpop.f32.mrf.mxu1 }
 0x3c9   :  { %v1563_v13 = vadd.f32 %v1562_v5, %v1473_v7 }
 0x3cb   :  { %v1626_v49 = vmul.f32 %v1563_v13, %v6708_v35  ;;  %v4464_v13 = vld [vmem:[#allocation8 + $0x78] sm:$0xff]  ;;  %v6712_v35 = vld [vmem:[#allocation22_spill] sm:$0xff] }
 0x3cc   :  { %2804 = vmatpush.bf16.msrb.mxu3 %v4464_v13 }
 0x3cd   :  { %v1658_v22 = vpack.c.bf16 %v1626_v49, %v1626_v49  ;;  %v1488_v49 = vpop.f32.mrf.mxu0 }
 0x3cf   :  { %v1722_v50 = vunpack.c.l.b16 %v1658_v22 }
 0x3d0   :  { %v1565_v43 = vpop.f32.mrf.mxu1 }
 0x3d1   :  { %v1748_v28 = vpack.c.b16 %v1722_v50, %v1721_v54  ;;  %v1566_v20 = vadd.f32 %v1565_v43, %v1476_v1  ;;  %v4463_v50 = vld [vmem:[#allocation8 + $0x70] sm:$0xff]  ;;  %v5651_v43 = vpop.f32.mrf.mxu3 }
 0x3d2   :  { %2805 = vmatpush.bf16.msrb.mxu3 %v4463_v50 }
 0x3d3   :  { %1604 = vmatmul.bf16.gmra.mxu1 %v6709_v9  ;;  %1940 = vmatmul.bf16.gmra.mxu2 %v1748_v28  ;;  %v1627_v60 = vmul.f32 %v1566_v20, %v6710_v17  ;;  %v4462_v20 = vld [vmem:[#allocation8 + $0x68] sm:$0xff] }
 0x3d5   :  { %v1659_v7 = vpack.c.bf16 %v1627_v60, %v1627_v60  ;;  %v6713_v60 = vld [vmem:[#allocation49_spill] sm:$0xff] }
 0x3d6   :  { %2806 = vmatpush.bf16.msrb.mxu3 %v4462_v20 }
 0x3d7   :  { %v1723_v22 = vunpack.c.l.b16 %v1659_v7 }
 0x3d8   :  { %v1567_v23 = vpop.f32.mrf.mxu1 }
 0x3d9   :  { %v1568_v53 = vadd.f32 %v1567_v23, %v1478_v0  ;;  %v1491_v0 = vpop.f32.mrf.mxu0  ;;  %v5655_v7 = vpop.f32.mrf.mxu3 }
 0x3db   :  { %v1628_v5 = vmul.f32 %v1568_v53, %v6711_v58  ;;  %v4461_v53 = vld [vmem:[#allocation8 + $0x60] sm:$0xff]  ;;  %v6714_v58 = vld [vmem:[#allocation50_spill] sm:$0xff] }
 0x3dc   :  { %2807 = vmatpush.bf16.msrb.mxu3 %v4461_v53  ;;  %v6715_v53 = vld [vmem:[#allocation51_spill] sm:$0xff] }
 0x3dd   :  { %v1660_v16 = vpack.c.bf16 %v1628_v5, %v1628_v5 }
 0x3df   :  { %v1724_v54 = vunpack.c.l.b16 %v1660_v16 }
 0x3e0   :  { %v1570_v1 = vpop.f32.mrf.mxu1 }
 0x3e1   :  { %v1749_v28 = vpack.c.b16 %v1724_v54, %v1723_v22  ;;  %v1571_v9 = vadd.f32 %v1570_v1, %v1481_v52  ;;  %v4460_v22 = vld [vmem:[#allocation8 + $0x58] sm:$0xff]  ;;  %v4459_v1 = vld [vmem:[#allocation8 + $0x50] sm:$0xff]  ;;  %v1493_v20 = vpop.f32.mrf.mxu0 }
 0x3e2   :  { %2808 = vmatpush.bf16.msrb.mxu3 %v4460_v22  ;;  %v6716_v22 = vld [vmem:[#allocation52_spill] sm:$0xff] }
 0x3e3   :  { %1609 = vmatmul.bf16.gmra.mxu1 %v6712_v35  ;;  %1945 = vmatmul.bf16.gmra.mxu2 %v1749_v28  ;;  %v1629_v23 = vmul.f32 %v1571_v9, %v6713_v60  ;;  %v4458_v60 = vld [vmem:[#allocation8 + $0x48] sm:$0xff] }
 0x3e5   :  { %v1661_v16 = vpack.c.bf16 %v1629_v23, %v1629_v23 }
 0x3e6   :  { %2809 = vmatpush.bf16.msrb.mxu3 %v4459_v1 }
 0x3e7   :  { %v1725_v52 = vunpack.c.l.b16 %v1661_v16 }
 0x3e8   :  { %v1572_v5 = vpop.f32.mrf.mxu1 }
 0x3e9   :  { %v1573_v13 = vadd.f32 %v1572_v5, %v1483_v34  ;;  %v5658_v34 = vpop.f32.mrf.mxu3  ;;  %v4457_v5 = vld [vmem:[#allocation8 + $0x40] sm:$0xff] }
 0x3ea   :  { %2810 = vmatpush.bf16.msrb.mxu3 %v4458_v60  ;;  %v5667_v60 = vld [vmem:[%s6521_s6] ss:$0 sm:$0xff] }
 0x3eb   :  { %v1630_v17 = vmul.f32 %v1573_v13, %v6714_v58 }
 0x3ed   :  { %v1662_v54 = vpack.c.bf16 %v1630_v17, %v1630_v17  ;;  %v1496_v17 = vpop.f32.mrf.mxu0 }
 0x3ee   :  { %2811 = vmatpush.bf16.msrb.mxu3 %v4457_v5 }
 0x3ef   :  { %v1726_v50 = vunpack.c.l.b16 %v1662_v54 }
 0x3f0   :  { %v1575_v28 = vpop.f32.mrf.mxu1 }
 0x3f1   :  { %v1750_v35 = vpack.c.b16 %v1726_v50, %v1725_v52  ;;  %v1576_v9 = vadd.f32 %v1575_v28, %v1486_v51  ;;  %v5662_v44 = vpop.f32.mrf.mxu3 }
 0x3f3   :  { %1950 = vmatmul.bf16.gmra.mxu2 %v1750_v35  ;;  %v1631_v23 = vmul.f32 %v1576_v9, %v6715_v53  ;;  %v6717_v9 = vld [vmem:[#allocation53_spill] sm:$0xff] }
 0x3f5   :  { %v1663_v16 = vpack.c.bf16 %v1631_v23, %v1631_v23 }
 0x3f7   :  { %v1727_v52 = vunpack.c.l.b16 %v1663_v16 }
 0x3f8   :  { %v1577_v13 = vpop.f32.mrf.mxu1 }
 0x3f9   :  { %v1578_v58 = vadd.f32 %v1577_v13, %v1488_v49  ;;  %v1498_v49 = vpop.f32.mrf.mxu0  ;;  %v5671_v13 = vpop.f32.mrf.mxu3 }
 0x3fb   :  { %v1632_v54 = vmul.f32 %v1578_v58, %v6716_v22 }
 0x3fd   :  { %v1664_v14 = vpack.c.bf16 %v1632_v54, %v1632_v54 }
 0x3ff   :  { %v1728_v51 = vunpack.c.l.b16 %v1664_v14 }
 0x400   :  { %v1580_v35 = vpop.f32.mrf.mxu1 }
 0x401   :  { %v1751_v50 = vpack.c.b16 %v1728_v51, %v1727_v52  ;;  %v1581_v1 = vadd.f32 %v1580_v35, %v1491_v0  ;;  %v6718_v0 = vld [vmem:[#allocation54_spill] sm:$0xff]  ;;  %v5677_v37 = vpop.f32.mrf.mxu3 }
 0x403   :  { %1955 = vmatmul.bf16.gmra.mxu2 %v1751_v50  ;;  %v1633_v23 = vmul.f32 %v1581_v1, %v6717_v9  ;;  %v1501_v50 = vpop.f32.mrf.mxu0 }
 0x405   :  { %v1665_v14 = vpack.c.bf16 %v1633_v23, %v1633_v23 }
 0x406   :  { %v1916_v28 = vpop.f32.mrf.mxu2 }
 0x407   :  { %v1917_v58 = vadd.f32 %v5667_v60, %v1916_v28  ;;  %v1729_v22 = vunpack.c.l.b16 %v1665_v14 }
 0x408   :  { %v1582_v5 = vpop.f32.mrf.mxu1 }
 0x409   :  { %v1583_v16 = vadd.f32 %v1582_v5, %v1493_v20  ;;  %v2006_v54 = vadd.f32 %v5593_v55, %v1917_v58 }
 0x40b   :  { %v1634_v52 = vmul.f32 %v1583_v16, %v6718_v0  ;;  %v2085_v53 = vmax.f32 %v2006_v54, 0.0  ;;  %v6719_v0 = vld [vmem:[#allocation55_spill] sm:$0xff] }
 0x40d   :  { %v1666_v51 = vpack.c.bf16 %v1634_v52, %v1634_v52  ;;  %v2117_v20 = vpack.c.bf16 %v2085_v53, %v2085_v53  ;;  %v6720_v53 = vld [vmem:[#allocation56_spill] sm:$0xff] }
 0x40e   :  { %v1918_v35 = vpop.f32.mrf.mxu2 }
 0x40f   :  { %v1730_v27 = vunpack.c.l.b16 %v1666_v51  ;;  %v1919_v21 = vadd.f32 %v5667_v60, %v1918_v35  ;;  %v2181_v16 = vunpack.c.l.b16 %v2117_v20  ;;  %v1503_v35 = vpop.f32.mrf.mxu0 }
 0x410   :  { %v1585_v1 = vpop.f32.mrf.mxu1 }
 0x411   :  { %v2008_v28 = vadd.f32 %v5596_v48, %v1919_v21  ;;  %v1752_v9 = vpack.c.b16 %v1730_v27, %v1729_v22  ;;  %v1586_v5 = vadd.f32 %v1585_v1, %v1496_v17  ;;  %v5686_v17 = vpop.f32.mrf.mxu3 }
 0x413   :  { %v2086_v23 = vmax.f32 %v2008_v28, 0.0  ;;  %1960 = vmatmul.bf16.gmra.mxu2 %v1752_v9  ;;  %v1635_v14 = vmul.f32 %v1586_v5, %v6719_v0 }
 0x415   :  { %v2118_v55 = vpack.c.bf16 %v2086_v23, %v2086_v23  ;;  %v1667_v27 = vpack.c.bf16 %v1635_v14, %v1635_v14 }
 0x416   :  { %v1921_v58 = vpop.f32.mrf.mxu2 }
 0x417   :  { %v2182_v52 = vunpack.c.l.b16 %v2118_v55  ;;  %v1922_v54 = vadd.f32 %v5667_v60, %v1921_v58  ;;  %v1731_v28 = vunpack.c.l.b16 %v1667_v27  ;;  %v6721_v27 = vld [vmem:[#allocation57_spill] sm:$0xff] }
 0x418   :  { %v1587_v51 = vpop.f32.mrf.mxu1 }
 0x419   :  { %v5681_v2 = vpack.c.b16 %v2182_v52, %v2181_v16  ;;  %v1588_v48 = vadd.f32 %v1587_v51, %v1498_v49  ;;  %v2011_v21 = vadd.f32 %v5600_v3, %v1922_v54  ;;  %v1506_v16 = vpop.f32.mrf.mxu0 }
 0x41b   :  { %v1636_v22 = vmul.f32 %v1588_v48, %v6720_v53  ;;  %2812 = vmatmul.bf16.vlgmr.msrb.gmra.mxu3 %v5681_v2  ;;  %v2087_v20 = vmax.f32 %v2011_v21, 0.0  ;;  %v5690_v48 = vpop.f32.mrf.mxu3 }
 0x41d   :  { %v1668_v9 = vpack.c.bf16 %v1636_v22, %v1636_v22  ;;  %v2119_v52 = vpack.c.bf16 %v2087_v20, %v2087_v20  ;;  %v6722_v20 = vld [vmem:[#allocation58_spill] sm:$0xff] }
 0x41e   :  { %v1923_v1 = vpop.f32.mrf.mxu2 }
 0x41f   :  { %v1732_v23 = vunpack.c.l.b16 %v1668_v9  ;;  %v1924_v5 = vadd.f32 %v5667_v60, %v1923_v1  ;;  %v2183_v22 = vunpack.c.l.b16 %v2119_v52 }
 0x420   :  { %v1590_v55 = vpop.f32.mrf.mxu1 }
 0x421   :  { %v2013_v58 = vadd.f32 %v5605_v11, %v1924_v5  ;;  %v1753_v49 = vpack.c.b16 %v1732_v23, %v1731_v28  ;;  %v1591_v14 = vadd.f32 %v1590_v55, %v1501_v50  ;;  %v1508_v23 = vpop.f32.mrf.mxu0 }
 0x423   :  { %v2088_v3 = vmax.f32 %v2013_v58, 0.0  ;;  %1965 = vmatmul.bf16.gmra.mxu2 %v1753_v49  ;;  %v1637_v21 = vmul.f32 %v1591_v14, %v6721_v27 }
 0x425   :  { %v2120_v54 = vpack.c.bf16 %v2088_v3, %v2088_v3  ;;  %v1669_v11 = vpack.c.bf16 %v1637_v21, %v1637_v21 }
 0x426   :  { %v1926_v51 = vpop.f32.mrf.mxu2 }
 0x427   :  { %v2184_v53 = vunpack.c.l.b16 %v2120_v54  ;;  %v1927_v9 = vadd.f32 %v5667_v60, %v1926_v51  ;;  %v1733_v58 = vunpack.c.l.b16 %v1669_v11  ;;  %v5700_v54 = vpop.f32.mrf.mxu3  ;;  %v6723_v11 = vld [vmem:[#allocation21_spill] sm:$0xff] }
 0x428   :  { %v1592_v1 = vpop.f32.mrf.mxu1 }
 0x429   :  { %v1593_v0 = vadd.f32 %v1592_v1, %v1503_v35  ;;  %v5694_v57 = vpack.c.b16 %v2184_v53, %v2183_v22  ;;  %v2016_v28 = vadd.f32 %v5608_v30, %v1927_v9  ;;  %v1511_v9 = vpop.f32.mrf.mxu0 }
 0x42b   :  { %v1638_v50 = vmul.f32 %v1593_v0, %v6722_v20  ;;  %2817 = vmatmul.bf16.gmra.mxu3 %v5694_v57  ;;  %v2089_v49 = vmax.f32 %v2016_v28, 0.0 }
 0x42d   :  { %v1670_v5 = vpack.c.bf16 %v1638_v50, %v1638_v50  ;;  %v2121_v51 = vpack.c.bf16 %v2089_v49, %v2089_v49 }
 0x42e   :  { %v1928_v55 = vpop.f32.mrf.mxu2 }
 0x42f   :  { %v1734_v52 = vunpack.c.l.b16 %v1670_v5  ;;  %v1929_v3 = vadd.f32 %v5667_v60, %v1928_v55  ;;  %v2185_v1 = vunpack.c.l.b16 %v2121_v51  ;;  %v5707_v36 = vpop.f32.mrf.mxu3 }
 0x430   :  { %v1595_v14 = vpop.f32.mrf.mxu1 }
 0x431   :  { %v2018_v35 = vadd.f32 %v5612_v42, %v1929_v3  ;;  %v1754_v53 = vpack.c.b16 %v1734_v52, %v1733_v58  ;;  %v1596_v22 = vadd.f32 %v1595_v14, %v1506_v16  ;;  %v6724_v16 = vld [vmem:[#allocation26_spill] sm:$0xff] }
 0x433   :  { %v2090_v30 = vmax.f32 %v2018_v35, 0.0  ;;  %1970 = vmatmul.bf16.gmra.mxu2 %v1754_v53  ;;  %v1639_v28 = vmul.f32 %v1596_v22, %v6723_v11 }
 0x435   :  { %v2122_v0 = vpack.c.bf16 %v2090_v30, %v2090_v30  ;;  %v1671_v42 = vpack.c.bf16 %v1639_v28, %v1639_v28  ;;  %v1513_v30 = vpop.f32.mrf.mxu0 }
 0x436   :  { %v1931_v21 = vpop.f32.mrf.mxu2 }
 0x437   :  { %v2186_v50 = vunpack.c.l.b16 %v2122_v0  ;;  %v1932_v5 = vadd.f32 %v5667_v60, %v1931_v21  ;;  %v1735_v14 = vunpack.c.l.b16 %v1671_v42  ;;  %v6725_v42 = vld [vmem:[#allocation25_spill] sm:$0xff] }
 0x438   :  { %v1597_v55 = vpop.f32.mrf.mxu1 }
 0x439   :  { %v1598_v20 = vadd.f32 %v1597_v55, %v1508_v23  ;;  %v5705_v27 = vpack.c.b16 %v2186_v50, %v2185_v1  ;;  %v2021_v58 = vadd.f32 %v5616_v40, %v1932_v5  ;;  %v5714_v40 = vpop.f32.mrf.mxu3 }
 0x43b   :  { %v1640_v49 = vmul.f32 %v1598_v20, %v6724_v16  ;;  %2822 = vmatmul.bf16.gmra.mxu3 %v5705_v27  ;;  %v2091_v35 = vmax.f32 %v2021_v58, 0.0 }
 0x43d   :  { %v1672_v52 = vpack.c.bf16 %v1640_v49, %v1640_v49  ;;  %v2123_v21 = vpack.c.bf16 %v2091_v35, %v2091_v35 }
 0x43e   :  { %v1933_v3 = vpop.f32.mrf.mxu2 }
 0x43f   :  { %v1736_v53 = vunpack.c.l.b16 %v1672_v52  ;;  %v1934_v51 = vadd.f32 %v5667_v60, %v1933_v3  ;;  %v2187_v5 = vunpack.c.l.b16 %v2123_v21 }
 0x440   :  { %v1600_v23 = vpop.f32.mrf.mxu1 }
 0x441   :  { %v2023_v22 = vadd.f32 %v5618_v6, %v1934_v51  ;;  %v1755_v0 = vpack.c.b16 %v1736_v53, %v1735_v14  ;;  %v1601_v50 = vadd.f32 %v1600_v23, %v1511_v9  ;;  %v1516_v6 = vpop.f32.mrf.mxu0  ;;  %v6726_v9 = vld [vmem:[#allocation28_spill] sm:$0xff] }
 0x443   :  { %v2092_v1 = vmax.f32 %v2023_v22, 0.0  ;;  %1975 = vmatmul.bf16.gmra.mxu2 %v1755_v0  ;;  %v1641_v58 = vmul.f32 %v1601_v50, %v6725_v42  ;;  %v5723_v22 = vpop.f32.mrf.mxu3 }
 0x445   :  { %v2124_v20 = vpack.c.bf16 %v2092_v1, %v2092_v1  ;;  %v1673_v14 = vpack.c.bf16 %v1641_v58, %v1641_v58 }
 0x446   :  { %v1936_v28 = vpop.f32.mrf.mxu2 }
 0x447   :  { %v2188_v55 = vunpack.c.l.b16 %v2124_v20  ;;  %v1937_v49 = vadd.f32 %v5667_v60, %v1936_v28  ;;  %v1737_v0 = vunpack.c.l.b16 %v1673_v14 }
 0x448   :  { %v1602_v52 = vpop.f32.mrf.mxu1 }
 0x449   :  { %v1603_v3 = vadd.f32 %v1602_v52, %v1513_v30  ;;  %v5718_v16 = vpack.c.b16 %v2188_v55, %v2187_v5  ;;  %v2026_v35 = vadd.f32 %v5647_v18, %v1937_v49  ;;  %v1518_v58 = vpop.f32.mrf.mxu0 }
 0x44b   :  { %v1642_v53 = vmul.f32 %v1603_v3, %v6726_v9  ;;  %2827 = vmatmul.bf16.gmra.mxu3 %v5718_v16  ;;  %v2093_v21 = vmax.f32 %v2026_v35, 0.0  ;;  %v6727_v9 = vld [vmem:[#allocation23_spill] sm:$0xff] }
 0x44d   :  { %v1674_v51 = vpack.c.bf16 %v1642_v53, %v1642_v53  ;;  %v2125_v5 = vpack.c.bf16 %v2093_v21, %v2093_v21 }
 0x44e   :  { %v1938_v23 = vpop.f32.mrf.mxu2 }
 0x44f   :  { %v1738_v1 = vunpack.c.l.b16 %v1674_v51  ;;  %v1939_v50 = vadd.f32 %v5667_v60, %v1938_v23  ;;  %v2189_v3 = vunpack.c.l.b16 %v2125_v5  ;;  %v5729_v51 = vpop.f32.mrf.mxu3 }
 0x450   :  { %v1605_v30 = vpop.f32.mrf.mxu1 }
 0x451   :  { %v2028_v20 = vadd.f32 %v5651_v43, %v1939_v50  ;;  %v1756_v28 = vpack.c.b16 %v1738_v1, %v1737_v0  ;;  %v1606_v18 = vadd.f32 %v1605_v30, %v1516_v6  ;;  %v6728_v6 = vld [vmem:[#allocation27_spill] sm:$0xff]  ;;  %v1521_v50 = vpop.f32.mrf.mxu0 }
 0x453   :  { %v2094_v55 = vmax.f32 %v2028_v20, 0.0  ;;  %1980 = vmatmul.bf16.gmra.mxu2 %v1756_v28  ;;  %v1643_v42 = vmul.f32 %v1606_v18, %v6727_v9 }
 0x455   :  { %v2126_v49 = vpack.c.bf16 %v2094_v55, %v2094_v55  ;;  %v1675_v43 = vpack.c.bf16 %v1643_v42, %v1643_v42 }
 0x456   :  { %v1941_v52 = vpop.f32.mrf.mxu2 }
 0x457   :  { %v2190_v53 = vunpack.c.l.b16 %v2126_v49  ;;  %v1942_v14 = vadd.f32 %v5667_v60, %v1941_v52  ;;  %v1739_v20 = vunpack.c.l.b16 %v1675_v43  ;;  %v5738_v52 = vpop.f32.mrf.mxu3 }
 0x458   :  { %v1607_v35 = vpop.f32.mrf.mxu1 }
 0x459   :  { %v1608_v23 = vadd.f32 %v1607_v35, %v1518_v58  ;;  %v5731_v11 = vpack.c.b16 %v2190_v53, %v2189_v3  ;;  %v2031_v0 = vadd.f32 %v5655_v7, %v1942_v14 }
 0x45b   :  { %v1644_v21 = vmul.f32 %v1608_v23, %v6728_v6  ;;  %2832 = vmatmul.bf16.gmra.mxu3 %v5731_v11  ;;  %v2095_v28 = vmax.f32 %v2031_v0, 0.0 }
 0x45d   :  { %v1676_v1 = vpack.c.bf16 %v1644_v21, %v1644_v21  ;;  %v2127_v42 = vpack.c.bf16 %v2095_v28, %v2095_v28  ;;  %v6729_v21 = vld [vmem:[#allocation29_spill] sm:$0xff]  ;;  %v6730_v28 = vld [vmem:[#allocation32_spill] sm:$0xff] }
 0x45e   :  { %v1943_v30 = vpop.f32.mrf.mxu2 }
 0x45f   :  { %v1740_v5 = vunpack.c.l.b16 %v1676_v1  ;;  %v1944_v55 = vadd.f32 %v5667_v60, %v1943_v30  ;;  %v2191_v35 = vunpack.c.l.b16 %v2127_v42  ;;  %v1523_v1 = vpop.f32.mrf.mxu0 }
 0x460   :  { %v1610_v18 = vpop.f32.mrf.mxu1 }
 0x461   :  { %v2033_v58 = vadd.f32 %v5658_v34, %v1944_v55  ;;  %v1757_v49 = vpack.c.b16 %v1740_v5, %v1739_v20  ;;  %v1611_v3 = vadd.f32 %v1610_v18, %v1521_v50  ;;  %v5747_v50 = vpop.f32.mrf.mxu3 }
 0x463   :  { %v2096_v7 = vmax.f32 %v2033_v58, 0.0  ;;  %1985 = vmatmul.bf16.gmra.mxu2 %v1757_v49  ;;  %v1645_v43 = vmul.f32 %v1611_v3, %v6729_v21 }
 0x465   :  { %v2128_v53 = vpack.c.bf16 %v2096_v7, %v2096_v7  ;;  %v1677_v34 = vpack.c.bf16 %v1645_v43, %v1645_v43 }
 0x466   :  { %v1946_v14 = vpop.f32.mrf.mxu2 }
 0x467   :  { %v2192_v23 = vunpack.c.l.b16 %v2128_v53  ;;  %v1947_v0 = vadd.f32 %v5667_v60, %v1946_v14  ;;  %v1741_v58 = vunpack.c.l.b16 %v1677_v34 }
 0x468   :  { %v1612_v30 = vpop.f32.mrf.mxu1 }
 0x469   :  { %v1613_v6 = vadd.f32 %v1612_v30, %v1523_v1  ;;  %v5742_v9 = vpack.c.b16 %v2192_v23, %v2191_v35  ;;  %v2036_v20 = vadd.f32 %v5662_v44, %v1947_v0 }
 0x46b   :  { %v1646_v5 = vmul.f32 %v1613_v6, %v6730_v28  ;;  %2837 = vmatmul.bf16.gmra.mxu3 %v5742_v9  ;;  %v2097_v49 = vmax.f32 %v2036_v20, 0.0  ;;  %v5751_v6 = vpop.f32.mrf.mxu3 }
 0x46d   :  { %v1678_v55 = vpack.c.bf16 %v1646_v5, %v1646_v5  ;;  %v2129_v14 = vpack.c.bf16 %v2097_v49, %v2097_v49 }
 0x46e   :  { %v1948_v18 = vpop.f32.mrf.mxu2 }
 0x46f   :  { %v1742_v42 = vunpack.c.l.b16 %v1678_v55  ;;  %v1949_v7 = vadd.f32 %v5667_v60, %v1948_v18  ;;  %v2193_v43 = vunpack.c.l.b16 %v2129_v14 }
 0x471   :  { %v2038_v3 = vadd.f32 %v5671_v13, %v1949_v7  ;;  %v1758_v53 = vpack.c.b16 %v1742_v42, %v1741_v58 }
 0x473   :  { %v2098_v35 = vmax.f32 %v2038_v3, 0.0  ;;  %1990 = vmatmul.bf16.gmra.mxu2 %v1758_v53  ;;  %v5759_v55 = vpop.f32.mrf.mxu3 }
 0x475   :  { %v2130_v44 = vpack.c.bf16 %v2098_v35, %v2098_v35 }
 0x476   :  { %v1951_v23 = vpop.f32.mrf.mxu2 }
 0x477   :  { %v2194_v0 = vunpack.c.l.b16 %v2130_v44  ;;  %v1952_v1 = vadd.f32 %v5667_v60, %v1951_v23 }
 0x479   :  { %v5754_v30 = vpack.c.b16 %v2194_v0, %v2193_v43  ;;  %v2041_v34 = vadd.f32 %v5677_v37, %v1952_v1 }
 0x47b   :  { %2842 = vmatmul.bf16.gmra.mxu3 %v5754_v30  ;;  %v2099_v13 = vmax.f32 %v2041_v34, 0.0  ;;  %v5765_v37 = vpop.f32.mrf.mxu3 }
 0x47d   :  { %v2131_v58 = vpack.c.bf16 %v2099_v13, %v2099_v13 }
 0x47e   :  { %v1953_v20 = vpop.f32.mrf.mxu2 }
 0x47f   :  { %v1954_v5 = vadd.f32 %v5667_v60, %v1953_v20  ;;  %v2195_v3 = vunpack.c.l.b16 %v2131_v58 }
 0x481   :  { %v2043_v18 = vadd.f32 %v5686_v17, %v1954_v5 }
 0x483   :  { %v2100_v49 = vmax.f32 %v2043_v18, 0.0  ;;  %v5774_v20 = vpop.f32.mrf.mxu3 }
 0x485   :  { %v2132_v42 = vpack.c.bf16 %v2100_v49, %v2100_v49 }
 0x486   :  { %v1956_v7 = vpop.f32.mrf.mxu2 }
 0x487   :  { %v2196_v53 = vunpack.c.l.b16 %v2132_v42  ;;  %v1957_v14 = vadd.f32 %v5667_v60, %v1956_v7 }
 0x489   :  { %v5763_v35 = vpack.c.b16 %v2196_v53, %v2195_v3  ;;  %v2046_v44 = vadd.f32 %v5690_v48, %v1957_v14 }
 0x48b   :  { %2245 = vmatpush.bf16.msra.mxu0 %v5763_v35  ;;  %2847 = vmatmul.bf16.gmra.mxu3 %v5763_v35  ;;  %v2101_v17 = vmax.f32 %v2046_v44, 0.0  ;;  %v5783_v7 = vpop.f32.mrf.mxu3 }
 0x48d   :  { %v2133_v1 = vpack.c.bf16 %v2101_v17, %v2101_v17 }
 0x48e   :  { %v1958_v23 = vpop.f32.mrf.mxu2 }
 0x48f   :  { %v1959_v43 = vadd.f32 %v5667_v60, %v1958_v23  ;;  %2246 = vmatpush.bf16.msra.mxu0 %v5754_v30  ;;  %v2197_v5 = vunpack.c.l.b16 %v2133_v1 }
 0x491   :  { %v2048_v0 = vadd.f32 %v5700_v54, %v1959_v43 }
 0x493   :  { %v2102_v34 = vmax.f32 %v2048_v0, 0.0  ;;  %2247 = vmatpush.bf16.msra.mxu0 %v5742_v9 }
 0x495   :  { %v2134_v13 = vpack.c.bf16 %v2102_v34, %v2102_v34  ;;  %v5791_v34 = vpop.f32.mrf.mxu3 }
 0x496   :  { %v1961_v48 = vpop.f32.mrf.mxu2 }
 0x497   :  { %v2198_v18 = vunpack.c.l.b16 %v2134_v13  ;;  %v1962_v58 = vadd.f32 %v5667_v60, %v1961_v48  ;;  %2248 = vmatpush.bf16.msra.mxu0 %v5731_v11 }
 0x499   :  { %v5778_v49 = vpack.c.b16 %v2198_v18, %v2197_v5  ;;  %v2051_v42 = vadd.f32 %v5707_v36, %v1962_v58 }
 0x49b   :  { %2249 = vmatpush.bf16.msra.mxu0 %v5718_v16  ;;  %2852 = vmatmul.bf16.gmra.mxu3 %v5778_v49  ;;  %v2103_v3 = vmax.f32 %v2051_v42, 0.0 }
 0x49d   :  { %v2135_v44 = vpack.c.bf16 %v2103_v3, %v2103_v3  ;;  %v5800_v42 = vpop.f32.mrf.mxu3 }
 0x49e   :  { %v1963_v54 = vpop.f32.mrf.mxu2 }
 0x49f   :  { %v1964_v53 = vadd.f32 %v5667_v60, %v1963_v54  ;;  %2250 = vmatpush.bf16.msra.mxu0 %v5705_v27  ;;  %v2199_v43 = vunpack.c.l.b16 %v2135_v44 }
 0x4a1   :  { %v2053_v14 = vadd.f32 %v5714_v40, %v1964_v53 }
 0x4a3   :  { %v2104_v23 = vmax.f32 %v2053_v14, 0.0  ;;  %2251 = vmatpush.bf16.msra.mxu0 %v5694_v57 }
 0x4a5   :  { %v2136_v17 = vpack.c.bf16 %v2104_v23, %v2104_v23 }
 0x4a6   :  { %v1966_v36 = vpop.f32.mrf.mxu2 }
 0x4a7   :  { %v2200_v0 = vunpack.c.l.b16 %v2136_v17  ;;  %v1967_v1 = vadd.f32 %v5667_v60, %v1966_v36  ;;  %2252 = vmatpush.bf16.msra.mxu0 %v5681_v2  ;;  %v5808_v36 = vpop.f32.mrf.mxu3 }
 0x4a9   :  { %v5793_v13 = vpack.c.b16 %v2200_v0, %v2199_v43  ;;  %v2056_v40 = vadd.f32 %v5723_v22, %v1967_v1 }
 0x4aa   :  { %2253 = vmatmul.bf16.vlgmr.msra.gmra.mxu0 %v4981_v31 }
 0x4ab   :  { %2857 = vmatmul.bf16.gmra.mxu3 %v5793_v13  ;;  %v2105_v5 = vmax.f32 %v2056_v40, 0.0 }
 0x4ad   :  { %v2137_v54 = vpack.c.bf16 %v2105_v5, %v2105_v5 }
 0x4ae   :  { %v1968_v48 = vpop.f32.mrf.mxu2 }
 0x4af   :  { %v1969_v18 = vadd.f32 %v5667_v60, %v1968_v48  ;;  %v2201_v44 = vunpack.c.l.b16 %v2137_v54  ;;  %v5812_v5 = vpop.f32.mrf.mxu3 }
 0x4b1   :  { %v2058_v58 = vadd.f32 %v5729_v51, %v1969_v18 }
 0x4b3   :  { %v2106_v3 = vmax.f32 %v2058_v58, 0.0 }
 0x4b5   :  { %v2138_v53 = vpack.c.bf16 %v2106_v3, %v2106_v3 }
 0x4b6   :  { %v1971_v14 = vpop.f32.mrf.mxu2 }
 0x4b7   :  { %v2202_v23 = vunpack.c.l.b16 %v2138_v53  ;;  %v1972_v31 = vadd.f32 %v5667_v60, %v1971_v14 }
 0x4b9   :  { %v5803_v17 = vpack.c.b16 %v2202_v23, %v2201_v44  ;;  %v2061_v22 = vadd.f32 %v5738_v52, %v1972_v31 }
 0x4ba   :  { %2258 = vmatmul.bf16.gmra.mxu0 %v5030_v45 }
 0x4bb   :  { %2862 = vmatmul.bf16.gmra.mxu3 %v5803_v17  ;;  %v2107_v43 = vmax.f32 %v2061_v22, 0.0 }
 0x4bd   :  { %v2139_v40 = vpack.c.bf16 %v2107_v43, %v2107_v43 }
 0x4be   :  { %v1973_v51 = vpop.f32.mrf.mxu2 }
 0x4bf   :  { %v1974_v0 = vadd.f32 %v5667_v60, %v1973_v51  ;;  %v2203_v54 = vunpack.c.l.b16 %v2139_v40 }
 0x4c1   :  { %v2063_v1 = vadd.f32 %v5747_v50, %v1974_v0  ;;  %v5820_v50 = vpop.f32.mrf.mxu3 }
 0x4c3   :  { %v2108_v48 = vmax.f32 %v2063_v1, 0.0 }
 0x4c5   :  { %v2140_v18 = vpack.c.bf16 %v2108_v48, %v2108_v48 }
 0x4c6   :  { %v1976_v58 = vpop.f32.mrf.mxu2 }
 0x4c7   :  { %v2204_v45 = vunpack.c.l.b16 %v2140_v18  ;;  %v1977_v52 = vadd.f32 %v5667_v60, %v1976_v58 }
 0x4c9   :  { %v5815_v3 = vpack.c.b16 %v2204_v45, %v2203_v54  ;;  %v2066_v53 = vadd.f32 %v5751_v6, %v1977_v52  ;;  %v5825_v48 = vpop.f32.mrf.mxu3 }
 0x4ca   :  { %2263 = vmatmul.bf16.gmra.mxu0 %v5075_v59 }
 0x4cb   :  { %2867 = vmatmul.bf16.gmra.mxu3 %v5815_v3  ;;  %v2109_v44 = vmax.f32 %v2066_v53, 0.0 }
 0x4cd   :  { %v2141_v22 = vpack.c.bf16 %v2109_v44, %v2109_v44 }
 0x4ce   :  { %v1978_v14 = vpop.f32.mrf.mxu2 }
 0x4cf   :  { %v1979_v23 = vadd.f32 %v5667_v60, %v1978_v14  ;;  %v2205_v1 = vunpack.c.l.b16 %v2141_v22 }
 0x4d1   :  { %v2068_v31 = vadd.f32 %v5759_v55, %v1979_v23  ;;  %v5834_v52 = vpop.f32.mrf.mxu3 }
 0x4d3   :  { %v2110_v51 = vmax.f32 %v2068_v31, 0.0 }
 0x4d5   :  { %v2142_v43 = vpack.c.bf16 %v2110_v51, %v2110_v51 }
 0x4d6   :  { %v1981_v0 = vpop.f32.mrf.mxu2 }
 0x4d7   :  { %v2206_v40 = vunpack.c.l.b16 %v2142_v43  ;;  %v1982_v59 = vadd.f32 %v5667_v60, %v1981_v0 }
 0x4d9   :  { %v5827_v6 = vpack.c.b16 %v2206_v40, %v2205_v1  ;;  %v2071_v18 = vadd.f32 %v5765_v37, %v1982_v59  ;;  %v5842_v43 = vpop.f32.mrf.mxu3 }
 0x4da   :  { %2268 = vmatmul.bf16.gmra.mxu0 %v5114_v8 }
 0x4db   :  { %2872 = vmatmul.bf16.gmra.mxu3 %v5827_v6  ;;  %v2111_v55 = vmax.f32 %v2071_v18, 0.0 }
 0x4dd   :  { %v2143_v53 = vpack.c.bf16 %v2111_v55, %v2111_v55 }
 0x4de   :  { %v1983_v58 = vpop.f32.mrf.mxu2 }
 0x4df   :  { %v1984_v54 = vadd.f32 %v5667_v60, %v1983_v58  ;;  %v2207_v31 = vunpack.c.l.b16 %v2143_v53 }
 0x4e1   :  { %v2073_v45 = vadd.f32 %v5774_v20, %v1984_v54  ;;  %v5846_v54 = vpop.f32.mrf.mxu3 }
 0x4e3   :  { %v2112_v14 = vmax.f32 %v2073_v45, 0.0 }
 0x4e5   :  { %v2144_v44 = vpack.c.bf16 %v2112_v14, %v2112_v14 }
 0x4e6   :  { %v1986_v23 = vpop.f32.mrf.mxu2 }
 0x4e7   :  { %v2208_v22 = vunpack.c.l.b16 %v2144_v44  ;;  %v1987_v8 = vadd.f32 %v5667_v60, %v1986_v23 }
 0x4e9   :  { %v5837_v51 = vpack.c.b16 %v2208_v22, %v2207_v31  ;;  %v2076_v37 = vadd.f32 %v5783_v7, %v1987_v8  ;;  %v5855_v31 = vpop.f32.mrf.mxu3 }
 0x4ea   :  { %2273 = vmatmul.bf16.gmra.mxu0 %v5153_v24 }
 0x4eb   :  { %2877 = vmatmul.bf16.gmra.mxu3 %v5837_v51  ;;  %v2113_v0 = vmax.f32 %v2076_v37, 0.0 }
 0x4ed   :  { %v2145_v59 = vpack.c.bf16 %v2113_v0, %v2113_v0 }
 0x4ee   :  { %v1988_v20 = vpop.f32.mrf.mxu2 }
 0x4ef   :  { %v1989_v1 = vadd.f32 %v5667_v60, %v1988_v20  ;;  %v2209_v45 = vunpack.c.l.b16 %v2145_v59 }
 0x4f1   :  { %v2078_v40 = vadd.f32 %v5791_v34, %v1989_v1 }
 0x4f3   :  { %v2114_v18 = vmax.f32 %v2078_v40, 0.0 }
 0x4f5   :  { %v2146_v58 = vpack.c.bf16 %v2114_v18, %v2114_v18  ;;  %v4470_v18 = vld [vmem:[#allocation10 + $0x28] sm:$0xff] }
 0x4f6   :  { %v1991_v55 = vpop.f32.mrf.mxu2 }
 0x4f7   :  { %v2210_v24 = vunpack.c.l.b16 %v2146_v58  ;;  %v1992_v7 = vadd.f32 %v5667_v60, %v1991_v55  ;;  %v4469_v58 = vld [vmem:[#allocation10 + $0x20] sm:$0xff]  ;;  %v4467_v55 = vld [vmem:[#allocation10 + $0x10] sm:$0xff] }
 0x4f9   :  { %v5849_v53 = vpack.c.b16 %v2210_v24, %v2209_v45  ;;  %v2081_v14 = vadd.f32 %v5800_v42, %v1992_v7  ;;  %v4454_v45 = vld [vmem:[#allocation8 + $0x28] sm:$0xff] }
 0x4fa   :  { %2278 = vmatmul.bf16.gmra.mxu0 %v5186_v39  ;;  %v5861_v39 = vpop.f32.mrf.mxu3  ;;  %v4466_v24 = vld [vmem:[#allocation10 + $0x8] sm:$0xff] }
 0x4fb   :  { %2882 = vmatmul.bf16.gmra.mxu3 %v5849_v53  ;;  %v2115_v34 = vmax.f32 %v2081_v14, 0.0  ;;  %v4453_v14 = vld [vmem:[#allocation8 + $0x20] sm:$0xff] }
 0x4fd   :  { %v2147_v8 = vpack.c.bf16 %v2115_v34, %v2115_v34  ;;  %v4451_v34 = vld [vmem:[#allocation8 + $0x10] sm:$0xff] }
 0x4fe   :  { %v1993_v44 = vpop.f32.mrf.mxu2 }
 0x4ff   :  { %v1994_v23 = vadd.f32 %v5667_v60, %v1993_v44  ;;  %v2211_v0 = vunpack.c.l.b16 %v2147_v8  ;;  %v4465_v44 = vld [vmem:[#allocation10] sm:$0xff] }
 0x501   :  { %v2083_v22 = vadd.f32 %v5808_v36, %v1994_v23  ;;  %v4450_v23 = vld [vmem:[#allocation8 + $0x8] sm:$0xff] }
 0x503   :  { %v2116_v37 = vmax.f32 %v2083_v22, 0.0  ;;  %v4449_v22 = vld [vmem:[#allocation8] sm:$0xff] }
 0x505   :  { %v2148_v20 = vpack.c.bf16 %v2116_v37, %v2116_v37 }
 0x507   :  { %v2212_v1 = vunpack.c.l.b16 %v2148_v20  ;;  %v6731_v20 = vld [vmem:[#allocation30_spill] sm:$0xff] }
 0x509   :  { %v5858_v40 = vpack.c.b16 %v2212_v1, %v2211_v0  ;;  %v6732_v0 = vld [vmem:[#allocation59_spill] sm:$0xff] }
 0x50a   :  { %2283 = vmatmul.bf16.gmra.mxu0 %v5219_v56 }
 0x50b   :  { %2334 = vmatpush.bf16.msra.mxu1 %v5858_v40  ;;  %2887 = vmatmul.bf16.gmra.mxu3 %v5858_v40 }
 0x50f   :  { %2335 = vmatpush.bf16.msra.mxu1 %v5849_v53 }
 0x513   :  { %2336 = vmatpush.bf16.msra.mxu1 %v5837_v51 }
 0x517   :  { %2337 = vmatpush.bf16.msra.mxu1 %v5827_v6 }
 0x51a   :  { %2288 = vmatmul.bf16.gmra.mxu0 %v5254_v15 }
 0x51b   :  { %2338 = vmatpush.bf16.msra.mxu1 %v5815_v3 }
 0x51f   :  { %2339 = vmatpush.bf16.msra.mxu1 %v5803_v17 }
 0x523   :  { %2340 = vmatpush.bf16.msra.mxu1 %v5793_v13 }
 0x527   :  { %v5872_v56 = vpop.f32.mrf.mxu0  ;;  %2341 = vmatpush.bf16.msra.mxu1 %v5778_v49 }
 0x52a   :  { %2293 = vmatmul.bf16.gmra.mxu0 %v5287_v38  ;;  %2342 = vmatmul.bf16.vlgmr.msra.gmra.mxu1 %v4987_v33 }
 0x52f   :  { %v5877_v60 = vpop.f32.mrf.mxu0 }
 0x537   :  { %v5879_v42 = vpop.f32.mrf.mxu0 }
 0x53a   :  { %2298 = vmatmul.bf16.gmra.mxu0 %v5317_v12  ;;  %2347 = vmatmul.bf16.gmra.mxu1 %v5034_v47  ;;  %v4472_v47 = vld [vmem:[#allocation10 + $0x38] sm:$0xff] }
 0x53b   :  { %3249 = vmatpush.bf16.msrb.mxu0 %v4472_v47  ;;  %v6733_v47 = vld [vmem:[#allocation31_spill] sm:$0xff] }
 0x53f   :  { %v5883_v15 = vpop.f32.mrf.mxu0 }
 0x547   :  { %v5885_v36 = vpop.f32.mrf.mxu0 }
 0x54a   :  { %2303 = vmatmul.bf16.gmra.mxu0 %v5345_v29  ;;  %2352 = vmatmul.bf16.gmra.mxu1 %v5079_v61  ;;  %v4471_v29 = vld [vmem:[#allocation10 + $0x30] sm:$0xff] }
 0x54b   :  { %3250 = vmatpush.bf16.msrb.mxu0 %v4471_v29 }
 0x54f   :  { %v5889_v59 = vpop.f32.mrf.mxu0  ;;  %3251 = vmatpush.bf16.msrb.mxu0 %v4470_v18 }
 0x553   :  { %3252 = vmatpush.bf16.msrb.mxu0 %v4469_v58 }
 0x557   :  { %v5891_v38 = vpop.f32.mrf.mxu0 }
 0x55a   :  { %2308 = vmatmul.bf16.gmra.mxu0 %v5373_v63  ;;  %2357 = vmatmul.bf16.gmra.mxu1 %v5118_v10  ;;  %v4456_v10 = vld [vmem:[#allocation8 + $0x38] sm:$0xff] }
 0x55b   :  { %2715 = vmatpush.bf16.msra.mxu2 %v4456_v10 }
 0x55f   :  { %v5895_v33 = vpop.f32.mrf.mxu0 }
 0x567   :  { %v5897_v12 = vpop.f32.mrf.mxu0 }
 0x56a   :  { %2313 = vmatmul.bf16.gmra.mxu0 %v4983_v32  ;;  %2362 = vmatmul.bf16.gmra.mxu1 %v5157_v26  ;;  %v4468_v32 = vld [vmem:[#allocation10 + $0x18] sm:$0xff]  ;;  %v4455_v26 = vld [vmem:[#allocation8 + $0x30] sm:$0xff] }
 0x56b   :  { %3253 = vmatpush.bf16.msrb.mxu0 %v4468_v32  ;;  %2716 = vmatpush.bf16.msra.mxu2 %v4455_v26 }
 0x56f   :  { %v5901_v61 = vpop.f32.mrf.mxu0  ;;  %3254 = vmatpush.bf16.msrb.mxu0 %v4467_v55  ;;  %2717 = vmatpush.bf16.msra.mxu2 %v4454_v45 }
 0x573   :  { %3255 = vmatpush.bf16.msrb.mxu0 %v4466_v24  ;;  %2718 = vmatpush.bf16.msra.mxu2 %v4453_v14 }
 0x577   :  { %v5903_v63 = vpop.f32.mrf.mxu0  ;;  %3256 = vmatpush.bf16.msrb.mxu0 %v4465_v44  ;;  %v6735_v44 = vld [vmem:[#allocation34_spill] sm:$0xff] }
 0x57a   :  { %2318 = vmatmul.bf16.gmra.mxu0 %v5032_v46  ;;  %2367 = vmatmul.bf16.gmra.mxu1 %v5190_v41  ;;  %v4452_v46 = vld [vmem:[#allocation8 + $0x18] sm:$0xff] }
 0x57b   :  { %2719 = vmatpush.bf16.msra.mxu2 %v4452_v46  ;;  %v6736_v46 = vld [vmem:[#allocation60_spill] sm:$0xff] }
 0x57f   :  { %v5907_v7 = vpop.f32.mrf.mxu0  ;;  %2720 = vmatpush.bf16.msra.mxu2 %v4451_v34  ;;  %v6737_v34 = vld [vmem:[#allocation35_spill] sm:$0xff] }
 0x583   :  { %2721 = vmatpush.bf16.msra.mxu2 %v4450_v23 }
 0x587   :  { %v5911_v41 = vpop.f32.mrf.mxu0  ;;  %2722 = vmatpush.bf16.msra.mxu2 %v4449_v22 }
 0x58a   :  { %2323 = vmatmul.bf16.gmra.mxu0 %v6689_v4  ;;  %2372 = vmatmul.bf16.gmra.mxu1 %v5223_v62 }
 0x58f   :  { %v5913_v8 = vpop.f32.mrf.mxu0 }
 0x597   :  { %v5917_v37 = vpop.f32.mrf.mxu0 }
 0x59a   :  { %2328 = vmatmul.bf16.gmra.mxu0 %v6693_v25  ;;  %2377 = vmatmul.bf16.gmra.mxu1 %v6688_v19  ;;  %v6734_v25 = vld [vmem:[#allocation33_spill] sm:$0xff] }
 0x59f   :  { %v5922_v1 = vpop.f32.mrf.mxu0 }
 0x5a7   :  { %v2343_v4 = vpop.f32.mrf.mxu1  ;;  %v5927_v26 = vpop.f32.mrf.mxu0 }
 0x5a8   :  { %v2344_v62 = vadd.f32 %v2343_v4, %v5872_v56 }
 0x5aa   :  { %2382 = vmatmul.bf16.gmra.mxu1 %v6731_v20  ;;  %3257 = vmatmul.bf16.vlgmr.msrb.gmra.mxu0 %v6732_v0  ;;  %v2423_v29 = vmul.f32 %v2344_v62, %v6733_v47  ;;  %v6738_v20 = vld [vmem:[#allocation36_spill] sm:$0xff] }
 0x5ac   :  { %v2455_v10 = vpack.c.bf16 %v2423_v29, %v2423_v29 }
 0x5ae   :  { %v2519_v55 = vunpack.c.l.b16 %v2455_v10 }
 0x5af   :  { %v2345_v18 = vpop.f32.mrf.mxu1 }
 0x5b0   :  { %v2346_v58 = vadd.f32 %v2345_v18, %v5877_v60  ;;  %v5933_v60 = vpop.f32.mrf.mxu0 }
 0x5b2   :  { %v2424_v32 = vmul.f32 %v2346_v58, %v6734_v25 }
 0x5b4   :  { %v2456_v19 = vpack.c.bf16 %v2424_v32, %v2424_v32  ;;  %v6739_v32 = vld [vmem:[#allocation37_spill] sm:$0xff] }
 0x5b6   :  { %v2520_v45 = vunpack.c.l.b16 %v2456_v19  ;;  %v6740_v19 = vld [vmem:[#allocation61_spill] sm:$0xff] }
 0x5b7   :  { %v2348_v56 = vpop.f32.mrf.mxu1 }
 0x5b8   :  { %v2551_v24 = vpack.c.b16 %v2520_v45, %v2519_v55  ;;  %v2349_v14 = vadd.f32 %v2348_v56, %v5879_v42  ;;  %v5937_v10 = vpop.f32.mrf.mxu0  ;;  %v6741_v55 = vld [vmem:[#allocation38_spill] sm:$0xff] }
 0x5ba   :  { %2387 = vmatmul.bf16.gmra.mxu1 %v6735_v44  ;;  %2723 = vmatmul.bf16.vlgmr.msra.gmra.mxu2 %v2551_v24  ;;  %v2425_v23 = vmul.f32 %v2349_v14, %v6737_v34  ;;  %v6742_v14 = vld [vmem:[#allocation39_spill] sm:$0xff] }
 0x5bb   :  { %3262 = vmatmul.bf16.gmra.mxu0 %v6736_v46 }
 0x5bc   :  { %v2457_v62 = vpack.c.bf16 %v2425_v23, %v2425_v23 }
 0x5be   :  { %v2521_v29 = vunpack.c.l.b16 %v2457_v62 }
 0x5bf   :  { %v2350_v22 = vpop.f32.mrf.mxu1 }
 0x5c0   :  { %v2351_v4 = vadd.f32 %v2350_v22, %v5883_v15  ;;  %v5945_v46 = vpop.f32.mrf.mxu0 }
 0x5c2   :  { %v2426_v0 = vmul.f32 %v2351_v4, %v6738_v20  ;;  %v6743_v20 = vld [vmem:[#allocation40_spill] sm:$0xff] }
 0x5c4   :  { %v2458_v47 = vpack.c.bf16 %v2426_v0, %v2426_v0  ;;  %v6744_v0 = vld [vmem:[#allocation62_spill] sm:$0xff] }
 0x5c6   :  { %v2522_v18 = vunpack.c.l.b16 %v2458_v47 }
 0x5c7   :  { %v2353_v58 = vpop.f32.mrf.mxu1 }
 0x5c8   :  { %v2552_v42 = vpack.c.b16 %v2522_v18, %v2521_v29  ;;  %v2354_v25 = vadd.f32 %v2353_v58, %v5885_v36  ;;  %v5950_v47 = vpop.f32.mrf.mxu0 }
 0x5ca   :  { %2392 = vmatmul.bf16.gmra.mxu1 %v6739_v32  ;;  %2728 = vmatmul.bf16.gmra.mxu2 %v2552_v42  ;;  %v2427_v45 = vmul.f32 %v2354_v25, %v6741_v55  ;;  %v6746_v25 = vld [vmem:[#allocation42_spill] sm:$0xff] }
 0x5cb   :  { %3267 = vmatmul.bf16.gmra.mxu0 %v6740_v19 }
 0x5cc   :  { %v2459_v24 = vpack.c.bf16 %v2427_v45, %v2427_v45 }
 0x5ce   :  { %v2523_v23 = vunpack.c.l.b16 %v2459_v24 }
 0x5cf   :  { %v2355_v15 = vpop.f32.mrf.mxu1 }
 0x5d0   :  { %v2356_v56 = vadd.f32 %v2355_v15, %v5889_v59  ;;  %v6745_v59 = vld [vmem:[#allocation41_spill] sm:$0xff]  ;;  %v5955_v15 = vpop.f32.mrf.mxu0 }
 0x5d2   :  { %v2428_v44 = vmul.f32 %v2356_v56, %v6742_v14  ;;  %v6747_v14 = vld [vmem:[#allocation18_spill] sm:$0xff] }
 0x5d4   :  { %v2460_v34 = vpack.c.bf16 %v2428_v44, %v2428_v44  ;;  %v4480_v44 = vld [vmem:[#allocation10 + $0x78] sm:$0xff] }
 0x5d5   :  { %3338 = vmatpush.bf16.msrb.mxu1 %v4480_v44 }
 0x5d6   :  { %v2524_v22 = vunpack.c.l.b16 %v2460_v34  ;;  %v6748_v34 = vld [vmem:[#allocation66_spill] sm:$0xff] }
 0x5d7   :  { %v2358_v4 = vpop.f32.mrf.mxu1 }
 0x5d8   :  { %v2553_v36 = vpack.c.b16 %v2524_v22, %v2523_v23  ;;  %v2359_v62 = vadd.f32 %v2358_v4, %v5891_v38  ;;  %v4479_v22 = vld [vmem:[#allocation10 + $0x70] sm:$0xff] }
 0x5d9   :  { %3339 = vmatpush.bf16.msrb.mxu1 %v4479_v22 }
 0x5da   :  { %2397 = vmatmul.bf16.gmra.mxu1 %v6743_v20  ;;  %2733 = vmatmul.bf16.gmra.mxu2 %v2553_v36  ;;  %v2429_v29 = vmul.f32 %v2359_v62, %v6745_v59  ;;  %v5962_v62 = vpop.f32.mrf.mxu0 }
 0x5db   :  { %3272 = vmatmul.bf16.gmra.mxu0 %v6744_v0  ;;  %v6750_v0 = vld [vmem:[#allocation44_spill] sm:$0xff] }
 0x5dc   :  { %v2461_v42 = vpack.c.bf16 %v2429_v29, %v2429_v29 }
 0x5de   :  { %v2525_v55 = vunpack.c.l.b16 %v2461_v42  ;;  %v4477_v42 = vld [vmem:[#allocation10 + $0x60] sm:$0xff] }
 0x5df   :  { %v2360_v18 = vpop.f32.mrf.mxu1 }
 0x5e0   :  { %v2361_v58 = vadd.f32 %v2360_v18, %v5895_v33  ;;  %v6749_v33 = vld [vmem:[#allocation43_spill] sm:$0xff] }
 0x5e2   :  { %v2430_v32 = vmul.f32 %v2361_v58, %v6746_v25 }
 0x5e4   :  { %v2462_v19 = vpack.c.bf16 %v2430_v32, %v2430_v32 }
 0x5e6   :  { %v2526_v45 = vunpack.c.l.b16 %v2462_v19 }
 0x5e7   :  { %v2363_v38 = vpop.f32.mrf.mxu1 }
 0x5e8   :  { %v2554_v56 = vpack.c.b16 %v2526_v45, %v2525_v55  ;;  %v2364_v24 = vadd.f32 %v2363_v38, %v5897_v12  ;;  %v4478_v12 = vld [vmem:[#allocation10 + $0x68] sm:$0xff]  ;;  %v6751_v55 = vld [vmem:[#allocation19_spill] sm:$0xff]  ;;  %v5967_v45 = vpop.f32.mrf.mxu0 }
 0x5e9   :  { %3340 = vmatpush.bf16.msrb.mxu1 %v4478_v12  ;;  %v6752_v38 = vld [vmem:[#allocation65_spill] sm:$0xff] }
 0x5ea   :  { %2402 = vmatmul.bf16.gmra.mxu1 %v6747_v14  ;;  %2738 = vmatmul.bf16.gmra.mxu2 %v2554_v56  ;;  %v2431_v23 = vmul.f32 %v2364_v24, %v6749_v33  ;;  %v6753_v56 = vld [vmem:[#allocation45_spill] sm:$0xff]  ;;  %v4475_v14 = vld [vmem:[#allocation10 + $0x50] sm:$0xff] }
 0x5eb   :  { %3277 = vmatmul.bf16.gmra.mxu0 %v6748_v34 }
 0x5ec   :  { %v2463_v20 = vpack.c.bf16 %v2431_v23, %v2431_v23  ;;  %v6754_v23 = vld [vmem:[#allocation46_spill] sm:$0xff] }
 0x5ed   :  { %3341 = vmatpush.bf16.msrb.mxu1 %v4477_v42  ;;  %v6757_v42 = vld [vmem:[#allocation47_spill] sm:$0xff] }
 0x5ee   :  { %v2527_v18 = vunpack.c.l.b16 %v2463_v20 }
 0x5ef   :  { %v2365_v4 = vpop.f32.mrf.mxu1 }
 0x5f0   :  { %v2366_v36 = vadd.f32 %v2365_v4, %v5901_v61  ;;  %v4476_v61 = vld [vmem:[#allocation10 + $0x58] sm:$0xff] }
 0x5f1   :  { %3342 = vmatpush.bf16.msrb.mxu1 %v4476_v61 }
 0x5f2   :  { %v2432_v59 = vmul.f32 %v2366_v36, %v6750_v0  ;;  %v5973_v36 = vpop.f32.mrf.mxu0 }
 0x5f4   :  { %v2464_v29 = vpack.c.bf16 %v2432_v59, %v2432_v59  ;;  %v4473_v59 = vld [vmem:[#allocation10 + $0x40] sm:$0xff] }
 0x5f5   :  { %3343 = vmatpush.bf16.msrb.mxu1 %v4475_v14 }
 0x5f6   :  { %v2528_v58 = vunpack.c.l.b16 %v2464_v29 }
 0x5f7   :  { %v2368_v25 = vpop.f32.mrf.mxu1 }
 0x5f8   :  { %v2555_v32 = vpack.c.b16 %v2528_v58, %v2527_v18  ;;  %v2369_v19 = vadd.f32 %v2368_v25, %v5903_v63  ;;  %v4474_v63 = vld [vmem:[#allocation10 + $0x48] sm:$0xff]  ;;  %v6755_v58 = vld [vmem:[#allocation20_spill] sm:$0xff] }
 0x5f9   :  { %3344 = vmatpush.bf16.msrb.mxu1 %v4474_v63  ;;  %v6760_v63 = vld [vmem:[#allocation63_spill] sm:$0xff] }
 0x5fa   :  { %2407 = vmatmul.bf16.gmra.mxu1 %v6751_v55  ;;  %2743 = vmatmul.bf16.gmra.mxu2 %v2555_v32  ;;  %v2433_v24 = vmul.f32 %v2369_v19, %v6753_v56  ;;  %v5979_v32 = vpop.f32.mrf.mxu0 }
 0x5fb   :  { %3282 = vmatmul.bf16.gmra.mxu0 %v6752_v38  ;;  %v6758_v38 = vld [vmem:[#allocation48_spill] sm:$0xff] }
 0x5fc   :  { %v2465_v33 = vpack.c.bf16 %v2433_v24, %v2433_v24 }
 0x5fd   :  { %3345 = vmatpush.bf16.msrb.mxu1 %v4473_v59 }
 0x5fe   :  { %v2529_v20 = vunpack.c.l.b16 %v2465_v33 }
 0x5ff   :  { %v2370_v44 = vpop.f32.mrf.mxu1 }
 0x600   :  { %v2371_v34 = vadd.f32 %v2370_v44, %v5907_v7  ;;  %v6756_v7 = vld [vmem:[#allocation64_spill] sm:$0xff] }
 0x602   :  { %v2434_v22 = vmul.f32 %v2371_v34, %v6754_v23  ;;  %v5983_v33 = vpop.f32.mrf.mxu0 }
 0x604   :  { %v2466_v4 = vpack.c.bf16 %v2434_v22, %v2434_v22  ;;  %v6759_v22 = vld [vmem:[#allocation22_spill] sm:$0xff] }
 0x606   :  { %v2530_v0 = vunpack.c.l.b16 %v2466_v4  ;;  %v6761_v4 = vld [vmem:[#allocation49_spill] sm:$0xff] }
 0x607   :  { %v2373_v12 = vpop.f32.mrf.mxu1 }
 0x608   :  { %v2556_v29 = vpack.c.b16 %v2530_v0, %v2529_v20  ;;  %v2374_v18 = vadd.f32 %v2373_v12, %v5911_v41  ;;  %v6762_v12 = vld [vmem:[#allocation50_spill] sm:$0xff] }
 0x60a   :  { %2412 = vmatmul.bf16.gmra.mxu1 %v6755_v58  ;;  %2748 = vmatmul.bf16.gmra.mxu2 %v2556_v29  ;;  %v2435_v25 = vmul.f32 %v2374_v18, %v6757_v42  ;;  %v5991_v18 = vpop.f32.mrf.mxu0 }
 0x60b   :  { %3287 = vmatmul.bf16.gmra.mxu0 %v6756_v7 }
 0x60c   :  { %v2467_v61 = vpack.c.bf16 %v2435_v25, %v2435_v25 }
 0x60e   :  { %v2531_v14 = vunpack.c.l.b16 %v2467_v61 }
 0x60f   :  { %v2375_v19 = vpop.f32.mrf.mxu1 }
 0x610   :  { %v2376_v55 = vadd.f32 %v2375_v19, %v5913_v8 }
 0x612   :  { %v2436_v56 = vmul.f32 %v2376_v55, %v6758_v38  ;;  %v6763_v55 = vld [vmem:[#allocation67_spill] sm:$0xff]  ;;  %v5996_v61 = vpop.f32.mrf.mxu0 }
 0x614   :  { %v2468_v24 = vpack.c.bf16 %v2436_v56, %v2436_v56 }
 0x616   :  { %v2532_v44 = vunpack.c.l.b16 %v2468_v24 }
 0x617   :  { %v2378_v34 = vpop.f32.mrf.mxu1 }
 0x618   :  { %v2557_v41 = vpack.c.b16 %v2532_v44, %v2531_v14  ;;  %v2379_v23 = vadd.f32 %v2378_v34, %v5917_v37  ;;  %v6765_v44 = vld [vmem:[#allocation52_spill] sm:$0xff] }
 0x61a   :  { %2417 = vmatmul.bf16.gmra.mxu1 %v6759_v22  ;;  %2753 = vmatmul.bf16.gmra.mxu2 %v2557_v41  ;;  %v2437_v20 = vmul.f32 %v2379_v23, %v6761_v4 }
 0x61b   :  { %3292 = vmatmul.bf16.gmra.mxu0 %v6760_v63  ;;  %v6001_v63 = vpop.f32.mrf.mxu0 }
 0x61c   :  { %v2469_v59 = vpack.c.bf16 %v2437_v20, %v2437_v20  ;;  %v6008_v20 = vld [vmem:[%s6523_s8] ss:$0 sm:$0xff] }
 0x61e   :  { %v2533_v7 = vunpack.c.l.b16 %v2469_v59 }
 0x61f   :  { %v2380_v8 = vpop.f32.mrf.mxu1 }
 0x620   :  { %v2381_v0 = vadd.f32 %v2380_v8, %v5922_v1  ;;  %v6764_v1 = vld [vmem:[#allocation51_spill] sm:$0xff] }
 0x622   :  { %v2438_v29 = vmul.f32 %v2381_v0, %v6762_v12  ;;  %v6767_v0 = vld [vmem:[#allocation53_spill] sm:$0xff] }
 0x624   :  { %v2470_v58 = vpack.c.bf16 %v2438_v29, %v2438_v29 }
 0x626   :  { %v2534_v42 = vunpack.c.l.b16 %v2470_v58 }
 0x627   :  { %v2383_v25 = vpop.f32.mrf.mxu1 }
 0x628   :  { %v2558_v37 = vpack.c.b16 %v2534_v42, %v2533_v7  ;;  %v2384_v19 = vadd.f32 %v2383_v25, %v5927_v26  ;;  %v6014_v7 = vpop.f32.mrf.mxu0  ;;  %v6768_v42 = vld [vmem:[#allocation54_spill] sm:$0xff] }
 0x62a   :  { %2758 = vmatmul.bf16.gmra.mxu2 %v2558_v37  ;;  %3346 = vmatmul.bf16.vlgmr.msrb.gmra.mxu1 %v5681_v2  ;;  %v2439_v38 = vmul.f32 %v2384_v19, %v6764_v1 }
 0x62b   :  { %3297 = vmatmul.bf16.gmra.mxu0 %v6763_v55 }
 0x62c   :  { %v2471_v14 = vpack.c.bf16 %v2439_v38, %v2439_v38 }
 0x62e   :  { %v2535_v23 = vunpack.c.l.b16 %v2471_v14 }
 0x62f   :  { %v2385_v56 = vpop.f32.mrf.mxu1 }
 0x630   :  { %v2386_v24 = vadd.f32 %v2385_v56, %v5933_v60  ;;  %v6766_v60 = vld [vmem:[#allocation68_spill] sm:$0xff] }
 0x632   :  { %v2440_v34 = vmul.f32 %v2386_v24, %v6765_v44 }
 0x634   :  { %v2472_v41 = vpack.c.bf16 %v2440_v34, %v2440_v34 }
 0x636   :  { %v2536_v22 = vunpack.c.l.b16 %v2472_v41 }
 0x637   :  { %v2388_v26 = vpop.f32.mrf.mxu1 }
 0x638   :  { %v2559_v4 = vpack.c.b16 %v2536_v22, %v2535_v23  ;;  %v2389_v2 = vadd.f32 %v2388_v26, %v5937_v10  ;;  %v6769_v23 = vld [vmem:[#allocation69_spill] sm:$0xff] }
 0x63a   :  { %2763 = vmatmul.bf16.gmra.mxu2 %v2559_v4  ;;  %3351 = vmatmul.bf16.gmra.mxu1 %v5694_v57  ;;  %v2441_v59 = vmul.f32 %v2389_v2, %v6767_v0 }
 0x63b   :  { %3302 = vmatmul.bf16.gmra.mxu0 %v6766_v60  ;;  %v6770_v60 = vld [vmem:[#allocation55_spill] sm:$0xff] }
 0x63c   :  { %v2473_v10 = vpack.c.bf16 %v2441_v59, %v2441_v59 }
 0x63d   :  { %v2724_v8 = vpop.f32.mrf.mxu2 }
 0x63e   :  { %v2725_v12 = vadd.f32 %v6008_v20, %v2724_v8  ;;  %v2537_v55 = vunpack.c.l.b16 %v2473_v10 }
 0x63f   :  { %v2390_v29 = vpop.f32.mrf.mxu1 }
 0x640   :  { %v2391_v58 = vadd.f32 %v2390_v29, %v5945_v46  ;;  %v2814_v57 = vadd.f32 %v5812_v5, %v2725_v12  ;;  %v6022_v5 = vpop.f32.mrf.mxu0  ;;  %v6030_v12 = vpop.f32.mrf.mxu3 }
 0x642   :  { %v2442_v25 = vmul.f32 %v2391_v58, %v6768_v42  ;;  %v2893_v1 = vmax.f32 %v2814_v57, 0.0  ;;  %v6771_v58 = vld [vmem:[#allocation56_spill] sm:$0xff] }
 0x644   :  { %v2474_v37 = vpack.c.bf16 %v2442_v25, %v2442_v25  ;;  %v2925_v34 = vpack.c.bf16 %v2893_v1, %v2893_v1 }
 0x645   :  { %v2726_v19 = vpop.f32.mrf.mxu2 }
 0x646   :  { %v2538_v38 = vunpack.c.l.b16 %v2474_v37  ;;  %v2727_v56 = vadd.f32 %v6008_v20, %v2726_v19  ;;  %v2989_v4 = vunpack.c.l.b16 %v2925_v34  ;;  %v6772_v34 = vld [vmem:[#allocation70_spill] sm:$0xff] }
 0x647   :  { %v2393_v24 = vpop.f32.mrf.mxu1 }
 0x648   :  { %v2816_v14 = vadd.f32 %v5820_v50, %v2727_v56  ;;  %v2560_v44 = vpack.c.b16 %v2538_v38, %v2537_v55  ;;  %v2394_v41 = vadd.f32 %v2393_v24, %v5950_v47  ;;  %v6034_v42 = vpop.f32.mrf.mxu0 }
 0x64a   :  { %v2894_v46 = vmax.f32 %v2816_v14, 0.0  ;;  %2768 = vmatmul.bf16.gmra.mxu2 %v2560_v44  ;;  %3356 = vmatmul.bf16.gmra.mxu1 %v5705_v27  ;;  %v2443_v8 = vmul.f32 %v2394_v41, %v6770_v60 }
 0x64b   :  { %3307 = vmatmul.bf16.gmra.mxu0 %v6769_v23 }
 0x64c   :  { %v2926_v22 = vpack.c.bf16 %v2894_v46, %v2894_v46  ;;  %v2475_v27 = vpack.c.bf16 %v2443_v8, %v2443_v8 }
 0x64d   :  { %v2729_v26 = vpop.f32.mrf.mxu2 }
 0x64e   :  { %v2990_v2 = vunpack.c.l.b16 %v2926_v22  ;;  %v2730_v50 = vadd.f32 %v6008_v20, %v2729_v26  ;;  %v2539_v37 = vunpack.c.l.b16 %v2475_v27  ;;  %v6773_v26 = vld [vmem:[#allocation57_spill] sm:$0xff] }
 0x64f   :  { %v2395_v0 = vpop.f32.mrf.mxu1 }
 0x650   :  { %v6027_v59 = vpack.c.b16 %v2990_v2, %v2989_v4  ;;  %v2396_v47 = vadd.f32 %v2395_v0, %v5955_v15  ;;  %v2819_v29 = vadd.f32 %v5825_v48, %v2730_v50  ;;  %v6040_v48 = vpop.f32.mrf.mxu3  ;;  %v6045_v2 = vpop.f32.mrf.mxu0  ;;  %v6774_v0 = vld [vmem:[#allocation58_spill] sm:$0xff] }
 0x652   :  { %v2444_v10 = vmul.f32 %v2396_v47, %v6771_v58  ;;  %v2895_v19 = vmax.f32 %v2819_v29, 0.0 }
 0x654   :  { %v2476_v57 = vpack.c.bf16 %v2444_v10, %v2444_v10  ;;  %v2927_v24 = vpack.c.bf16 %v2895_v19, %v2895_v19 }
 0x655   :  { %v2731_v25 = vpop.f32.mrf.mxu2 }
 0x656   :  { %v2540_v55 = vunpack.c.l.b16 %v2476_v57  ;;  %v2732_v1 = vadd.f32 %v6008_v20, %v2731_v25  ;;  %v2991_v23 = vunpack.c.l.b16 %v2927_v24 }
 0x657   :  { %v2398_v38 = vpop.f32.mrf.mxu1 }
 0x658   :  { %v2821_v56 = vadd.f32 %v5834_v52, %v2732_v1  ;;  %v2561_v15 = vpack.c.b16 %v2540_v55, %v2539_v37  ;;  %v2399_v44 = vadd.f32 %v2398_v38, %v5962_v62  ;;  %v6052_v29 = vpop.f32.mrf.mxu3  ;;  %v6056_v1 = vpop.f32.mrf.mxu0 }
 0x65a   :  { %v2896_v14 = vmax.f32 %v2821_v56, 0.0  ;;  %2773 = vmatmul.bf16.gmra.mxu2 %v2561_v15  ;;  %3361 = vmatmul.bf16.gmra.mxu1 %v5718_v16  ;;  %v2445_v4 = vmul.f32 %v2399_v44, %v6773_v26  ;;  %v6775_v15 = vld [vmem:[#allocation71_spill] sm:$0xff] }
 0x65b   :  { %3312 = vmatmul.bf16.gmra.mxu0 %v6772_v34 }
 0x65c   :  { %v2928_v46 = vpack.c.bf16 %v2896_v14, %v2896_v14  ;;  %v2477_v16 = vpack.c.bf16 %v2445_v4, %v2445_v4 }
 0x65d   :  { %v2734_v41 = vpop.f32.mrf.mxu2 }
 0x65e   :  { %v2992_v22 = vunpack.c.l.b16 %v2928_v46  ;;  %v2735_v52 = vadd.f32 %v6008_v20, %v2734_v41  ;;  %v2541_v10 = vunpack.c.l.b16 %v2477_v16  ;;  %v6776_v46 = vld [vmem:[#allocation21_spill] sm:$0xff] }
 0x65f   :  { %v2400_v60 = vpop.f32.mrf.mxu1 }
 0x660   :  { %v2401_v62 = vadd.f32 %v2400_v60, %v5967_v45  ;;  %v6048_v8 = vpack.c.b16 %v2992_v22, %v2991_v23  ;;  %v2824_v50 = vadd.f32 %v5842_v43, %v2735_v52  ;;  %v6063_v23 = vpop.f32.mrf.mxu3  ;;  %v6777_v52 = vld [vmem:[#allocation26_spill] sm:$0xff] }
 0x662   :  { %v2446_v47 = vmul.f32 %v2401_v62, %v6774_v0  ;;  %v2897_v57 = vmax.f32 %v2824_v50, 0.0  ;;  %v6070_v62 = vpop.f32.mrf.mxu0 }
 0x664   :  { %v2478_v27 = vpack.c.bf16 %v2446_v47, %v2446_v47  ;;  %v2929_v38 = vpack.c.bf16 %v2897_v57, %v2897_v57 }
 0x665   :  { %v2736_v58 = vpop.f32.mrf.mxu2 }
 0x666   :  { %v2542_v25 = vunpack.c.l.b16 %v2478_v27  ;;  %v2737_v37 = vadd.f32 %v6008_v20, %v2736_v58  ;;  %v2993_v44 = vunpack.c.l.b16 %v2929_v38 }
 0x667   :  { %v2403_v19 = vpop.f32.mrf.mxu1 }
 0x668   :  { %v2826_v55 = vadd.f32 %v5846_v54, %v2737_v37  ;;  %v2562_v45 = vpack.c.b16 %v2542_v25, %v2541_v10  ;;  %v2404_v43 = vadd.f32 %v2403_v19, %v5973_v36  ;;  %v6074_v25 = vpop.f32.mrf.mxu3 }
 0x66a   :  { %v2898_v56 = vmax.f32 %v2826_v55, 0.0  ;;  %2778 = vmatmul.bf16.gmra.mxu2 %v2562_v45  ;;  %3366 = vmatmul.bf16.gmra.mxu1 %v5731_v11  ;;  %v2447_v41 = vmul.f32 %v2404_v43, %v6776_v46  ;;  %v4488_v55 = vld [vmem:[#allocation10 + $0xb8] sm:$0xff]  ;;  %v6778_v45 = vld [vmem:[#allocation72_spill] sm:$0xff] }
 0x66b   :  { %3317 = vmatmul.bf16.gmra.mxu0 %v6775_v15  ;;  %3427 = vmatpush.bf16.msrb.mxu2 %v4488_v55 }
 0x66c   :  { %v2930_v24 = vpack.c.bf16 %v2898_v56, %v2898_v56  ;;  %v2479_v36 = vpack.c.bf16 %v2447_v41, %v2447_v41  ;;  %v6079_v56 = vpop.f32.mrf.mxu0 }
 0x66d   :  { %v2739_v14 = vpop.f32.mrf.mxu2 }
 0x66e   :  { %v2994_v34 = vunpack.c.l.b16 %v2930_v24  ;;  %v2740_v54 = vadd.f32 %v6008_v20, %v2739_v14  ;;  %v2543_v0 = vunpack.c.l.b16 %v2479_v36  ;;  %v6779_v24 = vld [vmem:[#allocation25_spill] sm:$0xff] }
 0x66f   :  { %v2405_v22 = vpop.f32.mrf.mxu1  ;;  %v4486_v36 = vld [vmem:[#allocation10 + $0xa8] sm:$0xff] }
 0x670   :  { %v2406_v26 = vadd.f32 %v2405_v22, %v5979_v32  ;;  %v6066_v4 = vpack.c.b16 %v2994_v34, %v2993_v44  ;;  %v2829_v11 = vadd.f32 %v5855_v31, %v2740_v54  ;;  %v4487_v34 = vld [vmem:[#allocation10 + $0xb0] sm:$0xff]  ;;  %v6780_v22 = vld [vmem:[#allocation28_spill] sm:$0xff] }
 0x671   :  { %3428 = vmatpush.bf16.msrb.mxu2 %v4487_v34 }
 0x672   :  { %v2448_v60 = vmul.f32 %v2406_v26, %v6777_v52  ;;  %v2899_v47 = vmax.f32 %v2829_v11, 0.0  ;;  %v6088_v11 = vpop.f32.mrf.mxu3 }
 0x674   :  { %v2480_v16 = vpack.c.bf16 %v2448_v60, %v2448_v60  ;;  %v2931_v37 = vpack.c.bf16 %v2899_v47, %v2899_v47 }
 0x675   :  { %v2741_v50 = vpop.f32.mrf.mxu2  ;;  %3429 = vmatpush.bf16.msrb.mxu2 %v4486_v36 }
 0x676   :  { %v2544_v27 = vunpack.c.l.b16 %v2480_v16  ;;  %v2742_v58 = vadd.f32 %v6008_v20, %v2741_v50  ;;  %v2995_v15 = vunpack.c.l.b16 %v2931_v37 }
 0x677   :  { %v2408_v10 = vpop.f32.mrf.mxu1 }
 0x678   :  { %v2831_v57 = vadd.f32 %v5861_v39, %v2742_v58  ;;  %v2563_v32 = vpack.c.b16 %v2544_v27, %v2543_v0  ;;  %v2409_v31 = vadd.f32 %v2408_v10, %v5983_v33  ;;  %v6091_v27 = vpop.f32.mrf.mxu0 }
 0x67a   :  { %v2900_v19 = vmax.f32 %v2831_v57, 0.0  ;;  %2783 = vmatmul.bf16.gmra.mxu2 %v2563_v32  ;;  %3371 = vmatmul.bf16.gmra.mxu1 %v5742_v9  ;;  %v2449_v14 = vmul.f32 %v2409_v31, %v6779_v24  ;;  %v6781_v31 = vld [vmem:[#allocation73_spill] sm:$0xff] }
 0x67b   :  { %3322 = vmatmul.bf16.gmra.mxu0 %v6778_v45  ;;  %v6097_v45 = vpop.f32.mrf.mxu3 }
 0x67c   :  { %v2932_v38 = vpack.c.bf16 %v2900_v19, %v2900_v19  ;;  %v2481_v41 = vpack.c.bf16 %v2449_v14, %v2449_v14  ;;  %v4484_v19 = vld [vmem:[#allocation10 + $0x98] sm:$0xff]  ;;  %v4483_v14 = vld [vmem:[#allocation10 + $0x90] sm:$0xff] }
 0x67d   :  { %v2744_v43 = vpop.f32.mrf.mxu2 }
 0x67e   :  { %v2996_v39 = vunpack.c.l.b16 %v2932_v38  ;;  %v2745_v44 = vadd.f32 %v6008_v20, %v2744_v43  ;;  %v2545_v16 = vunpack.c.l.b16 %v2481_v41  ;;  %v6783_v41 = vld [vmem:[#allocation27_spill] sm:$0xff] }
 0x67f   :  { %v2410_v46 = vpop.f32.mrf.mxu1 }
 0x680   :  { %v2411_v33 = vadd.f32 %v2410_v46, %v5991_v18  ;;  %v6084_v9 = vpack.c.b16 %v2996_v39, %v2995_v15  ;;  %v2834_v54 = vadd.f32 %v6030_v12, %v2745_v44  ;;  %v4485_v18 = vld [vmem:[#allocation10 + $0xa0] sm:$0xff]  ;;  %v6104_v34 = vpop.f32.mrf.mxu0 }
 0x681   :  { %3430 = vmatpush.bf16.msrb.mxu2 %v4485_v18 }
 0x682   :  { %v2450_v26 = vmul.f32 %v2411_v33, %v6780_v22  ;;  %v2901_v50 = vmax.f32 %v2834_v54, 0.0  ;;  %v4482_v22 = vld [vmem:[#allocation10 + $0x88] sm:$0xff] }
 0x684   :  { %v2482_v52 = vpack.c.bf16 %v2450_v26, %v2450_v26  ;;  %v2933_v57 = vpack.c.bf16 %v2901_v50, %v2901_v50 }
 0x685   :  { %v2746_v60 = vpop.f32.mrf.mxu2  ;;  %3431 = vmatpush.bf16.msrb.mxu2 %v4484_v19 }
 0x686   :  { %v2546_v0 = vunpack.c.l.b16 %v2482_v52  ;;  %v2747_v47 = vadd.f32 %v6008_v20, %v2746_v60  ;;  %v2997_v43 = vunpack.c.l.b16 %v2933_v57 }
 0x687   :  { %v2413_v58 = vpop.f32.mrf.mxu1 }
 0x688   :  { %v2836_v10 = vadd.f32 %v6040_v48, %v2747_v47  ;;  %v2564_v12 = vpack.c.b16 %v2546_v0, %v2545_v16  ;;  %v2414_v37 = vadd.f32 %v2413_v58, %v5996_v61  ;;  %v6782_v48 = vld [vmem:[#allocation23_spill] sm:$0xff]  ;;  %v2850_v0 = vpop.f32.mrf.mxu3  ;;  %v6112_v57 = vpop.f32.mrf.mxu0 }
 0x689   :  { %3432 = vmatpush.bf16.msrb.mxu2 %v4483_v14 }
 0x68a   :  { %v2902_v32 = vmax.f32 %v2836_v10, 0.0  ;;  %2788 = vmatmul.bf16.gmra.mxu2 %v2564_v12  ;;  %3376 = vmatmul.bf16.gmra.mxu1 %v5754_v30  ;;  %v2451_v39 = vmul.f32 %v2414_v37, %v6782_v48 }
 0x68b   :  { %3327 = vmatmul.bf16.gmra.mxu0 %v6781_v31 }
 0x68c   :  { %v2934_v55 = vpack.c.bf16 %v2902_v32, %v2902_v32  ;;  %v2483_v46 = vpack.c.bf16 %v2451_v39, %v2451_v39  ;;  %v6784_v32 = vld [vmem:[#allocation74_spill] sm:$0xff] }
 0x68d   :  { %v2749_v38 = vpop.f32.mrf.mxu2  ;;  %3433 = vmatpush.bf16.msrb.mxu2 %v4482_v22 }
 0x68e   :  { %v2998_v15 = vunpack.c.l.b16 %v2934_v55  ;;  %v2750_v24 = vadd.f32 %v6008_v20, %v2749_v38  ;;  %v2547_v52 = vunpack.c.l.b16 %v2483_v46 }
 0x68f   :  { %v2415_v44 = vpop.f32.mrf.mxu1 }
 0x690   :  { %v2416_v61 = vadd.f32 %v2415_v44, %v6001_v63  ;;  %v6102_v30 = vpack.c.b16 %v2998_v15, %v2997_v43  ;;  %v2839_v33 = vadd.f32 %v6052_v29, %v2750_v24  ;;  %v4481_v63 = vld [vmem:[#allocation10 + $0x80] sm:$0xff] }
 0x691   :  { %3434 = vmatpush.bf16.msrb.mxu2 %v4481_v63 }
 0x692   :  { %v2452_v54 = vmul.f32 %v2416_v61, %v6783_v41  ;;  %v2903_v60 = vmax.f32 %v2839_v33, 0.0 }
 0x694   :  { %v2484_v26 = vpack.c.bf16 %v2452_v54, %v2452_v54  ;;  %v2935_v10 = vpack.c.bf16 %v2903_v60, %v2903_v60 }
 0x695   :  { %v2751_v36 = vpop.f32.mrf.mxu2 }
 0x696   :  { %v2548_v16 = vunpack.c.l.b16 %v2484_v26  ;;  %v2752_v50 = vadd.f32 %v6008_v20, %v2751_v36  ;;  %v2999_v31 = vunpack.c.l.b16 %v2935_v10 }
 0x697   :  { %v2418_v47 = vpop.f32.mrf.mxu1 }
 0x698   :  { %v2841_v18 = vadd.f32 %v6063_v23, %v2752_v50  ;;  %v2565_v58 = vpack.c.b16 %v2548_v16, %v2547_v52  ;;  %v2419_v12 = vadd.f32 %v2418_v47, %v6014_v7  ;;  %v2853_v7 = vpop.f32.mrf.mxu3 }
 0x69a   :  { %v2904_v29 = vmax.f32 %v2841_v18, 0.0  ;;  %2793 = vmatmul.bf16.gmra.mxu2 %v2565_v58  ;;  %3381 = vmatmul.bf16.gmra.mxu1 %v5763_v35  ;;  %v2453_v38 = vmul.f32 %v2419_v12, %v6729_v21  ;;  %v6123_v35 = vld [vmem:[%s6525_s10] ss:$0 sm:$0xff]  ;;  %s4831_s10 = smov [#allocation11]  }
 0x69b   :  { %3332 = vmatmul.bf16.gmra.mxu0 %v6784_v32  ;;  %v3259_v21 = vadd.f32 %v6123_v35, %v6034_v42  ;;  %v3261_v16 = vadd.f32 %v6123_v35, %v6045_v2  ;;  %s3872_s22 = sshll.u32 %s4831_s10, 4  ;;  %s3873_s22 = int_to_ptr.vmem [resolvable:$true] %s3872_s22 }
 0x69c   :  { %v2936_v37 = vpack.c.bf16 %v2904_v29, %v2904_v29  ;;  %v2485_v39 = vpack.c.bf16 %v2453_v38, %v2453_v38 }
 0x69d   :  { %v2754_v19 = vpop.f32.mrf.mxu2 }
 0x69e   :  { %v3000_v55 = vunpack.c.l.b16 %v2936_v37  ;;  %v2755_v23 = vadd.f32 %v6008_v20, %v2754_v19  ;;  %v2549_v46 = vunpack.c.l.b16 %v2485_v39 }
 0x69f   :  { %v2420_v43 = vpop.f32.mrf.mxu1 }
 0x6a0   :  { %v2421_v15 = vadd.f32 %v2420_v43, %v6022_v5  ;;  %v6118_v48 = vpack.c.b16 %v3000_v55, %v2999_v31  ;;  %v2844_v24 = vadd.f32 %v6074_v25, %v2755_v23  ;;  %v3266_v43 = vadd.f32 %v6123_v35, %v6070_v62 }
 0x6a2   :  { %v2454_v14 = vmul.f32 %v2421_v15, %v6730_v28  ;;  %v2905_v5 = vmax.f32 %v2844_v24, 0.0  ;;  %v2855_v28 = vpop.f32.mrf.mxu3 }
 0x6a4   :  { %v2486_v44 = vpack.c.bf16 %v2454_v14, %v2454_v14  ;;  %v2937_v52 = vpack.c.bf16 %v2905_v5, %v2905_v5 }
 0x6a5   :  { %v2756_v61 = vpop.f32.mrf.mxu2 }
 0x6a6   :  { %v2550_v33 = vunpack.c.l.b16 %v2486_v44  ;;  %v2757_v41 = vadd.f32 %v6008_v20, %v2756_v61  ;;  %v3001_v50 = vunpack.c.l.b16 %v2937_v52  ;;  %v3271_v52 = vadd.f32 %v6123_v35, %v6091_v27 }
 0x6a7   :  { %v3347_v54 = vpop.f32.mrf.mxu1 }
 0x6a8   :  { %v2846_v22 = vadd.f32 %v6088_v11, %v2757_v41  ;;  %v6131_v26 = vadd.f32 %v3347_v54, %v3259_v21  ;;  %v2566_v36 = vpack.c.b16 %v2550_v33, %v2549_v46 }
 0x6aa   :  { %v2906_v25 = vmax.f32 %v2846_v22, 0.0  ;;  %2798 = vmatmul.bf16.gmra.mxu2 %v2566_v36  ;;  %3386 = vmatmul.bf16.gmra.mxu1 %v5778_v49  ;;  %v2858_v29 = vpop.f32.mrf.mxu3  ;;  %v3264_v49 = vadd.f32 %v6123_v35, %v6056_v1 }
 0x6ac   :  { %v2938_v60 = vpack.c.bf16 %v2906_v25, %v2906_v25 }
 0x6ad   :  { %v2759_v42 = vpop.f32.mrf.mxu2 }
 0x6ae   :  { %v3002_v63 = vunpack.c.l.b16 %v2938_v60  ;;  %v2760_v47 = vadd.f32 %v6008_v20, %v2759_v42 }
 0x6af   :  { %v3349_v18 = vpop.f32.mrf.mxu1 }
 0x6b0   :  { %v6137_v11 = vadd.f32 %v3349_v18, %v3261_v16  ;;  %v6139_v58 = vpack.c.b16 %v3002_v63, %v3001_v50  ;;  %v2849_v10 = vadd.f32 %v6097_v45, %v2760_v47 }
 0x6b2   :  { %v2907_v32 = vmax.f32 %v2849_v10, 0.0  ;;  %v2860_v24 = vpop.f32.mrf.mxu3 }
 0x6b4   :  { %v2939_v55 = vpack.c.bf16 %v2907_v32, %v2907_v32 }
 0x6b5   :  { %v2761_v12 = vpop.f32.mrf.mxu2 }
 0x6b6   :  { %v2762_v37 = vadd.f32 %v6008_v20, %v2761_v12  ;;  %v3003_v15 = vunpack.c.l.b16 %v2939_v55 }
 0x6b7   :  { %v3352_v2 = vpop.f32.mrf.mxu1 }
 0x6b8   :  { %v2851_v19 = vadd.f32 %v2850_v0, %v2762_v37  ;;  %v6145_v31 = vadd.f32 %v3352_v2, %v3264_v49 }
 0x6ba   :  { %v2908_v38 = vmax.f32 %v2851_v19, 0.0  ;;  %3391 = vmatmul.bf16.gmra.mxu1 %v5793_v13  ;;  %3435 = vmatmul.bf16.vlgmr.msrb.gmra.mxu2 %v6027_v59  ;;  %v3269_v13 = vadd.f32 %v6123_v35, %v6079_v56  ;;  %v2863_v41 = vpop.f32.mrf.mxu3  ;;  %v3276_v19 = vadd.f32 %v6123_v35, %v6112_v57 }
 0x6bc   :  { %v2940_v23 = vpack.c.bf16 %v2908_v38, %v2908_v38 }
 0x6bd   :  { %v2764_v45 = vpop.f32.mrf.mxu2 }
 0x6be   :  { %v3004_v1 = vunpack.c.l.b16 %v2940_v23  ;;  %v2765_v39 = vadd.f32 %v6008_v20, %v2764_v45 }
 0x6bf   :  { %v3354_v14 = vpop.f32.mrf.mxu1 }
 0x6c0   :  { %v6152_v0 = vadd.f32 %v3354_v14, %v3266_v43  ;;  %v6154_v44 = vpack.c.b16 %v3004_v1, %v3003_v15  ;;  %v2854_v21 = vadd.f32 %v2853_v7, %v2765_v39 }
 0x6c2   :  { %v2909_v59 = vmax.f32 %v2854_v21, 0.0  ;;  %v2865_v63 = vpop.f32.mrf.mxu3 }
 0x6c4   :  { %v2941_v54 = vpack.c.bf16 %v2909_v59, %v2909_v59 }
 0x6c5   :  { %v2766_v61 = vpop.f32.mrf.mxu2 }
 0x6c6   :  { %v2767_v46 = vadd.f32 %v6008_v20, %v2766_v61  ;;  %v3005_v56 = vunpack.c.l.b16 %v2941_v54 }
 0x6c7   :  { %v3357_v5 = vpop.f32.mrf.mxu1 }
 0x6c8   :  { %v2856_v62 = vadd.f32 %v2855_v28, %v2767_v46  ;;  %v6159_v33 = vadd.f32 %v3357_v5, %v3269_v13 }
 0x6ca   :  { %v2910_v22 = vmax.f32 %v2856_v62, 0.0  ;;  %3396 = vmatmul.bf16.gmra.mxu1 %v5803_v17  ;;  %3440 = vmatmul.bf16.gmra.mxu2 %v6048_v8  ;;  %v3274_v17 = vadd.f32 %v6123_v35, %v6104_v34 }
 0x6cc   :  { %v2942_v36 = vpack.c.bf16 %v2910_v22, %v2910_v22 }
 0x6cd   :  { %v2769_v7 = vpop.f32.mrf.mxu2 }
 0x6ce   :  { %v3006_v25 = vunpack.c.l.b16 %v2942_v36  ;;  %v2770_v60 = vadd.f32 %v6008_v20, %v2769_v7 }
 0x6cf   :  { %v3359_v42 = vpop.f32.mrf.mxu1 }
 0x6d0   :  { %v6166_v28 = vadd.f32 %v3359_v42, %v3271_v52  ;;  %v6168_v16 = vpack.c.b16 %v3006_v25, %v3005_v56  ;;  %v2859_v50 = vadd.f32 %v2858_v29, %v2770_v60  ;;  %v2868_v29 = vpop.f32.mrf.mxu3 }
 0x6d2   :  { %v2911_v8 = vmax.f32 %v2859_v50, 0.0 }
 0x6d4   :  { %v2943_v49 = vpack.c.bf16 %v2911_v8, %v2911_v8 }
 0x6d5   :  { %v2771_v47 = vpop.f32.mrf.mxu2 }
 0x6d6   :  { %v2772_v18 = vadd.f32 %v6008_v20, %v2771_v47  ;;  %v3007_v34 = vunpack.c.l.b16 %v2943_v49 }
 0x6d7   :  { %v3362_v10 = vpop.f32.mrf.mxu1 }
 0x6d8   :  { %v2861_v27 = vadd.f32 %v2860_v24, %v2772_v18  ;;  %v6173_v12 = vadd.f32 %v3362_v10, %v3274_v17  ;;  %v2870_v39 = vpop.f32.mrf.mxu3 }
 0x6da   :  { %v2912_v32 = vmax.f32 %v2861_v27, 0.0  ;;  %3401 = vmatmul.bf16.gmra.mxu1 %v5815_v3  ;;  %3445 = vmatmul.bf16.gmra.mxu2 %v6066_v4 }
 0x6dc   :  { %v2944_v37 = vpack.c.bf16 %v2912_v32, %v2912_v32 }
 0x6dd   :  { %v2774_v2 = vpop.f32.mrf.mxu2 }
 0x6de   :  { %v3008_v55 = vunpack.c.l.b16 %v2944_v37  ;;  %v2775_v38 = vadd.f32 %v6008_v20, %v2774_v2 }
 0x6df   :  { %v3364_v23 = vpop.f32.mrf.mxu1 }
 0x6e0   :  { %v6180_v45 = vadd.f32 %v3364_v23, %v3276_v19  ;;  %v6182_v43 = vpack.c.b16 %v3008_v55, %v3007_v34  ;;  %v2864_v15 = vadd.f32 %v2863_v41, %v2775_v38  ;;  %v2873_v62 = vpop.f32.mrf.mxu3 }
 0x6e2   :  { %v2913_v3 = vmax.f32 %v2864_v15, 0.0 }
 0x6e4   :  { %v2945_v14 = vpack.c.bf16 %v2913_v3, %v2913_v3 }
 0x6e5   :  { %v2776_v1 = vpop.f32.mrf.mxu2 }
 0x6e6   :  { %v2777_v4 = vadd.f32 %v6008_v20, %v2776_v1  ;;  %v3009_v13 = vunpack.c.l.b16 %v2945_v14 }
 0x6e8   :  { %v2866_v24 = vadd.f32 %v2865_v63, %v2777_v4 }
 0x6ea   :  { %v2914_v21 = vmax.f32 %v2866_v24, 0.0  ;;  %3406 = vmatmul.bf16.gmra.mxu1 %v5827_v6  ;;  %3450 = vmatmul.bf16.gmra.mxu2 %v6084_v9  ;;  %v2875_v6 = vpop.f32.mrf.mxu3 }
 0x6ec   :  { %v2946_v57 = vpack.c.bf16 %v2914_v21, %v2914_v21 }
 0x6ed   :  { %v2779_v61 = vpop.f32.mrf.mxu2 }
 0x6ee   :  { %v3010_v59 = vunpack.c.l.b16 %v2946_v57  ;;  %v2780_v46 = vadd.f32 %v6008_v20, %v2779_v61 }
 0x6f0   :  { %v6188_v5 = vpack.c.b16 %v3010_v59, %v3009_v13  ;;  %v2869_v41 = vadd.f32 %v2868_v29, %v2780_v46 }
 0x6f2   :  { %v2915_v22 = vmax.f32 %v2869_v41, 0.0  ;;  %v2878_v17 = vpop.f32.mrf.mxu3 }
 0x6f4   :  { %v2947_v52 = vpack.c.bf16 %v2915_v22, %v2915_v22 }
 0x6f5   :  { %v2781_v54 = vpop.f32.mrf.mxu2 }
 0x6f6   :  { %v2782_v36 = vadd.f32 %v6008_v20, %v2781_v54  ;;  %v3011_v60 = vunpack.c.l.b16 %v2947_v52 }
 0x6f8   :  { %v2871_v7 = vadd.f32 %v2870_v39, %v2782_v36 }
 0x6fa   :  { %v2916_v56 = vmax.f32 %v2871_v7, 0.0  ;;  %3411 = vmatmul.bf16.gmra.mxu1 %v5837_v51  ;;  %3455 = vmatmul.bf16.gmra.mxu2 %v6102_v30  ;;  %v2880_v19 = vpop.f32.mrf.mxu3 }
 0x6fc   :  { %v2948_v9 = vpack.c.bf16 %v2916_v56, %v2916_v56 }
 0x6fd   :  { %v2784_v25 = vpop.f32.mrf.mxu2 }
 0x6fe   :  { %v3012_v42 = vunpack.c.l.b16 %v2948_v9  ;;  %v2785_v50 = vadd.f32 %v6008_v20, %v2784_v25 }
 0x700   :  { %v6194_v63 = vpack.c.b16 %v3012_v42, %v3011_v60  ;;  %v2874_v47 = vadd.f32 %v2873_v62, %v2785_v50 }
 0x702   :  { %v2917_v18 = vmax.f32 %v2874_v47, 0.0  ;;  %v2883_v3 = vpop.f32.mrf.mxu3 }
 0x704   :  { %v2949_v49 = vpack.c.bf16 %v2917_v18, %v2917_v18 }
 0x705   :  { %v2786_v8 = vpop.f32.mrf.mxu2 }
 0x706   :  { %v2787_v10 = vadd.f32 %v6008_v20, %v2786_v8  ;;  %v3013_v37 = vunpack.c.l.b16 %v2949_v49 }
 0x708   :  { %v2876_v27 = vadd.f32 %v2875_v6, %v2787_v10 }
 0x70a   :  { %v2918_v51 = vmax.f32 %v2876_v27, 0.0  ;;  %3416 = vmatmul.bf16.gmra.mxu1 %v5849_v53  ;;  %3460 = vmatmul.bf16.gmra.mxu2 %v6118_v48  ;;  %v2885_v13 = vpop.f32.mrf.mxu3 }
 0x70c   :  { %v2950_v30 = vpack.c.bf16 %v2918_v51, %v2918_v51 }
 0x70d   :  { %v2789_v32 = vpop.f32.mrf.mxu2 }
 0x70e   :  { %v3014_v29 = vunpack.c.l.b16 %v2950_v30  ;;  %v2790_v2 = vadd.f32 %v6008_v20, %v2789_v32  ;;  %v3278_v32 = vpop.f32.mrf.mxu0 }
 0x710   :  { %v6200_v34 = vpack.c.b16 %v3014_v29, %v3013_v37  ;;  %v2879_v55 = vadd.f32 %v2878_v17, %v2790_v2 }
 0x712   :  { %v2919_v23 = vmax.f32 %v2879_v55, 0.0 }
 0x714   :  { %v2951_v4 = vpack.c.bf16 %v2919_v23, %v2919_v23 }
 0x715   :  { %v2791_v38 = vpop.f32.mrf.mxu2 }
 0x716   :  { %v2792_v15 = vadd.f32 %v6008_v20, %v2791_v38  ;;  %v3015_v24 = vunpack.c.l.b16 %v2951_v4 }
 0x718   :  { %v2881_v1 = vadd.f32 %v2880_v19, %v2792_v15 }
 0x71a   :  { %v2920_v53 = vmax.f32 %v2881_v1, 0.0  ;;  %3421 = vmatmul.bf16.gmra.mxu1 %v5858_v40  ;;  %3465 = vmatmul.bf16.gmra.mxu2 %v6139_v58  ;;  %v2888_v58 = vpop.f32.mrf.mxu3 }
 0x71c   :  { %v2952_v48 = vpack.c.bf16 %v2920_v53, %v2920_v53 }
 0x71d   :  { %v2794_v39 = vpop.f32.mrf.mxu2 }
 0x71e   :  { %v3016_v14 = vunpack.c.l.b16 %v2952_v48  ;;  %v2795_v21 = vadd.f32 %v6008_v20, %v2794_v39 }
 0x720   :  { %v6206_v57 = vpack.c.b16 %v3016_v14, %v3015_v24  ;;  %v2884_v61 = vadd.f32 %v2883_v3, %v2795_v21 }
 0x722   :  { %v2921_v46 = vmax.f32 %v2884_v61, 0.0  ;;  %v2890_v50 = vpop.f32.mrf.mxu3 }
 0x724   :  { %v2953_v54 = vpack.c.bf16 %v2921_v46, %v2921_v46 }
 0x725   :  { %v2796_v59 = vpop.f32.mrf.mxu2 }
 0x726   :  { %v2797_v62 = vadd.f32 %v6008_v20, %v2796_v59  ;;  %v3017_v7 = vunpack.c.l.b16 %v2953_v54 }
 0x728   :  { %v2886_v41 = vadd.f32 %v2885_v13, %v2797_v62 }
 0x72a   :  { %v2922_v22 = vmax.f32 %v2886_v41, 0.0  ;;  %3470 = vmatmul.bf16.gmra.mxu2 %v6154_v44 }
 0x72c   :  { %v2954_v40 = vpack.c.bf16 %v2922_v22, %v2922_v22 }
 0x72d   :  { %v2799_v36 = vpop.f32.mrf.mxu2 }
 0x72e   :  { %v3018_v52 = vunpack.c.l.b16 %v2954_v40  ;;  %v2800_v56 = vadd.f32 %v6008_v20, %v2799_v36 }
 0x730   :  { %v6211_v6 = vpack.c.b16 %v3018_v52, %v3017_v7  ;;  %v2889_v9 = vadd.f32 %v2888_v58, %v2800_v56 }
 0x732   :  { %v2923_v60 = vmax.f32 %v2889_v9, 0.0 }
 0x734   :  { %v2955_v17 = vpack.c.bf16 %v2923_v60, %v2923_v60 }
 0x735   :  { %v2801_v25 = vpop.f32.mrf.mxu2 }
 0x736   :  { %v2802_v42 = vadd.f32 %v6008_v20, %v2801_v25  ;;  %v3019_v10 = vunpack.c.l.b16 %v2955_v17 }
 0x738   :  { %v2891_v47 = vadd.f32 %v2890_v50, %v2802_v42 }
 0x73a   :  { %v2924_v8 = vmax.f32 %v2891_v47, 0.0  ;;  %3475 = vmatmul.bf16.gmra.mxu2 %v6168_v16  ;;  %v3367_v16 = vpop.f32.mrf.mxu1 }
 0x73c   :  { %v2956_v44 = vpack.c.bf16 %v2924_v8, %v2924_v8 }
 0x73d   :  { %v3436_v18 = vpop.f32.mrf.mxu2 }
 0x73e   :  { %v3020_v27 = vunpack.c.l.b16 %v2956_v44  ;;  %v6216_v49 = vadd.f32 %v3436_v18, %v6131_v26  ;;  %v3280_v26 = vpop.f32.mrf.mxu0 }
 0x73f   :  { %v3281_v21 = vadd.f32 %v6123_v35, %v3280_v26 }
 0x740   :  { %3516 = vmax.xlane.f32.xlu2 %v6216_v49  ;;  %v6219_v51 = vpack.c.b16 %v3020_v27, %v3019_v10 }
 0x742   :  { %v3369_v2 = vpop.f32.mrf.mxu1 }
 0x743   :  { %v3370_v61 = vadd.f32 %v3369_v2, %v3281_v21 }
 0x745   :  { %v3438_v30 = vpop.f32.mrf.mxu2 }
 0x746   :  { %v6222_v20 = vadd.f32 %v3438_v30, %v6137_v11  ;;  %v3283_v11 = vpop.f32.mrf.mxu0 }
 0x748   :  { %3518 = vmax.xlane.f32.xlu0 %v6222_v20 }
 0x74a   :  { %3480 = vmatmul.bf16.gmra.mxu2 %v6182_v43  ;;  %v3372_v23 = vpop.f32.mrf.mxu1 }
 0x74d   :  { %v3441_v37 = vpop.f32.mrf.mxu2 }
 0x74e   :  { %v6227_v29 = vadd.f32 %v3441_v37, %v6145_v31  ;;  %v3285_v1 = vpop.f32.mrf.mxu0 }
 0x74f   :  { %v3286_v58 = vadd.f32 %v6123_v35, %v3285_v1 }
 0x750   :  { %3520 = vmax.xlane.f32.xlu1 %v6227_v29 }
 0x755   :  { %v3443_v19 = vpop.f32.mrf.mxu2 }
 0x756   :  { %v6231_v55 = vadd.f32 %v3443_v19, %v6152_v0  ;;  %v3374_v0 = vpop.f32.mrf.mxu1 }
 0x757   :  { %v3375_v36 = vadd.f32 %v3374_v0, %v3286_v58 }
 0x758   :  { %3522 = vmax.xlane.f32.xlu2 %v6231_v55 }
 0x75a   :  { %3485 = vmatmul.bf16.gmra.mxu2 %v6188_v5 }
 0x75d   :  { %v3446_v38 = vpop.f32.mrf.mxu2 }
 0x75e   :  { %v6236_v43 = vadd.f32 %v3446_v38, %v6159_v33  ;;  %v3288_v33 = vpop.f32.mrf.mxu0  ;;  %v3377_v4 = vpop.f32.mrf.mxu1 }
 0x75f   :  { %v3289_v9 = vadd.f32 %v6123_v35, %v3288_v33 }
 0x760   :  { %3524 = vmax.xlane.f32.xlu2 %v6236_v43 }
 0x761   :  { %v3378_v25 = vadd.f32 %v3377_v4, %v3289_v9 }
 0x765   :  { %v3448_v31 = vpop.f32.mrf.mxu2 }
 0x766   :  { %v6240_v15 = vadd.f32 %v3448_v31, %v6166_v28  ;;  %v3279_v28 = vadd.f32 %v6123_v35, %v3278_v32  ;;  %v3290_v39 = vpop.f32.mrf.mxu0  ;;  %v3379_v24 = vpop.f32.mrf.mxu1 }
 0x767   :  { %v3291_v50 = vadd.f32 %v6123_v35, %v3290_v39 }
 0x768   :  { %3526 = vmax.xlane.f32.xlu0 %v6240_v15 }
 0x769   :  { %v3380_v17 = vadd.f32 %v3379_v24, %v3291_v50 }
 0x76a   :  { %3490 = vmatmul.bf16.gmra.mxu2 %v6194_v63  ;;  %v3368_v63 = vadd.f32 %v3367_v16, %v3279_v28 }
 0x76d   :  { %v3451_v3 = vpop.f32.mrf.mxu2 }
 0x76e   :  { %v6245_v5 = vadd.f32 %v3451_v3, %v6173_v12  ;;  %v3293_v13 = vpop.f32.mrf.mxu0  ;;  %v3382_v46 = vpop.f32.mrf.mxu1 }
 0x76f   :  { %v3294_v10 = vadd.f32 %v6123_v35, %v3293_v13 }
 0x770   :  { %3528 = vmax.xlane.f32.xlu1 %v6245_v5 }
 0x775   :  { %v3453_v53 = vpop.f32.mrf.mxu2 }
 0x776   :  { %v6249_v48 = vadd.f32 %v3453_v53, %v6180_v45  ;;  %v3295_v22 = vpop.f32.mrf.mxu0  ;;  %v3384_v40 = vpop.f32.mrf.mxu1 }
 0x777   :  { %v3296_v37 = vadd.f32 %v6123_v35, %v3295_v22 }
 0x778   :  { %3530 = vmax.xlane.f32.xlu2 %v6249_v48 }
 0x779   :  { %v3385_v2 = vadd.f32 %v3384_v40, %v3296_v37 }
 0x77a   :  { %3495 = vmatmul.bf16.gmra.mxu2 %v6200_v34  ;;  %v3284_v34 = vadd.f32 %v6123_v35, %v3283_v11 }
 0x77c   :  { %v3373_v62 = vadd.f32 %v3372_v23, %v3284_v34 }
 0x77d   :  { %v3456_v14 = vpop.f32.mrf.mxu2 }
 0x77e   :  { %v6254_v12 = vadd.f32 %v3456_v14, %v3368_v63  ;;  %v3298_v56 = vpop.f32.mrf.mxu0 }
 0x77f   :  { %v3299_v1 = vadd.f32 %v6123_v35, %v3298_v56 }
 0x780   :  { %3532 = vmax.xlane.f32.xlu0 %v6254_v12 }
 0x785   :  { %v3458_v45 = vpop.f32.mrf.mxu2 }
 0x786   :  { %v6258_v59 = vadd.f32 %v3458_v45, %v3370_v61  ;;  %v3300_v47 = vpop.f32.mrf.mxu0 }
 0x787   :  { %v3301_v63 = vadd.f32 %v6123_v35, %v3300_v47 }
 0x788   :  { %3534 = vmax.xlane.f32.xlu1 %v6258_v59 }
 0x78a   :  { %3500 = vmatmul.bf16.gmra.mxu2 %v6206_v57  ;;  %v3387_v57 = vpop.f32.mrf.mxu1 }
 0x78b   :  { %v3388_v3 = vadd.f32 %v3387_v57, %v3299_v1 }
 0x78d   :  { %v3461_v41 = vpop.f32.mrf.mxu2 }
 0x78e   :  { %v6263_v54 = vadd.f32 %v3461_v41, %v3373_v62  ;;  %v3303_v27 = vpop.f32.mrf.mxu0 }
 0x78f   :  { %v3304_v34 = vadd.f32 %v6123_v35, %v3303_v27 }
 0x790   :  { %3536 = vmax.xlane.f32.xlu2 %v6263_v54 }
 0x792   :  { %v3389_v8 = vpop.f32.mrf.mxu1 }
 0x793   :  { %v3390_v21 = vadd.f32 %v3389_v8, %v3301_v63 }
 0x795   :  { %v3463_v7 = vpop.f32.mrf.mxu2 }
 0x796   :  { %v6267_v52 = vadd.f32 %v3463_v7, %v3375_v36 }
 0x798   :  { %3538 = vmax.xlane.f32.xlu0 %v6267_v52 }
 0x79a   :  { %3505 = vmatmul.bf16.gmra.mxu2 %v6211_v6  ;;  %v3383_v6 = vadd.f32 %v3382_v46, %v3294_v10  ;;  %v3392_v16 = vpop.f32.mrf.mxu1 }
 0x79b   :  { %v3393_v22 = vadd.f32 %v3392_v16, %v3304_v34 }
 0x79d   :  { %v3466_v60 = vpop.f32.mrf.mxu2 }
 0x79e   :  { %v6272_v42 = vadd.f32 %v3466_v60, %v3378_v25 }
 0x7a0   :  { %3540 = vmax.xlane.f32.xlu1 %v6272_v42 }
 0x7a2   :  { %v3394_v31 = vpop.f32.mrf.mxu1 }
 0x7a5   :  { %v3468_v44 = vpop.f32.mrf.mxu2 }
 0x7a6   :  { %v6276_v18 = vadd.f32 %v3468_v44, %v3380_v17 }
 0x7a8   :  { %3542 = vmax.xlane.f32.xlu2 %v6276_v18 }
 0x7aa   :  { %3510 = vmatmul.bf16.gmra.mxu2 %v6219_v51  ;;  %v3305_v51 = vpop.f32.mrf.mxu0  ;;  %v3397_v24 = vpop.f32.mrf.mxu1 }
 0x7ab   :  { %v3306_v9 = vadd.f32 %v6123_v35, %v3305_v51 }
 0x7ad   :  { %v3471_v30 = vpop.f32.mrf.mxu2  ;;  %v3395_v25 = vadd.f32 %v3394_v31, %v3306_v9 }
 0x7ae   :  { %v6281_v32 = vadd.f32 %v3471_v30, %v3383_v6 }
 0x7b0   :  { %3544 = vmax.xlane.f32.xlu0 %v6281_v32 }
 0x7b2   :  { %v3308_v39 = vpop.f32.mrf.mxu0 }
 0x7b3   :  { %v3517_v26 = vpop.xlane.xlu2 %3516  ;;  %v3309_v10 = vadd.f32 %v6123_v35, %v3308_v39 }
 0x7b4   :  { %v6286_v19 = vsub.f32 %v6216_v49, %v3517_v26 }
 0x7b5   :  { %v3473_v11 = vpop.f32.mrf.mxu2  ;;  %v3398_v27 = vadd.f32 %v3397_v24, %v3309_v10 }
 0x7b6   :  { %v3612_v38 = vmul.f32 1.442695, %v6286_v19  ;;  %v6289_v23 = vadd.f32 %v3473_v11, %v3385_v2 }
 0x7b8   :  { %4531 = vpow2.f32 %v3612_v38  ;;  %3546 = vmax.xlane.f32.xlu1 %v6289_v23 }
 0x7ba   :  { %v3310_v62 = vpop.f32.mrf.mxu0 }
 0x7bb   :  { %v3519_v0 = vpop.xlane.xlu0 %3518  ;;  %v3311_v38 = vadd.f32 %v6123_v35, %v3310_v62 }
 0x7bc   :  { %v6294_v33 = vsub.f32 %v6222_v20, %v3519_v0 }
 0x7bd   :  { %v3476_v4 = vpop.f32.mrf.mxu2 }
 0x7be   :  { %v4532_v49 = vpop.eup %4531  ;;  %v3614_v53 = vmul.f32 1.442695, %v6294_v33  ;;  %v6297_v28 = vadd.f32 %v3476_v4, %v3388_v3 }
 0x7bf   :  { %3676 = vadd.xlane.f32.xlu0 %v4532_v49 }
 0x7c0   :  { %4533 = vpow2.f32 %v3614_v53  ;;  %3548 = vmax.xlane.f32.xlu2 %v6297_v28 }
 0x7c3   :  { %v3521_v14 = vpop.xlane.xlu1 %3520 }
 0x7c4   :  { %v6302_v61 = vsub.f32 %v6227_v29, %v3521_v14  ;;  %v3399_v29 = vpop.f32.mrf.mxu1 }
 0x7c5   :  { %v3478_v20 = vpop.f32.mrf.mxu2  ;;  %v3400_v31 = vadd.f32 %v3399_v29, %v3311_v38 }
 0x7c6   :  { %v4534_v13 = vpop.eup %4533  ;;  %v3616_v45 = vmul.f32 1.442695, %v6302_v61  ;;  %v6305_v46 = vadd.f32 %v3478_v20, %v3390_v21 }
 0x7c7   :  { %3678 = vadd.xlane.f32.xlu1 %v4534_v13 }
 0x7c8   :  { %4535 = vpow2.f32 %v3616_v45  ;;  %3550 = vmax.xlane.f32.xlu0 %v6305_v46 }
 0x7cb   :  { %v3523_v41 = vpop.xlane.xlu2 %3522 }
 0x7cc   :  { %v6310_v40 = vsub.f32 %v6231_v55, %v3523_v41  ;;  %v3313_v55 = vpop.f32.mrf.mxu0  ;;  %v3402_v44 = vpop.f32.mrf.mxu1 }
 0x7cd   :  { %v3481_v58 = vpop.f32.mrf.mxu2  ;;  %v3314_v53 = vadd.f32 %v6123_v35, %v3313_v55 }
 0x7ce   :  { %v4536_v36 = vpop.eup %4535  ;;  %v3618_v7 = vmul.f32 1.442695, %v6310_v40  ;;  %v6313_v56 = vadd.f32 %v3481_v58, %v3393_v22 }
 0x7cf   :  { %3680 = vadd.xlane.f32.xlu2 %v4536_v36  ;;  %v3403_v24 = vadd.f32 %v3402_v44, %v3314_v53 }
 0x7d0   :  { %4537 = vpow2.f32 %v3618_v7  ;;  %3552 = vmax.xlane.f32.xlu1 %v6313_v56 }
 0x7d3   :  { %v3525_v57 = vpop.xlane.xlu2 %3524 }
 0x7d4   :  { %v6318_v60 = vsub.f32 %v6236_v43, %v3525_v57  ;;  %v3315_v2 = vpop.f32.mrf.mxu0  ;;  %v3404_v11 = vpop.f32.mrf.mxu1 }
 0x7d5   :  { %v3483_v50 = vpop.f32.mrf.mxu2  ;;  %v3316_v45 = vadd.f32 %v6123_v35, %v3315_v2 }
 0x7d6   :  { %v4538_v47 = vpop.eup %4537  ;;  %v3620_v17 = vmul.f32 1.442695, %v6318_v60  ;;  %v6321_v8 = vadd.f32 %v3483_v50, %v3395_v25 }
 0x7d7   :  { %3682 = vadd.xlane.f32.xlu0 %v4538_v47  ;;  %v3405_v41 = vadd.f32 %v3404_v11, %v3316_v45 }
 0x7d8   :  { %4539 = vpow2.f32 %v3620_v17  ;;  %3554 = vmax.xlane.f32.xlu2 %v6321_v8 }
 0x7db   :  { %v3527_v6 = vpop.xlane.xlu0 %3526 }
 0x7dc   :  { %v6326_v30 = vsub.f32 %v6240_v15, %v3527_v6  ;;  %v3318_v49 = vpop.f32.mrf.mxu0  ;;  %v3407_v39 = vpop.f32.mrf.mxu1 }
 0x7dd   :  { %v3486_v43 = vpop.f32.mrf.mxu2  ;;  %v3319_v9 = vadd.f32 %v6123_v35, %v3318_v49 }
 0x7de   :  { %v4540_v16 = vpop.eup %4539  ;;  %v3622_v37 = vmul.f32 1.442695, %v6326_v30  ;;  %v6329_v26 = vadd.f32 %v3486_v43, %v3398_v27 }
 0x7df   :  { %3684 = vadd.xlane.f32.xlu1 %v4540_v16  ;;  %v3408_v25 = vadd.f32 %v3407_v39, %v3319_v9 }
 0x7e0   :  { %4541 = vpow2.f32 %v3622_v37  ;;  %3556 = vmax.xlane.f32.xlu0 %v6329_v26 }
 0x7e3   :  { %v3529_v51 = vpop.xlane.xlu1 %3528 }
 0x7e4   :  { %v6334_v1 = vsub.f32 %v6245_v5, %v3529_v51  ;;  %v3320_v34 = vpop.f32.mrf.mxu0 }
 0x7e5   :  { %v3488_v15 = vpop.f32.mrf.mxu2  ;;  %v3321_v6 = vadd.f32 %v6123_v35, %v3320_v34 }
 0x7e6   :  { %v4542_v0 = vpop.eup %4541  ;;  %v3624_v3 = vmul.f32 1.442695, %v6334_v1  ;;  %v6337_v4 = vadd.f32 %v3488_v15, %v3400_v31 }
 0x7e7   :  { %3686 = vadd.xlane.f32.xlu2 %v4542_v0 }
 0x7e8   :  { %4543 = vpow2.f32 %v3624_v3  ;;  %3558 = vmax.xlane.f32.xlu1 %v6337_v4 }
 0x7eb   :  { %v3531_v63 = vpop.xlane.xlu2 %3530 }
 0x7ec   :  { %v6342_v14 = vsub.f32 %v6249_v48, %v3531_v63  ;;  %v3409_v48 = vpop.f32.mrf.mxu1 }
 0x7ed   :  { %v3491_v5 = vpop.f32.mrf.mxu2  ;;  %v3410_v43 = vadd.f32 %v3409_v48, %v3321_v6 }
 0x7ee   :  { %v4544_v21 = vpop.eup %4543  ;;  %v3626_v20 = vmul.f32 1.442695, %v6342_v14  ;;  %v6345_v13 = vadd.f32 %v3491_v5, %v3403_v24 }
 0x7ef   :  { %3688 = vadd.xlane.f32.xlu0 %v4544_v21 }
 0x7f0   :  { %4545 = vpow2.f32 %v3626_v20  ;;  %3560 = vmax.xlane.f32.xlu2 %v6345_v13 }
 0x7f3   :  { %v3533_v62 = vpop.xlane.xlu0 %3532 }
 0x7f4   :  { %v6350_v22 = vsub.f32 %v6254_v12, %v3533_v62  ;;  %v3323_v12 = vpop.f32.mrf.mxu0  ;;  %v3412_v10 = vpop.f32.mrf.mxu1 }
 0x7f5   :  { %v3493_v29 = vpop.f32.mrf.mxu2  ;;  %v3324_v31 = vadd.f32 %v6123_v35, %v3323_v12 }
 0x7f6   :  { %v4546_v58 = vpop.eup %4545  ;;  %v3628_v36 = vmul.f32 1.442695, %v6350_v22  ;;  %v6353_v7 = vadd.f32 %v3493_v29, %v3405_v41 }
 0x7f7   :  { %3690 = vadd.xlane.f32.xlu1 %v4546_v58  ;;  %v3413_v15 = vadd.f32 %v3412_v10, %v3324_v31 }
 0x7f8   :  { %4547 = vpow2.f32 %v3628_v36  ;;  %3562 = vmax.xlane.f32.xlu0 %v6353_v7 }
 0x7fb   :  { %v3535_v57 = vpop.xlane.xlu1 %3534 }
 0x7fc   :  { %v6358_v55 = vsub.f32 %v6258_v59, %v3535_v57  ;;  %v3325_v38 = vpop.f32.mrf.mxu0  ;;  %v3414_v51 = vpop.f32.mrf.mxu1 }
 0x7fd   :  { %v3496_v50 = vpop.f32.mrf.mxu2  ;;  %v3326_v53 = vadd.f32 %v6123_v35, %v3325_v38 }
 0x7fe   :  { %v4548_v47 = vpop.eup %4547  ;;  %v3630_v17 = vmul.f32 1.442695, %v6358_v55  ;;  %v6361_v44 = vadd.f32 %v3496_v50, %v3408_v25 }
 0x7ff   :  { %3692 = vadd.xlane.f32.xlu2 %v4548_v47  ;;  %v3415_v63 = vadd.f32 %v3414_v51, %v3326_v53 }
 0x800   :  { %4549 = vpow2.f32 %v3630_v17  ;;  %3564 = vmax.xlane.f32.xlu1 %v6361_v44 }
 0x803   :  { %v3537_v27 = vpop.xlane.xlu2 %3536 }
 0x804   :  { %v6366_v16 = vsub.f32 %v6263_v54, %v3537_v27  ;;  %v3328_v54 = vpop.f32.mrf.mxu0  ;;  %v3417_v39 = vpop.f32.mrf.mxu1 }
 0x805   :  { %v3498_v59 = vpop.f32.mrf.mxu2  ;;  %v3329_v21 = vadd.f32 %v6123_v35, %v3328_v54 }
 0x806   :  { %v4550_v37 = vpop.eup %4549  ;;  %v3632_v2 = vmul.f32 1.442695, %v6366_v16  ;;  %v6369_v11 = vadd.f32 %v3498_v59, %v3410_v43 }
 0x807   :  { %3694 = vadd.xlane.f32.xlu0 %v4550_v37  ;;  %v3418_v45 = vadd.f32 %v3417_v39, %v3329_v21 }
 0x808   :  { %4551 = vpow2.f32 %v3632_v2  ;;  %3566 = vmax.xlane.f32.xlu2 %v6369_v11 }
 0x80b   :  { %v3539_v36 = vpop.xlane.xlu0 %3538 }
 0x80c   :  { %v3330_v20 = vpop.f32.mrf.mxu0  ;;  %v3419_v34 = vpop.f32.mrf.mxu1 }
 0x80d   :  { %v3501_v0 = vpop.f32.mrf.mxu2  ;;  %v3331_v58 = vadd.f32 %v6123_v35, %v3330_v20 }
 0x80e   :  { %v4552_v3 = vpop.eup %4551  ;;  %v6373_v49 = vadd.f32 %v3501_v0, %v3413_v15  ;;  %v6405_v0 = vsub.f32 %v6267_v52, %v3539_v36 }
 0x80f   :  { %3696 = vadd.xlane.f32.xlu1 %v4552_v3  ;;  %v3420_v9 = vadd.f32 %v3419_v34, %v3331_v58 }
 0x810   :  { %3568 = vmax.xlane.f32.xlu0 %v6373_v49 }
 0x813   :  { %v3541_v41 = vpop.xlane.xlu1 %3540 }
 0x814   :  { %v6385_v29 = vsub.f32 %v6272_v42, %v3541_v41  ;;  %v3333_v57 = vpop.f32.mrf.mxu0  ;;  %v3422_v47 = vpop.f32.mrf.mxu1 }
 0x815   :  { %v3503_v24 = vpop.f32.mrf.mxu2  ;;  %v3334_v10 = vadd.f32 %v6123_v35, %v3333_v57 }
 0x816   :  { %v6377_v5 = vadd.f32 %v3503_v24, %v3415_v63  ;;  %v3636_v25 = vmul.f32 1.442695, %v6385_v29  ;;  %v3634_v63 = vmul.f32 1.442695, %v6405_v0 }
 0x817   :  { %v3423_v43 = vadd.f32 %v3422_v47, %v3334_v10 }
 0x818   :  { %3570 = vmax.xlane.f32.xlu1 %v6377_v5  ;;  %4553 = vpow2.f32 %v3636_v25 }
 0x81b   :  { %v3543_v17 = vpop.xlane.xlu2 %3542 }
 0x81c   :  { %v6394_v42 = vsub.f32 %v6276_v18, %v3543_v17  ;;  %v3335_v15 = vpop.f32.mrf.mxu0  ;;  %v3424_v18 = vpop.f32.mrf.mxu1 }
 0x81d   :  { %v3506_v62 = vpop.f32.mrf.mxu2 }
 0x81e   :  { %v6381_v48 = vadd.f32 %v3506_v62, %v3418_v45  ;;  %v3638_v2 = vmul.f32 1.442695, %v6394_v42  ;;  %v4554_v31 = vpop.eup %4553 }
 0x820   :  { %3572 = vmax.xlane.f32.xlu2 %v6381_v48 }
 0x823   :  { %v3545_v6 = vpop.xlane.xlu0 %3544 }
 0x824   :  { %v6417_v34 = vsub.f32 %v6281_v32, %v3545_v6 }
 0x825   :  { %v3508_v12 = vpop.f32.mrf.mxu2 }
 0x826   :  { %v6389_v50 = vadd.f32 %v3508_v12, %v3420_v9  ;;  %v3640_v58 = vmul.f32 1.442695, %v6417_v34 }
 0x828   :  { %3574 = vmax.xlane.f32.xlu0 %v6389_v50 }
 0x82b   :  { %v3547_v27 = vpop.xlane.xlu1 %3546 }
 0x82c   :  { %v6397_v59 = vsub.f32 %v6289_v23, %v3547_v27  ;;  %v3336_v23 = vadd.f32 %v6123_v35, %v3335_v15 }
 0x82d   :  { %v3511_v37 = vpop.f32.mrf.mxu2 }
 0x82e   :  { %v3642_v38 = vmul.f32 1.442695, %v6397_v59  ;;  %v6401_v51 = vadd.f32 %v3511_v37, %v3423_v43  ;;  %v3425_v53 = vadd.f32 %v3424_v18, %v3336_v23 }
 0x830   :  { %4555 = vpow2.f32 %v3642_v38  ;;  %3700 = vadd.xlane.f32.xlu0 %v4554_v31  ;;  %3576 = vmax.xlane.f32.xlu1 %v6401_v51 }
 0x831   :  { %4557 = vpow2.f32 %v3638_v2 }
 0x832   :  { %v3677_v3 = vpop.xlane.xlu0 %3676 }
 0x833   :  { %4559 = vlog2.f32 %v3677_v3  ;;  %v3549_v54 = vpop.xlane.xlu2 %3548 }
 0x834   :  { %v6409_v39 = vsub.f32 %v6297_v28, %v3549_v54 }
 0x835   :  { %v3513_v24 = vpop.f32.mrf.mxu2 }
 0x836   :  { %v4556_v21 = vpop.eup %4555  ;;  %v3644_v20 = vmul.f32 1.442695, %v6409_v39  ;;  %v6413_v45 = vadd.f32 %v3513_v24, %v3425_v53 }
 0x837   :  { %v4558_v52 = vpop.eup %4557 }
 0x838   :  { %4561 = vpow2.f32 %v3644_v20  ;;  %3578 = vmax.xlane.f32.xlu2 %v6413_v45  ;;  %3706 = vadd.xlane.f32.xlu0 %v4556_v21 }
 0x839   :  { %v4560_v35 = vpop.eup %4559  ;;  %4563 = vpow2.f32 %v3634_v63  ;;  %3702 = vadd.xlane.f32.xlu1 %v4558_v52 }
 0x83a   :  { %v3741_v28 = vmul.f32 0.6931472, %v4560_v35  ;;  %v3679_v62 = vpop.xlane.xlu1 %3678 }
 0x83b   :  { %4565 = vlog2.f32 %v3679_v62  ;;  %v3551_v9 = vpop.xlane.xlu0 %3550 }
 0x83c   :  { %v3804_v41 = vsub.f32 %v6286_v19, %v3741_v28  ;;  %4567 = vpow2.f32 %v3640_v58  ;;  %v6422_v12 = vsub.f32 %v6305_v46, %v3551_v9 }
 0x83e   :  { %v4562_v36 = vpop.eup %4561  ;;  %3836 = vst [vmem:[#allocation11] sm:$0xff] %v3804_v41  ;;  %v3646_v6 = vmul.f32 1.442695, %v6422_v12 }
 0x83f   :  { %v4564_v57 = vpop.eup %4563 }
 0x840   :  { %3698 = vadd.xlane.f32.xlu2 %v4564_v57 }
 0x841   :  { %v4566_v25 = vpop.eup %4565  ;;  %3708 = vadd.xlane.f32.xlu1 %v4562_v36 }
 0x842   :  { %v3743_v32 = vmul.f32 0.6931472, %v4566_v25  ;;  %v3681_v47 = vpop.xlane.xlu2 %3680  ;;  %v4568_v43 = vpop.eup %4567 }
 0x843   :  { %4569 = vlog2.f32 %v3681_v47  ;;  %v3553_v17 = vpop.xlane.xlu1 %3552 }
 0x844   :  { %v3805_v10 = vsub.f32 %v6294_v33, %v3743_v32  ;;  %v6426_v19 = vsub.f32 %v6313_v56, %v3553_v17 }
 0x846   :  { %3837 = vst [vmem:[#allocation11 + $0x8] sm:$0xff] %v3805_v10  ;;  %v3648_v27 = vmul.f32 1.442695, %v6426_v19 }
 0x848   :  { %4571 = vpow2.f32 %v3648_v27  ;;  %3704 = vadd.xlane.f32.xlu2 %v4568_v43 }
 0x849   :  { %v4570_v46 = vpop.eup %4569  ;;  %4573 = vpow2.f32 %v3646_v6 }
 0x84a   :  { %v3745_v37 = vmul.f32 0.6931472, %v4570_v46  ;;  %v3683_v2 = vpop.xlane.xlu0 %3682 }
 0x84b   :  { %4575 = vlog2.f32 %v3683_v2  ;;  %v3555_v38 = vpop.xlane.xlu2 %3554 }
 0x84c   :  { %v3806_v31 = vsub.f32 %v6302_v61, %v3745_v37  ;;  %v6432_v33 = vsub.f32 %v6321_v8, %v3555_v38 }
 0x84e   :  { %v4572_v56 = vpop.eup %4571  ;;  %3838 = vst [vmem:[#allocation11 + $0x10] sm:$0xff] %v3806_v31  ;;  %v3650_v15 = vmul.f32 1.442695, %v6432_v33 }
 0x84f   :  { %v4574_v18 = vpop.eup %4573  ;;  %3712 = vadd.xlane.f32.xlu0 %v4572_v56 }
 0x850   :  { %4577 = vpow2.f32 %v3650_v15  ;;  %3710 = vadd.xlane.f32.xlu2 %v4574_v18 }
 0x851   :  { %v4576_v23 = vpop.eup %4575 }
 0x852   :  { %v3747_v3 = vmul.f32 0.6931472, %v4576_v23  ;;  %v3685_v54 = vpop.xlane.xlu1 %3684 }
 0x853   :  { %4579 = vlog2.f32 %v3685_v54  ;;  %v3557_v53 = vpop.xlane.xlu0 %3556 }
 0x854   :  { %v3807_v63 = vsub.f32 %v6310_v40, %v3747_v3  ;;  %v6437_v61 = vsub.f32 %v6329_v26, %v3557_v53 }
 0x856   :  { %v4578_v8 = vpop.eup %4577  ;;  %3839 = vst [vmem:[#allocation11 + $0x18] sm:$0xff] %v3807_v63  ;;  %v3652_v24 = vmul.f32 1.442695, %v6437_v61 }
 0x857   :  { %3714 = vadd.xlane.f32.xlu1 %v4578_v8 }
 0x858   :  { %4581 = vpow2.f32 %v3652_v24 }
 0x859   :  { %v4580_v21 = vpop.eup %4579 }
 0x85a   :  { %v3749_v20 = vmul.f32 0.6931472, %v4580_v21  ;;  %v3687_v52 = vpop.xlane.xlu2 %3686 }
 0x85b   :  { %4583 = vlog2.f32 %v3687_v52  ;;  %v3559_v35 = vpop.xlane.xlu1 %3558 }
 0x85c   :  { %v3808_v28 = vsub.f32 %v6318_v60, %v3749_v20  ;;  %v6442_v62 = vsub.f32 %v6337_v4, %v3559_v35 }
 0x85e   :  { %v4582_v40 = vpop.eup %4581  ;;  %3840 = vst [vmem:[#allocation11 + $0x20] sm:$0xff] %v3808_v28  ;;  %v3654_v26 = vmul.f32 1.442695, %v6442_v62 }
 0x85f   :  { %3716 = vadd.xlane.f32.xlu2 %v4582_v40 }
 0x860   :  { %4585 = vpow2.f32 %v3654_v26 }
 0x861   :  { %v4584_v41 = vpop.eup %4583 }
 0x862   :  { %v3751_v58 = vmul.f32 0.6931472, %v4584_v41  ;;  %v3689_v36 = vpop.xlane.xlu0 %3688 }
 0x863   :  { %4587 = vlog2.f32 %v3689_v36  ;;  %v3561_v9 = vpop.xlane.xlu2 %3560 }
 0x864   :  { %v3809_v57 = vsub.f32 %v6326_v30, %v3751_v58  ;;  %v6447_v25 = vsub.f32 %v6345_v13, %v3561_v9 }
 0x866   :  { %v4586_v60 = vpop.eup %4585  ;;  %3841 = vst [vmem:[#allocation11 + $0x28] sm:$0xff] %v3809_v57  ;;  %v3656_v4 = vmul.f32 1.442695, %v6447_v25 }
 0x867   :  { %3718 = vadd.xlane.f32.xlu0 %v4586_v60 }
 0x868   :  { %4589 = vpow2.f32 %v3656_v4 }
 0x869   :  { %v4588_v32 = vpop.eup %4587 }
 0x86a   :  { %v3753_v47 = vmul.f32 0.6931472, %v4588_v32  ;;  %v3691_v17 = vpop.xlane.xlu1 %3690 }
 0x86b   :  { %4591 = vlog2.f32 %v3691_v17  ;;  %v3563_v10 = vpop.xlane.xlu0 %3562 }
 0x86c   :  { %v3810_v6 = vsub.f32 %v6334_v1, %v3753_v47  ;;  %v6452_v27 = vsub.f32 %v6353_v7, %v3563_v10 }
 0x86e   :  { %v4590_v30 = vpop.eup %4589  ;;  %3842 = vst [vmem:[#allocation11 + $0x30] sm:$0xff] %v3810_v6  ;;  %v3658_v13 = vmul.f32 1.442695, %v6452_v27 }
 0x86f   :  { %3720 = vadd.xlane.f32.xlu1 %v4590_v30 }
 0x870   :  { %4593 = vpow2.f32 %v3658_v13 }
 0x871   :  { %v4592_v43 = vpop.eup %4591 }
 0x872   :  { %v3755_v46 = vmul.f32 0.6931472, %v4592_v43  ;;  %v3693_v37 = vpop.xlane.xlu2 %3692 }
 0x873   :  { %4595 = vlog2.f32 %v3693_v37  ;;  %v3565_v2 = vpop.xlane.xlu1 %3564 }
 0x874   :  { %v3811_v38 = vsub.f32 %v6342_v14, %v3755_v46  ;;  %v6457_v31 = vsub.f32 %v6361_v44, %v3565_v2 }
 0x876   :  { %v4594_v1 = vpop.eup %4593  ;;  %3843 = vst [vmem:[#allocation11 + $0x38] sm:$0xff] %v3811_v38  ;;  %v3660_v7 = vmul.f32 1.442695, %v6457_v31 }
 0x877   :  { %3722 = vadd.xlane.f32.xlu2 %v4594_v1 }
 0x878   :  { %4597 = vpow2.f32 %v3660_v7 }
 0x879   :  { %v4596_v56 = vpop.eup %4595 }
 0x87a   :  { %v3757_v15 = vmul.f32 0.6931472, %v4596_v56  ;;  %v3695_v18 = vpop.xlane.xlu0 %3694 }
 0x87b   :  { %4599 = vlog2.f32 %v3695_v18  ;;  %v3567_v23 = vpop.xlane.xlu2 %3566 }
 0x87c   :  { %v3812_v3 = vsub.f32 %v6350_v22, %v3757_v15  ;;  %v6462_v54 = vsub.f32 %v6369_v11, %v3567_v23 }
 0x87e   :  { %v4598_v14 = vpop.eup %4597  ;;  %3844 = vst [vmem:[#allocation11 + $0x40] sm:$0xff] %v3812_v3  ;;  %v3662_v44 = vmul.f32 1.442695, %v6462_v54 }
 0x87f   :  { %3724 = vadd.xlane.f32.xlu0 %v4598_v14 }
 0x880   :  { %4601 = vpow2.f32 %v3662_v44 }
 0x881   :  { %v4600_v53 = vpop.eup %4599 }
 0x882   :  { %v3759_v63 = vmul.f32 0.6931472, %v4600_v53  ;;  %v3697_v8 = vpop.xlane.xlu1 %3696 }
 0x883   :  { %4603 = vlog2.f32 %v3697_v8  ;;  %v3569_v24 = vpop.xlane.xlu0 %3568 }
 0x884   :  { %v3813_v21 = vsub.f32 %v6358_v55, %v3759_v63  ;;  %v6467_v20 = vsub.f32 %v6373_v49, %v3569_v24 }
 0x886   :  { %v4602_v22 = vpop.eup %4601  ;;  %3845 = vst [vmem:[#allocation11 + $0x48] sm:$0xff] %v3813_v21  ;;  %v3664_v11 = vmul.f32 1.442695, %v6467_v20 }
 0x887   :  { %3726 = vadd.xlane.f32.xlu1 %v4602_v22 }
 0x888   :  { %4605 = vpow2.f32 %v3664_v11 }
 0x889   :  { %v4604_v52 = vpop.eup %4603 }
 0x88a   :  { %v3761_v35 = vmul.f32 0.6931472, %v4604_v52 }
 0x88b   :  { %v3571_v28 = vpop.xlane.xlu1 %3570 }
 0x88c   :  { %v3814_v40 = vsub.f32 %v6366_v16, %v3761_v35  ;;  %v6472_v26 = vsub.f32 %v6377_v5, %v3571_v28 }
 0x88e   :  { %v4606_v41 = vpop.eup %4605  ;;  %3846 = vst [vmem:[#allocation11 + $0x50] sm:$0xff] %v3814_v40  ;;  %v3666_v55 = vmul.f32 1.442695, %v6472_v26 }
 0x88f   :  { %3728 = vadd.xlane.f32.xlu2 %v4606_v41 }
 0x890   :  { %4607 = vpow2.f32 %v3666_v55 }
 0x893   :  { %v3573_v49 = vpop.xlane.xlu2 %3572 }
 0x894   :  { %v6476_v58 = vsub.f32 %v6381_v48, %v3573_v49 }
 0x896   :  { %v4608_v36 = vpop.eup %4607  ;;  %v3668_v9 = vmul.f32 1.442695, %v6476_v58 }
 0x897   :  { %3730 = vadd.xlane.f32.xlu0 %v4608_v36 }
 0x898   :  { %4609 = vpow2.f32 %v3668_v9 }
 0x89b   :  { %v3575_v57 = vpop.xlane.xlu0 %3574 }
 0x89c   :  { %v6480_v16 = vsub.f32 %v6389_v50, %v3575_v57 }
 0x89e   :  { %v4610_v5 = vpop.eup %4609  ;;  %v3670_v60 = vmul.f32 1.442695, %v6480_v16 }
 0x89f   :  { %3732 = vadd.xlane.f32.xlu1 %v4610_v5 }
 0x8a0   :  { %4611 = vpow2.f32 %v3670_v60 }
 0x8a3   :  { %v3701_v4 = vpop.xlane.xlu0 %3700  ;;  %v3577_v32 = vpop.xlane.xlu1 %3576 }
 0x8a4   :  { %4613 = vlog2.f32 %v3701_v4  ;;  %v6484_v48 = vsub.f32 %v6401_v51, %v3577_v32 }
 0x8a6   :  { %v4612_v47 = vpop.eup %4611  ;;  %v3672_v17 = vmul.f32 1.442695, %v6484_v48 }
 0x8a7   :  { %3734 = vadd.xlane.f32.xlu2 %v4612_v47 }
 0x8a8   :  { %4615 = vpow2.f32 %v3672_v17 }
 0x8aa   :  { %v4614_v10 = vpop.eup %4613 }
 0x8ab   :  { %v3765_v6 = vmul.f32 0.6931472, %v4614_v10  ;;  %v3707_v50 = vpop.xlane.xlu0 %3706  ;;  %v3579_v30 = vpop.xlane.xlu2 %3578 }
 0x8ac   :  { %4617 = vlog2.f32 %v3707_v50  ;;  %v3703_v13 = vpop.xlane.xlu1 %3702  ;;  %v6488_v43 = vsub.f32 %v6413_v45, %v3579_v30 }
 0x8ad   :  { %v3816_v46 = vsub.f32 %v6385_v29, %v3765_v6  ;;  %4619 = vlog2.f32 %v3703_v13 }
 0x8ae   :  { %v4616_v37 = vpop.eup %4615  ;;  %v3674_v51 = vmul.f32 1.442695, %v6488_v43 }
 0x8af   :  { %3848 = vst [vmem:[#allocation11 + $0x60] sm:$0xff] %v3816_v46  ;;  %3736 = vadd.xlane.f32.xlu0 %v4616_v37 }
 0x8b0   :  { %4621 = vpow2.f32 %v3674_v51 }
 0x8b2   :  { %v4618_v2 = vpop.eup %4617 }
 0x8b3   :  { %v4620_v38 = vpop.eup %4619  ;;  %v3771_v1 = vmul.f32 0.6931472, %v4618_v2  ;;  %v3699_v7 = vpop.xlane.xlu2 %3698 }
 0x8b4   :  { %v3767_v56 = vmul.f32 0.6931472, %v4620_v38  ;;  %v3709_v15 = vpop.xlane.xlu1 %3708  ;;  %4623 = vlog2.f32 %v3699_v7 }
 0x8b5   :  { %v3819_v18 = vsub.f32 %v6397_v59, %v3771_v1  ;;  %4625 = vlog2.f32 %v3709_v15 }
 0x8b6   :  { %v4622_v45 = vpop.eup %4621  ;;  %v3817_v29 = vsub.f32 %v6394_v42, %v3767_v56 }
 0x8b7   :  { %3851 = vst [vmem:[#allocation11 + $0x78] sm:$0xff] %v3819_v18  ;;  %3738 = vadd.xlane.f32.xlu1 %v4622_v45 }
 0x8b8   :  { %3849 = vst [vmem:[#allocation11 + $0x68] sm:$0xff] %v3817_v29 }
 0x8ba   :  { %v4624_v23 = vpop.eup %4623 }
 0x8bb   :  { %v4626_v3 = vpop.eup %4625  ;;  %v3763_v14 = vmul.f32 0.6931472, %v4624_v23  ;;  %v3705_v44 = vpop.xlane.xlu2 %3704 }
 0x8bc   :  { %v3773_v53 = vmul.f32 0.6931472, %v4626_v3  ;;  %4627 = vlog2.f32 %v3705_v44 }
 0x8bd   :  { %v3815_v63 = vsub.f32 %v6405_v0, %v3763_v14 }
 0x8be   :  { %v3820_v8 = vsub.f32 %v6409_v39, %v3773_v53 }
 0x8bf   :  { %3847 = vst [vmem:[#allocation11 + $0x58] sm:$0xff] %v3815_v63 }
 0x8c0   :  { %3852 = vst [vmem:[#allocation11 + $0x80] sm:$0xff] %v3820_v8 }
 0x8c2   :  { %v4628_v59 = vpop.eup %4627  ;;  %v3713_v24 = vpop.xlane.xlu0 %3712 }
 0x8c3   :  { %v3769_v21 = vmul.f32 0.6931472, %v4628_v59  ;;  %4629 = vlog2.f32 %v3713_v24  ;;  %v3711_v42 = vpop.xlane.xlu2 %3710 }
 0x8c4   :  { %4631 = vlog2.f32 %v3711_v42 }
 0x8c5   :  { %v3818_v22 = vsub.f32 %v6417_v34, %v3769_v21 }
 0x8c7   :  { %3850 = vst [vmem:[#allocation11 + $0x70] sm:$0xff] %v3818_v22 }
 0x8c9   :  { %v4630_v11 = vpop.eup %4629 }
 0x8ca   :  { %v4632_v52 = vpop.eup %4631  ;;  %v3777_v35 = vmul.f32 0.6931472, %v4630_v11  ;;  %v3715_v28 = vpop.xlane.xlu1 %3714 }
 0x8cb   :  { %v3775_v40 = vmul.f32 0.6931472, %v4632_v52  ;;  %4633 = vlog2.f32 %v3715_v28 }
 0x8cc   :  { %v3822_v0 = vsub.f32 %v6426_v19, %v3777_v35 }
 0x8cd   :  { %v3821_v39 = vsub.f32 %v6422_v12, %v3775_v40 }
 0x8ce   :  { %3854 = vst [vmem:[#allocation11 + $0x90] sm:$0xff] %v3822_v0 }
 0x8cf   :  { %3853 = vst [vmem:[#allocation11 + $0x88] sm:$0xff] %v3821_v39 }
 0x8d1   :  { %v4634_v41 = vpop.eup %4633 }
 0x8d2   :  { %v3779_v55 = vmul.f32 0.6931472, %v4634_v41  ;;  %v3717_v49 = vpop.xlane.xlu2 %3716 }
 0x8d3   :  { %4635 = vlog2.f32 %v3717_v49 }
 0x8d4   :  { %v3823_v36 = vsub.f32 %v6432_v33, %v3779_v55 }
 0x8d6   :  { %3855 = vst [vmem:[#allocation11 + $0x98] sm:$0xff] %v3823_v36 }
 0x8d9   :  { %v4636_v34 = vpop.eup %4635 }
 0x8da   :  { %v3781_v9 = vmul.f32 0.6931472, %v4636_v34  ;;  %v3719_v57 = vpop.xlane.xlu0 %3718 }
 0x8db   :  { %4637 = vlog2.f32 %v3719_v57 }
 0x8dc   :  { %v3824_v5 = vsub.f32 %v6437_v61, %v3781_v9 }
 0x8de   :  { %3856 = vst [vmem:[#allocation11 + $0xa0] sm:$0xff] %v3824_v5 }
 0x8e1   :  { %v4638_v60 = vpop.eup %4637 }
 0x8e2   :  { %v3783_v19 = vmul.f32 0.6931472, %v4638_v60  ;;  %v3721_v4 = vpop.xlane.xlu1 %3720 }
 0x8e3   :  { %4639 = vlog2.f32 %v3721_v4 }
 0x8e4   :  { %v3825_v12 = vsub.f32 %v6442_v62, %v3783_v19 }
 0x8e6   :  { %3857 = vst [vmem:[#allocation11 + $0xa8] sm:$0xff] %v3825_v12 }
 0x8e9   :  { %v4640_v32 = vpop.eup %4639 }
 0x8ea   :  { %v3785_v47 = vmul.f32 0.6931472, %v4640_v32  ;;  %v3723_v17 = vpop.xlane.xlu2 %3722 }
 0x8eb   :  { %4641 = vlog2.f32 %v3723_v17 }
 0x8ec   :  { %v3826_v33 = vsub.f32 %v6447_v25, %v3785_v47 }
 0x8ee   :  { %3858 = vst [vmem:[#allocation11 + $0xb0] sm:$0xff] %v3826_v33 }
 0x8f1   :  { %v4642_v10 = vpop.eup %4641 }
 0x8f2   :  { %v3787_v6 = vmul.f32 0.6931472, %v4642_v10  ;;  %v3725_v50 = vpop.xlane.xlu0 %3724 }
 0x8f3   :  { %4643 = vlog2.f32 %v3725_v50 }
 0x8f4   :  { %v3827_v61 = vsub.f32 %v6452_v27, %v3787_v6 }
 0x8f6   :  { %3859 = vst [vmem:[#allocation11 + $0xb8] sm:$0xff] %v3827_v61 }
 0x8f9   :  { %v4644_v30 = vpop.eup %4643 }
 0x8fa   :  { %v3789_v13 = vmul.f32 0.6931472, %v4644_v30  ;;  %v3727_v46 = vpop.xlane.xlu1 %3726 }
 0x8fb   :  { %4645 = vlog2.f32 %v3727_v46 }
 0x8fc   :  { %v3828_v62 = vsub.f32 %v6457_v31, %v3789_v13 }
 0x8fe   :  { %3860 = vst [vmem:[#allocation11 + $0xc0] sm:$0xff] %v3828_v62 }
 0x901   :  { %v4646_v37 = vpop.eup %4645 }
 0x902   :  { %v3791_v51 = vmul.f32 0.6931472, %v4646_v37  ;;  %v3729_v2 = vpop.xlane.xlu2 %3728 }
 0x903   :  { %4647 = vlog2.f32 %v3729_v2 }
 0x904   :  { %v3829_v25 = vsub.f32 %v6462_v54, %v3791_v51 }
 0x906   :  { %3861 = vst [vmem:[#allocation11 + $0xc8] sm:$0xff] %v3829_v25 }
 0x909   :  { %v4648_v38 = vpop.eup %4647 }
 0x90a   :  { %v3793_v1 = vmul.f32 0.6931472, %v4648_v38  ;;  %v3731_v7 = vpop.xlane.xlu0 %3730 }
 0x90b   :  { %4649 = vlog2.f32 %v3731_v7 }
 0x90c   :  { %v3830_v27 = vsub.f32 %v6467_v20, %v3793_v1 }
 0x90e   :  { %3862 = vst [vmem:[#allocation11 + $0xd0] sm:$0xff] %v3830_v27 }
 0x911   :  { %v4650_v56 = vpop.eup %4649 }
 0x912   :  { %v3795_v15 = vmul.f32 0.6931472, %v4650_v56  ;;  %v3733_v18 = vpop.xlane.xlu1 %3732 }
 0x913   :  { %4651 = vlog2.f32 %v3733_v18 }
 0x914   :  { %v3831_v31 = vsub.f32 %v6472_v26, %v3795_v15 }
 0x916   :  { %3863 = vst [vmem:[#allocation11 + $0xd8] sm:$0xff] %v3831_v31 }
 0x919   :  { %v4652_v45 = vpop.eup %4651 }
 0x91a   :  { %v3797_v29 = vmul.f32 0.6931472, %v4652_v45  ;;  %v3735_v23 = vpop.xlane.xlu2 %3734 }
 0x91b   :  { %4653 = vlog2.f32 %v3735_v23 }
 0x91c   :  { %v3832_v54 = vsub.f32 %v6476_v58, %v3797_v29 }
 0x91e   :  { %3864 = vst [vmem:[#allocation11 + $0xe0] sm:$0xff] %v3832_v54 }
 0x921   :  { %v4654_v3 = vpop.eup %4653 }
 0x922   :  { %v3799_v14 = vmul.f32 0.6931472, %v4654_v3  ;;  %v3737_v44 = vpop.xlane.xlu0 %3736 }
 0x923   :  { %4655 = vlog2.f32 %v3737_v44 }
 0x924   :  { %v3833_v20 = vsub.f32 %v6480_v16, %v3799_v14 }
 0x926   :  { %3865 = vst [vmem:[#allocation11 + $0xe8] sm:$0xff] %v3833_v20 }
 0x929   :  { %v4656_v53 = vpop.eup %4655 }
 0x92a   :  { %v3801_v63 = vmul.f32 0.6931472, %v4656_v53  ;;  %v3739_v8 = vpop.xlane.xlu1 %3738 }
 0x92b   :  { %4657 = vlog2.f32 %v3739_v8 }
 0x92c   :  { %v3834_v26 = vsub.f32 %v6484_v48, %v3801_v63 }
 0x92e   :  { %3866 = vst [vmem:[#allocation11 + $0xf0] sm:$0xff] %v3834_v26 }
 0x931   :  { %v4658_v58 = vpop.eup %4657 }
 0x932   :  { %v3803_v59 = vmul.f32 0.6931472, %v4658_v58 }
 0x934   :  { %v3835_v16 = vsub.f32 %v6488_v43, %v3803_v59 }
 0x936   :  { %3867 = vst [vmem:[#allocation11 + $0xf8] sm:$0xff] %v3835_v16 }
 0x937   :  { %3880 = dma.vmem_to_hbm [thread:$0]  %s3873_s22, 4096, %s3875_s25, [#allocation4], %s4832_s26, %s4832_s26, %s4833_s27  }
 0x938   :  { %4821 = dma.done.wait [#allocation4], 4096  }
 0x939   :  { %4822 = vsyncadd [#allocation4], 4294963200 }
 0x93a   :  { %3885 = vsyncpa [#allocation3], 1 }
 0x93b   :  { %3886 = vsyncpa [#allocation6], 1 }
 0x93c   :  { %3887 = vsyncpa [#allocation9], 1 }
 0x93d   :  { %3888 = vsyncpa [#allocation4], 1 }

</bundles_post_ra>
